<compile_context>
chip_gen: v7x
topology: tpu7x:2x2x1
jax: 0.10.0
libtpu: 0.0.40
codegen_flags: <defaults>
</compile_context>

<pallas_src>
import functools

import jax
import jax.numpy as jnp
from jax import lax
from jax.experimental import pallas as pl
from jax.experimental.pallas import tpu as pltpu

_LN_EPS = 1e-5                      # torch.nn.LayerNorm default eps
_SQRT_2_OVER_PI = 0.7978845608028654


def _gelu(h):
    # TODO(synk): torch.nn.GELU() default is the exact erf form; the kernel
    # uses the tanh approximation (EUP-friendly, <~1e-3 abs deviation).
    return 0.5 * h * (1.0 + jnp.tanh(_SQRT_2_OVER_PI * (h + 0.044715 * (h * h * h))))


def _layernorm(h, gamma, beta):
    mu = jnp.mean(h, axis=-1, keepdims=True)
    ms = jnp.mean(h * h, axis=-1, keepdims=True)
    var = ms - mu * mu
    return (h - mu) * lax.rsqrt(var + _LN_EPS) * gamma + beta


def _round_up(n, m):
    return ((n + m - 1) // m) * m


def _num_tensorcores():
    # v7x has 2 TensorCores per chip; v5e/v6e have 1.
    try:
        kind = jax.devices()[0].device_kind.lower()
        return 2 if ("v7" in kind or "7x" in kind) else 1
    except Exception:  # pragma: no cover - defensive
        return 1


# ---------------------------------------------------------------------------
# Kernel
# ---------------------------------------------------------------------------
# Packed f32 "vecs" rows (all padded to the lane width of the output):
#   0: w1_t   1: b1   2: g1   3: be1
#   4: b2     5: g2   6: be2
#   7: bc1' (= bc1 - b3 @ wc1)   8: gc   9: bec
#  10: bc2 (padded classifier bias, full lane width)
def diffusion_kernel(x_ref, t_ref, w64_ref, wc2_ref, vecs_ref, out_ref):
    D = x_ref.shape[1]
    H = w64_ref.shape[1]
    OUT = out_ref.shape[1]
    bf16 = jnp.bfloat16

    xb = x_ref[...]                                   # (TB, D)  bf16
    t = t_ref[...]                                    # (TB, 1)  f32
    v = vecs_ref[...]                                 # (11, VW) f32

    w1t = v[0:1, :H]
    b1, g1, be1 = v[1:2, :H], v[2:3, :H], v[3:4, :H]
    b2, g2, be2 = v[4:5, :H], v[5:6, :H], v[6:7, :H]
    bc1f, gc, bec = v[7:8, :H], v[8:9, :H], v[9:10, :H]
    bc2 = v[10:11, 0:OUT]

    # Static, sublane-tile-aligned slices of the packed bf16 weight slab.
    w1x = w64_ref[0:D, :]
    wc1 = w64_ref[D:2 * D, :]
    w2 = w64_ref[2 * D:2 * D + H, :]
    w3c1 = w64_ref[2 * D + H:2 * D + 2 * H, :]

    # Classifier x-path first: independent of the denoiser chain, so this MXU
    # op overlaps the whole denoising net; x's live range ends here.
    cx = jnp.dot(xb, wc1, preferred_element_type=jnp.float32)

    # Denoising net: Linear -> LN -> GELU -> Linear -> LN -> GELU
    # (the final Linear(H, D) is folded into the classifier via w3c1).
    h = jnp.dot(xb, w1x, preferred_element_type=jnp.float32)
    h = h + t * w1t + b1                              # rank-1 timestep column
    h = _gelu(_layernorm(h, g1, be1))
    # TODO(synk): nn.Dropout is identity in eval mode; intentionally omitted.
    h = jnp.dot(h.astype(bf16), w2, preferred_element_type=jnp.float32) + b2
    h = _gelu(_layernorm(h, g2, be2))

    # classifier: (x - noise) @ wc1 + bc1 == x@wc1 - h@(w3@wc1) + (bc1 - b3@wc1)
    c = cx - jnp.dot(h.astype(bf16), w3c1, preferred_element_type=jnp.float32) + bc1f
    c = _gelu(_layernorm(c, gc, bec))
    logits = (jnp.dot(c.astype(bf16), wc2_ref[...],
                      preferred_element_type=jnp.float32) + bc2)
    out_ref[...] = logits.astype(out_ref.dtype)


# ---------------------------------------------------------------------------
# Parameters
# ---------------------------------------------------------------------------
def init_params(key, input_dim, hidden_dim, num_classes):
    ks = jax.random.split(key, 5)

    def lin(k, fan_in, fan_out):
        w = (jax.random.normal(k, (fan_in, fan_out), jnp.float32)
             * (1.0 / jnp.sqrt(float(fan_in))))
        b = jnp.full((fan_out,), 0.01, jnp.float32)
        return w, b

    w1, b1 = lin(ks[0], input_dim + 1, hidden_dim)
    w2, b2 = lin(ks[1], hidden_dim, hidden_dim)
    w3, b3 = lin(ks[2], hidden_dim, input_dim)
    wc1, bc1 = lin(ks[3], input_dim, hidden_dim)
    wc2, bc2 = lin(ks[4], hidden_dim, num_classes)

    # Split w1 into x-columns and the timestep column (rank-1 in-kernel).
    w1x = w1[:input_dim]                              # (D, H)
    w1t = w1[input_dim]                               # (H,)

    # Fuse the denoiser's output Linear into the classifier (f32, host-side).
    w3c1 = w3 @ wc1                                   # (H, H)
    bc1f = bc1 - b3 @ wc1                             # (H,)

    # Lane-dense classifier output: zero-pad columns to a multiple of 128.
    out_pad = max(128, _round_up(num_classes, 128))
    wc2p = jnp.zeros((hidden_dim, out_pad), jnp.float32).at[:, :num_classes].set(wc2)
    bc2p = jnp.zeros((out_pad,), jnp.float32).at[:num_classes].set(bc2)

    # Pack the ten H-wide f32 vectors + padded classifier bias into one slab.
    vw = max(out_pad, _round_up(hidden_dim, 128))
    pad = lambda r: jnp.zeros((vw,), jnp.float32).at[:r.shape[0]].set(r)
    ones_h = jnp.ones((hidden_dim,), jnp.float32)
    zeros_h = jnp.zeros((hidden_dim,), jnp.float32)
    vecs = jnp.stack(
        [pad(r) for r in (w1t, b1, ones_h, zeros_h,       # w1_t, b1, g1, be1
                          b2, ones_h, zeros_h,            # b2, g2, be2
                          bc1f, ones_h, zeros_h)]         # bc1', gc, bec
        + [pad(bc2p)], axis=0)                             # bc2 (padded)

    bf = jnp.bfloat16
    w64 = jnp.concatenate([w1x, wc1, w2, w3c1], axis=0).astype(bf)  # (2D+2H, H)

    params = dict(w64=w64, wc2p=wc2p.astype(bf), vecs=vecs)
    raw = dict(w1=w1, b1=b1, w2=w2, b2=b2, w3=w3, b3=b3,
               wc1=wc1, bc1=bc1, wc2=wc2, bc2=bc2)
    return params, raw


# ---------------------------------------------------------------------------
# Forward wrapper
# ---------------------------------------------------------------------------
def diffusion_forward(x, t, params, num_steps, num_classes, tile_b=None):
    """x: (B, input_dim) f32, t: (B,) timestep -> (B, num_classes) f32."""
    B, D = x.shape
    NW, H = params["w64"].shape
    OUT = params["wc2p"].shape[1]
    NV, VW = params["vecs"].shape

    # One tile on single-TC chips (v5e/v6e); split across the two TCs on v7x.
    if tile_b is None:
        tb = _round_up(pl.cdiv(max(B, 1), _num_tensorcores()), 16)
    else:
        tb = _round_up(tile_b, 16)
    tb = min(tb, _round_up(max(B, 1), 16))
    Bp = _round_up(B, tb)

    # glue: timestep normalization, bf16 cast of x, optional batch pad.
    t_norm = (t.astype(jnp.float32) / float(num_steps)).reshape(-1, 1)
    xb = x.astype(jnp.bfloat16)
    if Bp != B:
        xb = jnp.pad(xb, ((0, Bp - B), (0, 0)))
        t_norm = jnp.pad(t_norm, ((0, Bp - B), (0, 0)))

    act = lambda shape: pl.BlockSpec(shape, lambda i: (i, 0))   # batch-tiled
    res = lambda shape: pl.BlockSpec(shape, lambda i: (0, 0))   # resident weights
    # TODO(synk): pipeline_mode=pl.Buffered(1) on the resident specs would drop
    # the unused second weight buffer; omitted to stay on the conservative API.

    out = pl.pallas_call(
        diffusion_kernel,
        out_shape=jax.ShapeDtypeStruct((Bp, OUT), jnp.float32),
        grid=(Bp // tb,),
        in_specs=[
            act((tb, D)),        # x (bf16)
            act((tb, 1)),        # t_norm (f32)
            res((NW, H)),        # packed bf16 weights [w1x; wc1; w2; w3c1]
            res((H, OUT)),       # wc2 (padded, bf16)
            res((NV, VW)),       # packed f32 vectors (+ padded bc2)
        ],
        out_specs=act((tb, OUT)),
        compiler_params=pltpu.CompilerParams(
            dimension_semantics=("parallel",)),
    )(xb, t_norm, params["w64"], params["wc2p"], params["vecs"])

    return out[:B, :num_classes]


# ---------------------------------------------------------------------------
# References
# ---------------------------------------------------------------------------
def _reference_matched(x, t, params, num_steps, num_classes):
    # Pure-JAX reference mirroring the kernel's fused, mixed-precision recipe.
    bf = jnp.bfloat16
    w64, wc2, v = params["w64"], params["wc2p"], params["vecs"]
    D, H = x.shape[1], w64.shape[1]
    w1x, wc1 = w64[0:D], w64[D:2 * D]
    w2, w3c1 = w64[2 * D:2 * D + H], w64[2 * D + H:2 * D + 2 * H]
    w1t = v[0:1, :H]
    b1, g1, be1 = v[1:2, :H], v[2:3, :H], v[3:4, :H]
    b2, g2, be2 = v[4:5, :H], v[5:6, :H], v[6:7, :H]
    bc1f, gc, bec = v[7:8, :H], v[8:9, :H], v[9:10, :H]
    bc2 = v[10:11, :wc2.shape[1]]

    dot = lambda a, w: jnp.dot(a.astype(bf), w, preferred_element_type=jnp.float32)
    t_norm = (t.astype(jnp.float32) / float(num_steps)).reshape(-1, 1)
    xb = x.astype(bf)
    cx = dot(xb, wc1)
    h = dot(xb, w1x) + t_norm * w1t + b1
    h = _gelu(_layernorm(h, g1, be1))
    h = dot(h, w2) + b2
    h = _gelu(_layernorm(h, g2, be2))
    c = cx - dot(h, w3c1) + bc1f
    c = _gelu(_layernorm(c, gc, bec))
    logits = dot(c, wc2) + bc2
    return logits[:, :num_classes]


def _reference_torch_like(x, t, raw, num_steps):
    # f32, unfused, exact-erf GELU, two-pass LayerNorm: the PyTorch module
    # (eval mode, LayerNorm gamma=1 / beta=0 at init).
    def ln(h):
        mu = jnp.mean(h, -1, keepdims=True)
        var = jnp.mean((h - mu) ** 2, -1, keepdims=True)
        return (h - mu) / jnp.sqrt(var + _LN_EPS)

    gelu = lambda h: jax.nn.gelu(h, approximate=False)
    t_norm = (t.astype(jnp.float32) / float(num_steps)).reshape(-1, 1)
    x_in = jnp.concatenate([x, t_norm], axis=-1)
    h = gelu(ln(x_in @ raw["w1"] + raw["b1"]))
    h = gelu(ln(h @ raw["w2"] + raw["b2"]))
    noise = h @ raw["w3"] + raw["b3"]
    x_denoised = x - noise
    c = gelu(ln(x_denoised @ raw["wc1"] + raw["bc1"]))
    return c @ raw["wc2"] + raw["bc2"]


if __name__ == "__main__":
    B, INPUT_DIM, HIDDEN_DIM, NUM_CLASSES, NUM_STEPS = 256, 16, 64, 4, 100

    key = jax.random.PRNGKey(0)
    k_x, k_t, k_p = jax.random.split(key, 3)
    x = jax.random.normal(k_x, (B, INPUT_DIM), jnp.float32)
    t = jax.random.randint(k_t, (B,), 0, NUM_STEPS)
    params, raw = init_params(k_p, INPUT_DIM, HIDDEN_DIM, NUM_CLASSES)

    fwd = jax.jit(functools.partial(diffusion_forward,
                                    num_steps=NUM_STEPS,
                                    num_classes=NUM_CLASSES))
    logits = fwd(x, t, params)
    jax.block_until_ready(logits)
    assert logits.shape == (B, NUM_CLASSES)

    # Tight check against a reference with the kernel's exact math recipe.
    ref_m = _reference_matched(x, t, params, NUM_STEPS, NUM_CLASSES)
    err_m = float(jnp.max(jnp.abs(logits - ref_m)))
    assert jnp.allclose(logits, ref_m, atol=1e-3, rtol=1e-3), err_m

    # Loose check against the f32 / erf-GELU / unfused PyTorch-equivalent
    # forward (accepted bf16 + tanh-GELU + fusion tolerance).
    ref_t = _reference_torch_like(x, t, raw, NUM_STEPS)
    err_t = float(jnp.max(jnp.abs(logits - ref_t)))
    assert err_t < 1e-1, err_t

    print("KERNEL_OK")
</pallas_src>

<mosaic_0001>
module attributes {stable_mosaic.version = 11 : i64} {
  func.func @diffusion_kernel(%arg0: i32, %arg1: memref<256x16xbf16, #tpu.memory_space<vmem>>, %arg2: memref<256x1xf32, #tpu.memory_space<vmem>>, %arg3: memref<160x64xbf16, #tpu.memory_space<vmem>>, %arg4: memref<64x128xbf16, #tpu.memory_space<vmem>>, %arg5: memref<11x128xf32, #tpu.memory_space<vmem>>, %arg6: memref<256x128xf32, #tpu.memory_space<vmem>>) attributes {dimension_semantics = [#tpu.dimension_semantics<parallel>], iteration_bounds = array<i64: 1>, scalar_prefetch = 0 : i64, scratch_operands = 0 : i64, tpu.core_type = #tpu.core_type<tc>, window_params = [{transform_indices = @transform_0, window_bounds = array<i64: 256, 16>}, {transform_indices = @transform_1, window_bounds = array<i64: 256, 1>}, {pipeline_mode = #tpu.pipeline_mode<synchronous>, transform_indices = @transform_2, window_bounds = array<i64: 160, 64>}, {pipeline_mode = #tpu.pipeline_mode<synchronous>, transform_indices = @transform_3, window_bounds = array<i64: 64, 128>}, {pipeline_mode = #tpu.pipeline_mode<synchronous>, transform_indices = @transform_4, window_bounds = array<i64: 11, 128>}, {transform_indices = @transform_5, window_bounds = array<i64: 256, 128>}]} {
    %c0 = arith.constant 0 : index
    %c0_0 = arith.constant 0 : index
    %0 = vector.load %arg1[%c0, %c0_0] : memref<256x16xbf16, #tpu.memory_space<vmem>>, vector<256x16xbf16>
    %c0_1 = arith.constant 0 : index
    %c0_2 = arith.constant 0 : index
    %1 = vector.load %arg2[%c0_1, %c0_2] : memref<256x1xf32, #tpu.memory_space<vmem>>, vector<256x1xf32>
    %c0_3 = arith.constant 0 : index
    %c0_4 = arith.constant 0 : index
    %2 = vector.load %arg5[%c0_3, %c0_4] : memref<11x128xf32, #tpu.memory_space<vmem>>, vector<11x128xf32>
    %3 = vector.extract_strided_slice %2 {offsets = [0, 0], sizes = [1, 64], strides = [1, 1]} : vector<11x128xf32> to vector<1x64xf32>
    %4 = vector.extract_strided_slice %2 {offsets = [1, 0], sizes = [1, 64], strides = [1, 1]} : vector<11x128xf32> to vector<1x64xf32>
    %5 = vector.extract_strided_slice %2 {offsets = [2, 0], sizes = [1, 64], strides = [1, 1]} : vector<11x128xf32> to vector<1x64xf32>
    %6 = vector.extract_strided_slice %2 {offsets = [3, 0], sizes = [1, 64], strides = [1, 1]} : vector<11x128xf32> to vector<1x64xf32>
    %7 = vector.extract_strided_slice %2 {offsets = [4, 0], sizes = [1, 64], strides = [1, 1]} : vector<11x128xf32> to vector<1x64xf32>
    %8 = vector.extract_strided_slice %2 {offsets = [5, 0], sizes = [1, 64], strides = [1, 1]} : vector<11x128xf32> to vector<1x64xf32>
    %9 = vector.extract_strided_slice %2 {offsets = [6, 0], sizes = [1, 64], strides = [1, 1]} : vector<11x128xf32> to vector<1x64xf32>
    %10 = vector.extract_strided_slice %2 {offsets = [7, 0], sizes = [1, 64], strides = [1, 1]} : vector<11x128xf32> to vector<1x64xf32>
    %11 = vector.extract_strided_slice %2 {offsets = [8, 0], sizes = [1, 64], strides = [1, 1]} : vector<11x128xf32> to vector<1x64xf32>
    %12 = vector.extract_strided_slice %2 {offsets = [9, 0], sizes = [1, 64], strides = [1, 1]} : vector<11x128xf32> to vector<1x64xf32>
    %13 = vector.extract_strided_slice %2 {offsets = [10, 0], sizes = [1, 128], strides = [1, 1]} : vector<11x128xf32> to vector<1x128xf32>
    %c0_5 = arith.constant 0 : index
    %c0_6 = arith.constant 0 : index
    %14 = vector.load %arg3[%c0_5, %c0_6] : memref<160x64xbf16, #tpu.memory_space<vmem>>, vector<16x64xbf16>
    %c16 = arith.constant 16 : index
    %c0_7 = arith.constant 0 : index
    %15 = vector.load %arg3[%c16, %c0_7] : memref<160x64xbf16, #tpu.memory_space<vmem>>, vector<16x64xbf16>
    %c32 = arith.constant 32 : index
    %c0_8 = arith.constant 0 : index
    %16 = vector.load %arg3[%c32, %c0_8] : memref<160x64xbf16, #tpu.memory_space<vmem>>, vector<64x64xbf16>
    %c96 = arith.constant 96 : index
    %c0_9 = arith.constant 0 : index
    %17 = vector.load %arg3[%c96, %c0_9] : memref<160x64xbf16, #tpu.memory_space<vmem>>, vector<64x64xbf16>
    %cst = arith.constant dense<0.000000e+00> : vector<256x64xf32>
    %18 = tpu.matmul %0, %15, %cst {dimension_numbers = #tpu.dot_dimension_numbers<[1], [0], [0], [1], [0, 0, 1, 1], [], []>} : vector<256x16xbf16>, vector<16x64xbf16>, vector<256x64xf32> -> vector<256x64xf32>
    %cst_10 = arith.constant dense<0.000000e+00> : vector<256x64xf32>
    %19 = tpu.matmul %0, %14, %cst_10 {dimension_numbers = #tpu.dot_dimension_numbers<[1], [0], [0], [1], [0, 0, 1, 1], [], []>} : vector<256x16xbf16>, vector<16x64xbf16>, vector<256x64xf32> -> vector<256x64xf32>
    %20 = vector.broadcast %1 : vector<256x1xf32> to vector<256x64xf32>
    %21 = vector.broadcast %3 : vector<1x64xf32> to vector<256x64xf32>
    %22 = arith.mulf %20, %21 : vector<256x64xf32>
    %23 = arith.addf %19, %22 : vector<256x64xf32>
    %24 = vector.broadcast %4 : vector<1x64xf32> to vector<256x64xf32>
    %25 = arith.addf %23, %24 : vector<256x64xf32>
    %cst_11 = arith.constant dense<0.000000e+00> : vector<256xf32>
    %26 = vector.multi_reduction <add>, %25, %cst_11 [1] : vector<256x64xf32> to vector<256xf32>
    %27 = vector.shape_cast %26 : vector<256xf32> to vector<256x1xf32>
    %cst_12 = arith.constant 6.400000e+01 : f32
    %28 = vector.broadcast %cst_12 : f32 to vector<256x1xf32>
    %29 = arith.divf %27, %28 : vector<256x1xf32>
    %30 = arith.mulf %25, %25 : vector<256x64xf32>
    %cst_13 = arith.constant dense<0.000000e+00> : vector<256xf32>
    %31 = vector.multi_reduction <add>, %30, %cst_13 [1] : vector<256x64xf32> to vector<256xf32>
    %32 = vector.shape_cast %31 : vector<256xf32> to vector<256x1xf32>
    %cst_14 = arith.constant 6.400000e+01 : f32
    %33 = vector.broadcast %cst_14 : f32 to vector<256x1xf32>
    %34 = arith.divf %32, %33 : vector<256x1xf32>
    %35 = arith.mulf %29, %29 : vector<256x1xf32>
    %36 = arith.subf %34, %35 : vector<256x1xf32>
    %37 = vector.broadcast %29 : vector<256x1xf32> to vector<256x64xf32>
    %38 = arith.subf %25, %37 : vector<256x64xf32>
    %cst_15 = arith.constant 9.99999974E-6 : f32
    %39 = vector.broadcast %cst_15 : f32 to vector<256x1xf32>
    %40 = arith.addf %36, %39 : vector<256x1xf32>
    %41 = math.rsqrt %40 : vector<256x1xf32>
    %42 = vector.broadcast %41 : vector<256x1xf32> to vector<256x64xf32>
    %43 = arith.mulf %38, %42 : vector<256x64xf32>
    %44 = vector.broadcast %5 : vector<1x64xf32> to vector<256x64xf32>
    %45 = arith.mulf %43, %44 : vector<256x64xf32>
    %46 = vector.broadcast %6 : vector<1x64xf32> to vector<256x64xf32>
    %47 = arith.addf %45, %46 : vector<256x64xf32>
    %cst_16 = arith.constant 5.000000e-01 : f32
    %48 = vector.broadcast %cst_16 : f32 to vector<256x64xf32>
    %49 = arith.mulf %48, %47 : vector<256x64xf32>
    %50 = arith.mulf %47, %47 : vector<256x64xf32>
    %51 = arith.mulf %50, %47 : vector<256x64xf32>
    %cst_17 = arith.constant 4.471500e-02 : f32
    %52 = vector.broadcast %cst_17 : f32 to vector<256x64xf32>
    %53 = arith.mulf %52, %51 : vector<256x64xf32>
    %54 = arith.addf %47, %53 : vector<256x64xf32>
    %cst_18 = arith.constant 0.797884583 : f32
    %55 = vector.broadcast %cst_18 : f32 to vector<256x64xf32>
    %56 = arith.mulf %55, %54 : vector<256x64xf32>
    %57 = math.tanh %56 : vector<256x64xf32>
    %cst_19 = arith.constant 1.000000e+00 : f32
    %58 = vector.broadcast %cst_19 : f32 to vector<256x64xf32>
    %59 = arith.addf %58, %57 : vector<256x64xf32>
    %60 = arith.mulf %49, %59 : vector<256x64xf32>
    %61 = arith.truncf %60 : vector<256x64xf32> to vector<256x64xbf16>
    %cst_20 = arith.constant dense<0.000000e+00> : vector<256x64xf32>
    %62 = tpu.matmul %61, %16, %cst_20 {dimension_numbers = #tpu.dot_dimension_numbers<[1], [0], [0], [1], [0, 0, 1, 1], [], []>} : vector<256x64xbf16>, vector<64x64xbf16>, vector<256x64xf32> -> vector<256x64xf32>
    %63 = vector.broadcast %7 : vector<1x64xf32> to vector<256x64xf32>
    %64 = arith.addf %62, %63 : vector<256x64xf32>
    %cst_21 = arith.constant dense<0.000000e+00> : vector<256xf32>
    %65 = vector.multi_reduction <add>, %64, %cst_21 [1] : vector<256x64xf32> to vector<256xf32>
    %66 = vector.shape_cast %65 : vector<256xf32> to vector<256x1xf32>
    %cst_22 = arith.constant 6.400000e+01 : f32
    %67 = vector.broadcast %cst_22 : f32 to vector<256x1xf32>
    %68 = arith.divf %66, %67 : vector<256x1xf32>
    %69 = arith.mulf %64, %64 : vector<256x64xf32>
    %cst_23 = arith.constant dense<0.000000e+00> : vector<256xf32>
    %70 = vector.multi_reduction <add>, %69, %cst_23 [1] : vector<256x64xf32> to vector<256xf32>
    %71 = vector.shape_cast %70 : vector<256xf32> to vector<256x1xf32>
    %cst_24 = arith.constant 6.400000e+01 : f32
    %72 = vector.broadcast %cst_24 : f32 to vector<256x1xf32>
    %73 = arith.divf %71, %72 : vector<256x1xf32>
    %74 = arith.mulf %68, %68 : vector<256x1xf32>
    %75 = arith.subf %73, %74 : vector<256x1xf32>
    %76 = vector.broadcast %68 : vector<256x1xf32> to vector<256x64xf32>
    %77 = arith.subf %64, %76 : vector<256x64xf32>
    %cst_25 = arith.constant 9.99999974E-6 : f32
    %78 = vector.broadcast %cst_25 : f32 to vector<256x1xf32>
    %79 = arith.addf %75, %78 : vector<256x1xf32>
    %80 = math.rsqrt %79 : vector<256x1xf32>
    %81 = vector.broadcast %80 : vector<256x1xf32> to vector<256x64xf32>
    %82 = arith.mulf %77, %81 : vector<256x64xf32>
    %83 = vector.broadcast %8 : vector<1x64xf32> to vector<256x64xf32>
    %84 = arith.mulf %82, %83 : vector<256x64xf32>
    %85 = vector.broadcast %9 : vector<1x64xf32> to vector<256x64xf32>
    %86 = arith.addf %84, %85 : vector<256x64xf32>
    %cst_26 = arith.constant 5.000000e-01 : f32
    %87 = vector.broadcast %cst_26 : f32 to vector<256x64xf32>
    %88 = arith.mulf %87, %86 : vector<256x64xf32>
    %89 = arith.mulf %86, %86 : vector<256x64xf32>
    %90 = arith.mulf %89, %86 : vector<256x64xf32>
    %cst_27 = arith.constant 4.471500e-02 : f32
    %91 = vector.broadcast %cst_27 : f32 to vector<256x64xf32>
    %92 = arith.mulf %91, %90 : vector<256x64xf32>
    %93 = arith.addf %86, %92 : vector<256x64xf32>
    %cst_28 = arith.constant 0.797884583 : f32
    %94 = vector.broadcast %cst_28 : f32 to vector<256x64xf32>
    %95 = arith.mulf %94, %93 : vector<256x64xf32>
    %96 = math.tanh %95 : vector<256x64xf32>
    %cst_29 = arith.constant 1.000000e+00 : f32
    %97 = vector.broadcast %cst_29 : f32 to vector<256x64xf32>
    %98 = arith.addf %97, %96 : vector<256x64xf32>
    %99 = arith.mulf %88, %98 : vector<256x64xf32>
    %100 = arith.truncf %99 : vector<256x64xf32> to vector<256x64xbf16>
    %cst_30 = arith.constant dense<0.000000e+00> : vector<256x64xf32>
    %101 = tpu.matmul %100, %17, %cst_30 {dimension_numbers = #tpu.dot_dimension_numbers<[1], [0], [0], [1], [0, 0, 1, 1], [], []>} : vector<256x64xbf16>, vector<64x64xbf16>, vector<256x64xf32> -> vector<256x64xf32>
    %102 = arith.subf %18, %101 : vector<256x64xf32>
    %103 = vector.broadcast %10 : vector<1x64xf32> to vector<256x64xf32>
    %104 = arith.addf %102, %103 : vector<256x64xf32>
    %cst_31 = arith.constant dense<0.000000e+00> : vector<256xf32>
    %105 = vector.multi_reduction <add>, %104, %cst_31 [1] : vector<256x64xf32> to vector<256xf32>
    %106 = vector.shape_cast %105 : vector<256xf32> to vector<256x1xf32>
    %cst_32 = arith.constant 6.400000e+01 : f32
    %107 = vector.broadcast %cst_32 : f32 to vector<256x1xf32>
    %108 = arith.divf %106, %107 : vector<256x1xf32>
    %109 = arith.mulf %104, %104 : vector<256x64xf32>
    %cst_33 = arith.constant dense<0.000000e+00> : vector<256xf32>
    %110 = vector.multi_reduction <add>, %109, %cst_33 [1] : vector<256x64xf32> to vector<256xf32>
    %111 = vector.shape_cast %110 : vector<256xf32> to vector<256x1xf32>
    %cst_34 = arith.constant 6.400000e+01 : f32
    %112 = vector.broadcast %cst_34 : f32 to vector<256x1xf32>
    %113 = arith.divf %111, %112 : vector<256x1xf32>
    %114 = arith.mulf %108, %108 : vector<256x1xf32>
    %115 = arith.subf %113, %114 : vector<256x1xf32>
    %116 = vector.broadcast %108 : vector<256x1xf32> to vector<256x64xf32>
    %117 = arith.subf %104, %116 : vector<256x64xf32>
    %cst_35 = arith.constant 9.99999974E-6 : f32
    %118 = vector.broadcast %cst_35 : f32 to vector<256x1xf32>
    %119 = arith.addf %115, %118 : vector<256x1xf32>
    %120 = math.rsqrt %119 : vector<256x1xf32>
    %121 = vector.broadcast %120 : vector<256x1xf32> to vector<256x64xf32>
    %122 = arith.mulf %117, %121 : vector<256x64xf32>
    %123 = vector.broadcast %11 : vector<1x64xf32> to vector<256x64xf32>
    %124 = arith.mulf %122, %123 : vector<256x64xf32>
    %125 = vector.broadcast %12 : vector<1x64xf32> to vector<256x64xf32>
    %126 = arith.addf %124, %125 : vector<256x64xf32>
    %cst_36 = arith.constant 5.000000e-01 : f32
    %127 = vector.broadcast %cst_36 : f32 to vector<256x64xf32>
    %128 = arith.mulf %127, %126 : vector<256x64xf32>
    %129 = arith.mulf %126, %126 : vector<256x64xf32>
    %130 = arith.mulf %129, %126 : vector<256x64xf32>
    %cst_37 = arith.constant 4.471500e-02 : f32
    %131 = vector.broadcast %cst_37 : f32 to vector<256x64xf32>
    %132 = arith.mulf %131, %130 : vector<256x64xf32>
    %133 = arith.addf %126, %132 : vector<256x64xf32>
    %cst_38 = arith.constant 0.797884583 : f32
    %134 = vector.broadcast %cst_38 : f32 to vector<256x64xf32>
    %135 = arith.mulf %134, %133 : vector<256x64xf32>
    %136 = math.tanh %135 : vector<256x64xf32>
    %cst_39 = arith.constant 1.000000e+00 : f32
    %137 = vector.broadcast %cst_39 : f32 to vector<256x64xf32>
    %138 = arith.addf %137, %136 : vector<256x64xf32>
    %139 = arith.mulf %128, %138 : vector<256x64xf32>
    %140 = arith.truncf %139 : vector<256x64xf32> to vector<256x64xbf16>
    %c0_40 = arith.constant 0 : index
    %c0_41 = arith.constant 0 : index
    %141 = vector.load %arg4[%c0_40, %c0_41] : memref<64x128xbf16, #tpu.memory_space<vmem>>, vector<64x128xbf16>
    %cst_42 = arith.constant dense<0.000000e+00> : vector<256x128xf32>
    %142 = tpu.matmul %140, %141, %cst_42 {dimension_numbers = #tpu.dot_dimension_numbers<[1], [0], [0], [1], [0, 0, 1, 1], [], []>} : vector<256x64xbf16>, vector<64x128xbf16>, vector<256x128xf32> -> vector<256x128xf32>
    %143 = vector.broadcast %13 : vector<1x128xf32> to vector<256x128xf32>
    %144 = arith.addf %142, %143 : vector<256x128xf32>
    %c0_43 = arith.constant 0 : index
    %c0_44 = arith.constant 0 : index
    %145 = vector.load %arg6[%c0_43, %c0_44] : memref<256x128xf32, #tpu.memory_space<vmem>>, vector<256x128xf32>
    tpu.vector_store %arg6[%c0_43, %c0_44], %144 {strides = array<i32>} : memref<256x128xf32, #tpu.memory_space<vmem>>, vector<256x128xf32>,
    return
  }
  func.func @transform_0(%arg0: i32) -> (i32, i32) {
    %c0_i32 = arith.constant 0 : i32
    %c0_i32_0 = arith.constant 0 : i32
    return %arg0, %c0_i32 : i32, i32
  }
  func.func @transform_1(%arg0: i32) -> (i32, i32) {
    %c0_i32 = arith.constant 0 : i32
    %c0_i32_0 = arith.constant 0 : i32
    return %arg0, %c0_i32 : i32, i32
  }
  func.func @transform_2(%arg0: i32) -> (i32, i32) {
    %c0_i32 = arith.constant 0 : i32
    %c0_i32_0 = arith.constant 0 : i32
    %c0_i32_1 = arith.constant 0 : i32
    return %c0_i32, %c0_i32_0 : i32, i32
  }
  func.func @transform_3(%arg0: i32) -> (i32, i32) {
    %c0_i32 = arith.constant 0 : i32
    %c0_i32_0 = arith.constant 0 : i32
    %c0_i32_1 = arith.constant 0 : i32
    return %c0_i32, %c0_i32_0 : i32, i32
  }
  func.func @transform_4(%arg0: i32) -> (i32, i32) {
    %c0_i32 = arith.constant 0 : i32
    %c0_i32_0 = arith.constant 0 : i32
    %c0_i32_1 = arith.constant 0 : i32
    return %c0_i32, %c0_i32_0 : i32, i32
  }
  func.func @transform_5(%arg0: i32) -> (i32, i32) {
    %c0_i32 = arith.constant 0 : i32
    %c0_i32_0 = arith.constant 0 : i32
    return %arg0, %c0_i32 : i32, i32
  }
}

</mosaic_0001>

<bundles_post_ra>
// kernel: diffusion_forward.1
= control target key start
LH: loop header
LB: loop body
LE: loop exit
PB: predicated region body
PF: predicated region fallthrough
CT: control target
= control target key end

     0   :  { %vm193_vm0 = vcmask 130048   ;;  %v5005_v1 = vmov 0   ;;  %vm802_vm1 = vcmask 523264   ;;  %s8036_s2 = inlined_call_operand.vmem [shape: bf16[160,64], index: 2, kind: input, shape index: {}]   ;;  %s8037_s0 = inlined_call_operand.vmem [shape: bf16[256,16], index: 0, kind: input, shape index: {}]   ;;  %s8038_s1 = inlined_call_operand.vmem [shape: f32[256,1], index: 1, kind: input, shape index: {}]   ;;  %s8039_s4 = inlined_call_operand.vmem [shape: f32[11,128], index: 4, kind: input, shape index: {}]   ;;  %s8040_s3 = inlined_call_operand.vmem [shape: bf16[64,128], index: 3, kind: input, shape index: {}]   ;;  %s8041_s5 = inlined_call_operand.vmem [shape: f32[256,128], index: 5, kind: output, shape index: {}]  }
   0x1   :  { %v4588_v0 = vld [vmem:[%s8036_s2 + $0x8] sm:$0xff]   ;;  %4587 = vset.pattern.permute.xlu1 %v5005_v1  ;;  %4586 = vset.pattern.permute.xlu0 %v5005_v1  ;;  %v5042_v2 = vld [vmem:[%s8037_s0 + $0x40] sm:$0xff]   ;;  %v5057_v5 = vld [vmem:[%s8037_s0 + $0x50] sm:$0xff]  }
   0x2   :  { %4583 = vmatprep.subr.bf16.mxu1 %v4588_v0  ;;  %v5047_v3 = vld [vmem:[%s8037_s0 + $0x48] sm:$0xff]   ;;  %4395 = vmatprep.subr.bf16.mxu0 %v4588_v0  ;;  %v4591_v4 = vld [vmem:[%s8036_s2] sm:$0xff]   ;;  %v5066_v6 = vld [vmem:[%s8037_s0 + $0x58] sm:$0xff]  }
   0x3   :  { %4584 = vmatpush3.bf16.msra.mxu1 %v4588_v0  ;;  %4413 = vmatprep.mubr.msk.bf16.mxu1 %vm193_vm0, %v5042_v2  ;;  %v5071_v7 = vld [vmem:[%s8037_s0 + $0x60] sm:$0xff]   ;;  %v4599_v9 = vld [vmem:[%s8037_s0 + $0x8] sm:$0xff]   ;;  %v4600_v10 = vld [vmem:[%s8037_s0 + $0x10] sm:$0xff]  }
   0x4   :  { %4396 = vmatpush3.bf16.msra.mxu0 %v4588_v0  ;;  %4429 = vmatprep.subr.bf16.mxu1 %v4591_v4  ;;  %v4598_v8 = vld [vmem:[%s8037_s0] sm:$0xff]   ;;  %v55_v11 = vld [vmem:[%s8038_s1 + $0x10] sm:$0xff]  ;;  %v5095_v12 = vld [vmem:[%s8037_s0 + $0x68] sm:$0xff]  }
   0x5   :  { %4397 = vmatprep.mubr.msk.bf16.mxu0 %vm193_vm0, %v4598_v8  ;;  %415 = vperm.xlu1 %4587, %v55_v11   ;;  %v56_v13 = vld [vmem:[%s8038_s1 + $0x18] sm:$0xff]  ;;  %v53_v14 = vld [vmem:[%s8038_s1] sm:$0xff]  ;;  %v5106_v15 = vld [vmem:[%s8037_s0 + $0x70] sm:$0xff]  }
   0x6   :  { %4414 = vmatmul.mubr.msk.bf16.vlgmr.msra.gmra.mrb[0].mxu1 %vm193_vm0, %v5047_v3  ;;  %v4601_v16 = vld [vmem:[%s8037_s0 + $0x18] sm:$0xff]   ;;  %405 = vperm.xlu0 %4586, %v53_v14   ;;  %v4602_v17 = vld [vmem:[%s8037_s0 + $0x20] sm:$0xff]   ;;  %v54_v18 = vld [vmem:[%s8038_s1 + $0x8] sm:$0xff] }
   0x7   :  { %4430 = vmatpush3.bf16.msra.mxu1 %v4591_v4  ;;  %4417 = vmatprep.mubr.msk.bf16.mxu1 %vm193_vm0, %v5057_v5  ;;  %v58_v19 = vld [vmem:[%s8038_s1 + $0x28] sm:$0xff]  ;;  %v57_v20 = vld [vmem:[%s8038_s1 + $0x20] sm:$0xff]  ;;  %v5132_v21 = vld [vmem:[%s8037_s0 + $0x78] sm:$0xff]  }
   0x8   :  { %4398 = vmatmul.mubr.msk.bf16.vlgmr.msra.gmra.mrb[0].mxu0 %vm193_vm0, %v4599_v9  ;;  %v60_v22 = vld [vmem:[%s8038_s1 + $0x38] sm:$0xff]  ;;  %v4603_v23 = vld [vmem:[%s8037_s0 + $0x28] sm:$0xff]   ;;  %v4604_v24 = vld [vmem:[%s8037_s0 + $0x30] sm:$0xff]  }
   0x9   :  { %4401 = vmatprep.mubr.msk.bf16.mxu0 %vm193_vm0, %v4600_v10  ;;  %420 = vperm.xlu1 %4587, %v56_v13   ;;  %v62_v25 = vld [vmem:[%s8038_s1 + $0x48] sm:$0xff]  ;;  %v59_v26 = vld [vmem:[%s8038_s1 + $0x30] sm:$0xff]  ;;  %v61_v27 = vld [vmem:[%s8038_s1 + $0x40] sm:$0xff] }
   0xa   :  { %410 = vperm.xlu0 %4586, %v54_v18   ;;  %v64_v28 = vld [vmem:[%s8038_s1 + $0x58] sm:$0xff]  ;;  %v63_v30 = vld [vmem:[%s8038_s1 + $0x50] sm:$0xff]  ;;  %v66_v31 = vld [vmem:[%s8038_s1 + $0x68] sm:$0xff] }
   0xb   :  { %v4605_v29 = vld [vmem:[%s8037_s0 + $0x38] sm:$0xff]   ;;  %v65_v32 = vld [vmem:[%s8038_s1 + $0x60] sm:$0xff]  ;;  %v67_v34 = vld [vmem:[%s8038_s1 + $0x70] sm:$0xff] }
   0xc   :  { %v68_v33 = vld [vmem:[%s8038_s1 + $0x78] sm:$0xff]  ;;  %v70_v35 = vld [vmem:[%s8038_s1 + $0x88] sm:$0xff]  ;;  %v69_v36 = vld [vmem:[%s8038_s1 + $0x80] sm:$0xff] }
   0xd   :  { %430 = vperm.xlu1 %4587, %v58_v19   ;;  %v72_v37 = vld [vmem:[%s8038_s1 + $0x98] sm:$0xff]  ;;  %v71_v38 = vld [vmem:[%s8038_s1 + $0x90] sm:$0xff]  ;;  %v74_v39 = vld [vmem:[%s8038_s1 + $0xa8] sm:$0xff] }
   0xe   :  { %4418 = vmatmul.mubr.msk.bf16.gmra.mrb[4].mxu1 %vm193_vm0, %v5066_v6  ;;  %425 = vperm.xlu0 %4586, %v57_v20   ;;  %v73_v40 = vld [vmem:[%s8038_s1 + $0xa0] sm:$0xff]  ;;  %v76_v41 = vld [vmem:[%s8038_s1 + $0xb8] sm:$0xff]  ;;  %v75_v42 = vld [vmem:[%s8038_s1 + $0xb0] sm:$0xff] }
   0xf   :  { %4421 = vmatprep.mubr.msk.bf16.mxu1 %vm193_vm0, %v5071_v7  ;;  %v78_v43 = vld [vmem:[%s8038_s1 + $0xc8] sm:$0xff]  ;;  %v77_v44 = vld [vmem:[%s8038_s1 + $0xc0] sm:$0xff]  ;;  %v80_v45 = vld [vmem:[%s8038_s1 + $0xd8] sm:$0xff] }
  0x10   :  { %4402 = vmatmul.mubr.msk.bf16.gmra.mrb[4].mxu0 %vm193_vm0, %v4601_v16  ;;  %v79_v46 = vld [vmem:[%s8038_s1 + $0xd0] sm:$0xff]  ;;  %v82_v47 = vld [vmem:[%s8038_s1 + $0xe8] sm:$0xff]  ;;  %v81_v48 = vld [vmem:[%s8038_s1 + $0xe0] sm:$0xff] }
  0x11   :  { %4405 = vmatprep.mubr.msk.bf16.mxu0 %vm193_vm0, %v4602_v17  ;;  %440 = vperm.xlu1 %4587, %v60_v22   ;;  %v84_v49 = vld [vmem:[%s8038_s1 + $0xf8] sm:$0xff]  ;;  %v83_v50 = vld [vmem:[%s8038_s1 + $0xf0] sm:$0xff] }
  0x12   :  { %435 = vperm.xlu0 %4586, %v59_v26  }
  0x15   :  { %450 = vperm.xlu1 %4587, %v62_v25  }
  0x16   :  { %4422 = vmatmul.mubr.msk.bf16.gmra.mrb[8].mxu1 %vm193_vm0, %v5095_v12  ;;  %445 = vperm.xlu0 %4586, %v61_v27  }
  0x17   :  { %4425 = vmatprep.mubr.msk.bf16.mxu1 %vm193_vm0, %v5106_v15 }
  0x18   :  { %4406 = vmatmul.mubr.msk.bf16.gmra.mrb[8].mxu0 %vm193_vm0, %v4603_v23 }
  0x19   :  { %4409 = vmatprep.mubr.msk.bf16.mxu0 %vm193_vm0, %v4604_v24  ;;  %460 = vperm.xlu1 %4587, %v64_v28  }
  0x1a   :  { %455 = vperm.xlu0 %4586, %v63_v30  }
  0x1d   :  { %470 = vperm.xlu1 %4587, %v66_v31  }
  0x1e   :  { %4426 = vmatmul.mubr.msk.bf16.gmra.mrb[12].mxu1 %vm193_vm0, %v5132_v21  ;;  %465 = vperm.xlu0 %4586, %v65_v32  }
  0x1f   :  { %4431 = vmatprep.mubr.msk.bf16.mxu1 %vm193_vm0, %v4598_v8 }
  0x20   :  { %4410 = vmatmul.mubr.msk.bf16.gmra.mrb[12].mxu0 %vm193_vm0, %v4605_v29 }
  0x21   :  { %480 = vperm.xlu1 %4587, %v68_v33  }
  0x22   :  { %475 = vperm.xlu0 %4586, %v67_v34  }
  0x25   :  { %490 = vperm.xlu1 %4587, %v70_v35  }
  0x26   :  { %4432 = vmatmul.mubr.msk.bf16.vlgmr.msra.gmra.mrb[16].mxu1 %vm193_vm0, %v4599_v9  ;;  %485 = vperm.xlu0 %4586, %v69_v36  }
  0x27   :  { %4435 = vmatprep.mubr.msk.bf16.mxu1 %vm193_vm0, %v4600_v10 }
  0x29   :  { %500 = vperm.xlu1 %4587, %v72_v37  }
  0x2a   :  { %495 = vperm.xlu0 %4586, %v71_v38  }
  0x2d   :  { %510 = vperm.xlu1 %4587, %v74_v39  }
  0x2e   :  { %4436 = vmatmul.mubr.msk.bf16.gmra.mrb[20].mxu1 %vm193_vm0, %v4601_v16  ;;  %505 = vperm.xlu0 %4586, %v73_v40  }
  0x2f   :  { %4439 = vmatprep.mubr.msk.bf16.mxu1 %vm193_vm0, %v4602_v17 }
  0x31   :  { %520 = vperm.xlu1 %4587, %v76_v41  }
  0x32   :  { %515 = vperm.xlu0 %4586, %v75_v42  }
  0x35   :  { %530 = vperm.xlu1 %4587, %v78_v43  }
  0x36   :  { %4440 = vmatmul.mubr.msk.bf16.gmra.mrb[24].mxu1 %vm193_vm0, %v4603_v23  ;;  %525 = vperm.xlu0 %4586, %v77_v44  }
  0x37   :  { %4443 = vmatprep.mubr.msk.bf16.mxu1 %vm193_vm0, %v4604_v24 }
  0x39   :  { %540 = vperm.xlu1 %4587, %v80_v45  }
  0x3a   :  { %535 = vperm.xlu0 %4586, %v79_v46  }
  0x3d   :  { %550 = vperm.xlu1 %4587, %v82_v47  }
  0x3e   :  { %4444 = vmatmul.mubr.msk.bf16.gmra.mrb[28].mxu1 %vm193_vm0, %v4605_v29  ;;  %545 = vperm.xlu0 %4586, %v81_v48  }
  0x3f   :  { %4447 = vmatprep.mubr.msk.bf16.mxu1 %vm193_vm0, %v5042_v2  ;;  %v563_v2 = vlaneseq }
  0x41   :  { %560 = vperm.xlu1 %4587, %v84_v49  }
  0x42   :  { %555 = vperm.xlu0 %4586, %v83_v50  }
  0x46   :  { %4448 = vmatmul.mubr.msk.bf16.gmra.mrb[32].mxu1 %vm193_vm0, %v5047_v3 }
  0x47   :  { %4451 = vmatprep.mubr.msk.bf16.mxu1 %vm193_vm0, %v5057_v5  ;;  %v5274_v5 = vshrl.u32 %v563_v2, 7 }
  0x49   :  { %8066 = vst [vmem:[#allocation11_spill] sm:$0xff] %v5274_v5  ;;  %v8043_v11 = vsub.s32 0, %v5274_v5  ;;  %v8042_v20 = vsub.s32 1, %v5274_v5 }
  0x4e   :  { %4452 = vmatmul.mubr.msk.bf16.gmra.mrb[36].mxu1 %vm193_vm0, %v5066_v6 }
  0x4f   :  { %4455 = vmatprep.mubr.msk.bf16.mxu1 %vm193_vm0, %v5071_v7 }
  0x56   :  { %4456 = vmatmul.mubr.msk.bf16.gmra.mrb[40].mxu1 %vm193_vm0, %v5095_v12  ;;  %v5290_v12 = vld [vmem:[%s8039_s4] sm:$0xff] }
  0x57   :  { %4459 = vmatprep.mubr.msk.bf16.mxu1 %vm193_vm0, %v5106_v15  ;;  %v5299_v15 = vrot.slane %v5290_v12, %v8043_v11  ;;  %v5317_v24 = vrot.slane %v5290_v12, %v8042_v20 }
  0x5e   :  { %4460 = vmatmul.mubr.msk.bf16.gmra.mrb[44].mxu1 %vm193_vm0, %v5132_v21 }
  0x84   :  { %v416_v52 = vpop.permute.xlu1 %415 }
  0x85   :  { %v406_v51 = vpop.permute.xlu0 %405  ;;  %v569_v21 = vmul.f32 %v5299_v15, %v416_v52 }
  0x86   :  { %v567_v22 = vmul.f32 %v5299_v15, %v406_v51 }
  0x88   :  { %v421_v56 = vpop.permute.xlu1 %420 }
  0x89   :  { %v411_v53 = vpop.permute.xlu0 %410  ;;  %v570_v32 = vmul.f32 %v5299_v15, %v421_v56 }
  0x8a   :  { %v568_v25 = vmul.f32 %v5299_v15, %v411_v53 }
  0x8c   :  { %v5260_v60 = vpop.permute.xlu1 %430 }
  0x8d   :  { %v5258_v59 = vpop.permute.xlu0 %425 }
  0x8e   :  { %v571_v2 = vmul.f32 %v5299_v15, %v5258_v59 }
  0x90   :  { %v5270_v3 = vpop.permute.xlu1 %440 }
  0x91   :  { %v436_v1 = vpop.permute.xlu0 %435 }
  0x92   :  { %v573_v45 = vmul.f32 %v5299_v15, %v436_v1 }
  0x94   :  { %v5284_v10 = vpop.permute.xlu1 %450 }
  0x95   :  { %v5278_v7 = vpop.permute.xlu0 %445 }
  0x98   :  { %v5303_v17 = vpop.permute.xlu1 %460 }
  0x99   :  { %v5292_v13 = vpop.permute.xlu0 %455 }
  0x9c   :  { %v5320_v26 = vpop.permute.xlu1 %470 }
  0x9d   :  { %v5312_v23 = vpop.permute.xlu0 %465 }
  0xa0   :  { %v5335_v41 = vpop.permute.xlu1 %480 }
  0xa1   :  { %v5326_v35 = vpop.permute.xlu0 %475 }
  0xa4   :  { %v5353_v1 = vpop.permute.xlu1 %490 }
  0xa5   :  { %v5347_v49 = vpop.permute.xlu0 %485 }
  0xd9   :  { %v5250_v54 = vpop.f32.mrb[0].mxu1 }
  0xda   :  { %8057 = vst [vmem:[#allocation2_spill] sm:$0xff] %v5250_v54  ;;  %v5252_v55 = vpop.f32.mrb[1].mxu1 }
  0xdb   :  { %8058 = vst [vmem:[#allocation3_spill] sm:$0xff] %v5252_v55  ;;  %v5254_v57 = vpop.f32.mrb[2].mxu1 }
  0xdc   :  { %8059 = vst [vmem:[#allocation4_spill] sm:$0xff] %v5254_v57  ;;  %v5256_v58 = vpop.f32.mrb[3].mxu1 }
  0xdd   :  { %8060 = vst [vmem:[#allocation5_spill] sm:$0xff] %v5256_v58 }
  0xe1   :  { %v5262_v61 = vpop.f32.mrb[4].mxu1 }
  0xe2   :  { %8061 = vst [vmem:[#allocation6_spill] sm:$0xff] %v5262_v61  ;;  %v5264_v62 = vpop.f32.mrb[5].mxu1 }
  0xe3   :  { %8062 = vst [vmem:[#allocation7_spill] sm:$0xff] %v5264_v62  ;;  %v5266_v63 = vpop.f32.mrb[6].mxu1 }
  0xe4   :  { %8063 = vst [vmem:[#allocation8_spill] sm:$0xff] %v5266_v63  ;;  %v5268_v0 = vpop.f32.mrb[7].mxu1 }
  0xe5   :  { %8064 = vst [vmem:[#allocation9_spill] sm:$0xff] %v5268_v0 }
  0xe9   :  { %v5272_v4 = vpop.f32.mrb[8].mxu1 }
  0xea   :  { %8065 = vst [vmem:[#allocation10_spill] sm:$0xff] %v5272_v4  ;;  %v5276_v6 = vpop.f32.mrb[9].mxu1 }
  0xeb   :  { %8067 = vst [vmem:[#allocation12_spill] sm:$0xff] %v5276_v6  ;;  %v5280_v8 = vpop.f32.mrb[10].mxu1 }
  0xec   :  { %8068 = vst [vmem:[#allocation13_spill] sm:$0xff] %v5280_v8  ;;  %v5282_v9 = vpop.f32.mrb[11].mxu1 }
  0xed   :  { %8069 = vst [vmem:[#allocation14_spill] sm:$0xff] %v5282_v9 }
  0xf1   :  { %v5294_v14 = vpop.f32.mrb[12].mxu1 }
  0xf2   :  { %8070 = vst [vmem:[#allocation15_spill] sm:$0xff] %v5294_v14  ;;  %v5301_v16 = vpop.f32.mrb[13].mxu1 }
  0xf3   :  { %8071 = vst [vmem:[#allocation16_spill] sm:$0xff] %v5301_v16  ;;  %v5305_v18 = vpop.f32.mrb[14].mxu1 }
  0xf4   :  { %8072 = vst [vmem:[#allocation17_spill] sm:$0xff] %v5305_v18  ;;  %v5307_v19 = vpop.f32.mrb[15].mxu1 }
  0xf5   :  { %8073 = vst [vmem:[#allocation18_spill] sm:$0xff] %v5307_v19 }
  0xf9   :  { %v4433_v27 = vpop.f32.mrb[16].mxu1 }
  0xfa   :  { %v648_v28 = vadd.f32 %v4433_v27, %v569_v21  ;;  %v639_v29 = vpop.f32.mrb[17].mxu1 }
  0xfb   :  { %v640_v30 = vadd.f32 %v639_v29, %v567_v22  ;;  %v4434_v31 = vpop.f32.mrb[18].mxu1 }
  0xfc   :  { %v5324_v33 = vadd.f32 %v5317_v24, %v648_v28  ;;  %v642_v34 = vpop.f32.mrb[19].mxu1  ;;  %v651_v38 = vadd.f32 %v4434_v31, %v570_v32 }
  0xfd   :  { %v643_v36 = vadd.f32 %v642_v34, %v568_v25  ;;  %v5329_v37 = vadd.f32 %v5317_v24, %v640_v30  ;;  %v574_v25 = vmul.f32 %v5299_v15, %v5270_v3  ;;  %v5367_v30 = vpop.permute.xlu0 %495  ;;  %v572_v3 = vmul.f32 %v5299_v15, %v5260_v60 }
  0xfe   :  { %v809_v39 = vsel %vm802_vm1, %v5324_v33, 0.0  ;;  %v934_v40 = vmul.f32 %v5324_v33, %v5324_v33  ;;  %v5343_v46 = vadd.f32 %v5317_v24, %v651_v38  ;;  %v501_v38 = vpop.permute.xlu1 %500 }
  0xff   :  { %810 = vadd.xlane.f32.xlu0 %v809_v39  ;;  %v5338_v42 = vadd.f32 %v5317_v24, %v643_v36  ;;  %v803_v48 = vsel %vm802_vm1, %v5329_v37, 0.0  ;;  %v932_v56 = vmul.f32 %v5329_v37, %v5329_v37 }
 0x100   :  { %v970_v43 = vsel %vm802_vm1, %v934_v40, 0.0  ;;  %v812_v21 = vsel %vm802_vm1, %v5343_v46, 0.0  ;;  %v935_v22 = vmul.f32 %v5343_v46, %v5343_v46 }
 0x101   :  { %971 = vadd.xlane.f32.xlu1 %v970_v43  ;;  %v4437_v44 = vpop.f32.mrb[20].mxu1  ;;  %v806_v53 = vsel %vm802_vm1, %v5338_v42, 0.0  ;;  %v964_v29 = vsel %vm802_vm1, %v932_v56, 0.0  ;;  %v933_v36 = vmul.f32 %v5338_v42, %v5338_v42 }
 0x102   :  { %v655_v47 = vpop.f32.mrb[21].mxu1  ;;  %v664_v51 = vadd.f32 %v4437_v44, %v573_v45  ;;  %v973_v34 = vsel %vm802_vm1, %v935_v22, 0.0 }
 0x103   :  { %v4438_v50 = vpop.f32.mrb[22].mxu1  ;;  %804 = vadd.xlane.f32.xlu0 %v803_v48  ;;  %v656_v28 = vadd.f32 %v655_v47, %v571_v2  ;;  %v967_v48 = vsel %vm802_vm1, %v933_v36, 0.0  ;;  %v577_v2 = vmul.f32 %v5299_v15, %v5292_v13  ;;  %v575_v36 = vmul.f32 %v5299_v15, %v5278_v7 }
 0x104   :  { %v658_v52 = vpop.f32.mrb[23].mxu1  ;;  %v5364_v27 = vadd.f32 %v5317_v24, %v664_v51  ;;  %v667_v59 = vadd.f32 %v4438_v50, %v574_v25  ;;  %v506_v50 = vpop.permute.xlu0 %505  ;;  %v583_v7 = vmul.f32 %v5299_v15, %v5347_v49  ;;  %v576_v49 = vmul.f32 %v5299_v15, %v5284_v10 }
 0x105   :  { %807 = vadd.xlane.f32.xlu1 %v806_v53  ;;  %v5375_v40 = vadd.f32 %v5317_v24, %v656_v28  ;;  %v659_v47 = vadd.f32 %v658_v52, %v572_v3  ;;  %v5387_v53 = vpop.permute.xlu1 %510 }
 0x106   :  { %v821_v44 = vsel %vm802_vm1, %v5364_v27, 0.0  ;;  %v5380_v45 = vadd.f32 %v5317_v24, %v667_v59  ;;  %v938_v60 = vmul.f32 %v5364_v27, %v5364_v27 }
 0x107   :  { %813 = vadd.xlane.f32.xlu0 %v812_v21  ;;  %v815_v51 = vsel %vm802_vm1, %v5375_v40, 0.0  ;;  %v5394_v52 = vadd.f32 %v5317_v24, %v659_v47 }
 0x108   :  { %v824_v22 = vsel %vm802_vm1, %v5380_v45, 0.0  ;;  %v982_v59 = vsel %vm802_vm1, %v938_v60, 0.0  ;;  %v516_v13 = vpop.permute.xlu0 %515 }
 0x109   :  { %v4441_v31 = vpop.f32.mrb[24].mxu1  ;;  %965 = vadd.xlane.f32.xlu1 %v964_v29  ;;  %v818_v3 = vsel %vm802_vm1, %v5394_v52, 0.0  ;;  %v521_v47 = vpop.permute.xlu1 %520 }
 0x10a   :  { %v671_v32 = vpop.f32.mrb[25].mxu1  ;;  %v680_v28 = vadd.f32 %v4441_v31, %v577_v2  ;;  %v578_v31 = vmul.f32 %v5299_v15, %v5303_v17  ;;  %v937_v17 = vmul.f32 %v5394_v52, %v5394_v52 }
 0x10b   :  { %v4442_v39 = vpop.f32.mrb[26].mxu1  ;;  %974 = vadd.xlane.f32.xlu0 %v973_v34  ;;  %v936_v34 = vmul.f32 %v5375_v40, %v5375_v40 }
 0x10c   :  { %v674_v43 = vpop.f32.mrb[27].mxu1 }
 0x10d   :  { %822 = vadd.xlane.f32.xlu1 %v821_v44  ;;  %v939_v44 = vmul.f32 %v5380_v45, %v5380_v45  ;;  %v976_v60 = vsel %vm802_vm1, %v936_v34, 0.0 }
 0x10f   :  { %968 = vadd.xlane.f32.xlu0 %v967_v48  ;;  %v5416_v48 = vadd.f32 %v5317_v24, %v680_v28  ;;  %v526_v28 = vpop.permute.xlu0 %525 }
 0x111   :  { %v5389_v56 = vpop.f32.mrb[28].mxu1  ;;  %816 = vadd.xlane.f32.xlu1 %v815_v51  ;;  %v672_v51 = vadd.f32 %v671_v32, %v575_v36  ;;  %v584_v32 = vmul.f32 %v5299_v15, %v5353_v1 }
 0x112   :  { %v5396_v21 = vpop.f32.mrb[29].mxu1 }
 0x113   :  { %v5400_v25 = vpop.f32.mrb[30].mxu1  ;;  %825 = vadd.xlane.f32.xlu0 %v824_v22  ;;  %v586_v22 = vmul.f32 %v5299_v15, %v501_v38 }
 0x114   :  { %v5402_v29 = vpop.f32.mrb[31].mxu1 }
 0x115   :  { %983 = vadd.xlane.f32.xlu1 %v982_v59  ;;  %v683_v59 = vadd.f32 %v4442_v39, %v578_v31  ;;  %v531_v31 = vpop.permute.xlu1 %530 }
 0x117   :  { %819 = vadd.xlane.f32.xlu0 %v818_v3  ;;  %v985_v3 = vsel %vm802_vm1, %v939_v44, 0.0  ;;  %v833_v44 = vsel %vm802_vm1, %v5416_v48, 0.0 }
 0x119   :  { %v5421_v2 = vpop.f32.mrb[32].mxu1  ;;  %977 = vadd.xlane.f32.xlu1 %v976_v60  ;;  %v5432_v60 = vadd.f32 %v5317_v24, %v672_v51  ;;  %v979_v51 = vsel %vm802_vm1, %v937_v17, 0.0  ;;  %v590_v17 = vmul.f32 %v5299_v15, %v521_v47 }
 0x11a   :  { %v703_v20 = vpop.f32.mrb[33].mxu1 }
 0x11b   :  { %v704_v34 = vadd.f32 %v703_v20, %v583_v7  ;;  %v4450_v36 = vpop.f32.mrb[34].mxu1  ;;  %986 = vadd.xlane.f32.xlu0 %v985_v3  ;;  %v5440_v20 = vadd.f32 %v5317_v24, %v683_v59  ;;  %v675_v7 = vadd.f32 %v674_v43, %v576_v49  ;;  %v589_v3 = vmul.f32 %v5299_v15, %v516_v13 }
 0x11c   :  { %v715_v38 = vadd.f32 %v4450_v36, %v586_v22  ;;  %v706_v39 = vpop.f32.mrb[35].mxu1  ;;  %v581_v43 = vmul.f32 %v5299_v15, %v5326_v35  ;;  %v587_v59 = vmul.f32 %v5299_v15, %v506_v50  ;;  %v536_v36 = vpop.permute.xlu0 %535  ;;  %v940_v50 = vmul.f32 %v5432_v60, %v5432_v60 }
 0x11d   :  { %v5437_v11 = vadd.f32 %v5317_v24, %v704_v34  ;;  %v707_v1 = vadd.f32 %v706_v39, %v584_v32  ;;  %834 = vadd.xlane.f32.xlu1 %v833_v44  ;;  %v827_v34 = vsel %vm802_vm1, %v5432_v60, 0.0  ;;  %v942_v32 = vmul.f32 %v5416_v48, %v5416_v48 }
 0x11e   :  { %v5443_v10 = vadd.f32 %v5317_v24, %v715_v38  ;;  %v5459_v38 = vadd.f32 %v5317_v24, %v675_v7  ;;  %v836_v44 = vsel %vm802_vm1, %v5440_v20, 0.0  ;;  %v696_v47 = vadd.f32 %v5389_v56, %v581_v43 }
 0x11f   :  { %v5447_v22 = vadd.f32 %v5317_v24, %v707_v1  ;;  %980 = vadd.xlane.f32.xlu0 %v979_v51  ;;  %v588_v1 = vmul.f32 %v5299_v15, %v5387_v53  ;;  %v541_v51 = vpop.permute.xlu1 %540 }
 0x120   :  { %v830_v56 = vsel %vm802_vm1, %v5459_v38, 0.0  ;;  %v546_v43 = vpop.permute.xlu0 %545 }
 0x121   :  { %v4453_v49 = vpop.f32.mrb[36].mxu1  ;;  %828 = vadd.xlane.f32.xlu1 %v827_v34 }
 0x122   :  { %v728_v13 = vadd.f32 %v4453_v49, %v589_v3  ;;  %v719_v39 = vpop.f32.mrb[37].mxu1  ;;  %v994_v49 = vsel %vm802_vm1, %v942_v32, 0.0  ;;  %v582_v32 = vmul.f32 %v5299_v15, %v5335_v41 }
 0x123   :  { %v720_v35 = vadd.f32 %v719_v39, %v587_v59  ;;  %v4454_v19 = vpop.f32.mrb[38].mxu1  ;;  %837 = vadd.xlane.f32.xlu0 %v836_v44  ;;  %v579_v59 = vmul.f32 %v5299_v15, %v5312_v23  ;;  %v5491_v23 = vadd.f32 %v5317_v24, %v696_v47  ;;  %v941_v47 = vmul.f32 %v5459_v38, %v5459_v38 }
 0x124   :  { %v5469_v7 = vadd.f32 %v5317_v24, %v728_v13  ;;  %v731_v3 = vadd.f32 %v4454_v19, %v590_v17  ;;  %v722_v34 = vpop.f32.mrb[39].mxu1  ;;  %v943_v19 = vmul.f32 %v5440_v20, %v5440_v20  ;;  %v593_v13 = vmul.f32 %v5299_v15, %v536_v36 }
 0x125   :  { %v5473_v18 = vadd.f32 %v5317_v24, %v720_v35  ;;  %v723_v53 = vadd.f32 %v722_v34, %v588_v1  ;;  %995 = vadd.xlane.f32.xlu1 %v994_v49  ;;  %v688_v44 = vadd.f32 %v5396_v21, %v579_v59  ;;  %v988_v1 = vsel %vm802_vm1, %v940_v50, 0.0  ;;  %v551_v34 = vpop.permute.xlu1 %550 }
 0x126   :  { %v5478_v39 = vadd.f32 %v5317_v24, %v731_v3  ;;  %v594_v35 = vmul.f32 %v5299_v15, %v541_v51  ;;  %v591_v3 = vmul.f32 %v5299_v15, %v526_v28  ;;  %v699_v49 = vadd.f32 %v5400_v25, %v582_v32 }
 0x127   :  { %v5487_v17 = vadd.f32 %v5317_v24, %v723_v53  ;;  %831 = vadd.xlane.f32.xlu0 %v830_v56  ;;  %v997_v36 = vsel %vm802_vm1, %v943_v19, 0.0  ;;  %v580_v21 = vmul.f32 %v5299_v15, %v5320_v26  ;;  %v592_v50 = vmul.f32 %v5299_v15, %v531_v31 }
 0x128   :  { %v5505_v28 = vadd.f32 %v5317_v24, %v688_v44  ;;  %v845_v19 = vsel %vm802_vm1, %v5491_v23, 0.0  ;;  %v5516_v31 = vadd.f32 %v5317_v24, %v699_v49  ;;  %v946_v49 = vmul.f32 %v5491_v23, %v5491_v23 }
 0x129   :  { %v4457_v41 = vpop.f32.mrb[40].mxu1  ;;  %989 = vadd.xlane.f32.xlu1 %v988_v1  ;;  %v556_v1 = vpop.permute.xlu0 %555  ;;  %v691_v44 = vadd.f32 %v5402_v29, %v580_v21  ;;  %v585_v29 = vmul.f32 %v5299_v15, %v5367_v30  ;;  %v595_v21 = vmul.f32 %v5299_v15, %v546_v43 }
 0x12a   :  { %v744_v53 = vadd.f32 %v4457_v41, %v593_v13  ;;  %v735_v56 = vpop.f32.mrb[41].mxu1  ;;  %v944_v30 = vmul.f32 %v5505_v28, %v5505_v28 }
 0x12b   :  { %v736_v51 = vadd.f32 %v735_v56, %v591_v3  ;;  %v4458_v59 = vpop.f32.mrb[42].mxu1  ;;  %998 = vadd.xlane.f32.xlu0 %v997_v36  ;;  %v597_v36 = vmul.f32 %v5299_v15, %v556_v1  ;;  %v596_v1 = vmul.f32 %v5299_v15, %v551_v34  ;;  %v712_v43 = vadd.f32 %v5421_v2, %v585_v29 }
 0x12c   :  { %v5508_v25 = vadd.f32 %v5317_v24, %v744_v53  ;;  %v747_v32 = vadd.f32 %v4458_v59, %v594_v35  ;;  %v738_v13 = vpop.f32.mrb[43].mxu1  ;;  %v991_v35 = vsel %vm802_vm1, %v941_v47, 0.0  ;;  %v561_v53 = vpop.permute.xlu1 %560  ;;  %v5536_v59 = vadd.f32 %v5317_v24, %v691_v44 }
 0x12d   :  { %v5513_v41 = vadd.f32 %v5317_v24, %v736_v51  ;;  %v739_v26 = vadd.f32 %v738_v13, %v592_v50  ;;  %846 = vadd.xlane.f32.xlu1 %v845_v19  ;;  %v839_v50 = vsel %vm802_vm1, %v5505_v28, 0.0  ;;  %v598_v47 = vmul.f32 %v5299_v15, %v561_v53 }
 0x12e   :  { %v5520_v3 = vadd.f32 %v5317_v24, %v747_v32  ;;  %v848_v19 = vsel %vm802_vm1, %v5516_v31, 0.0  ;;  %v842_v34 = vsel %vm802_vm1, %v5536_v59, 0.0  ;;  %v947_v2 = vmul.f32 %v5516_v31, %v5516_v31 }
 0x12f   :  { %v5524_v56 = vadd.f32 %v5317_v24, %v739_v26  ;;  %992 = vadd.xlane.f32.xlu0 %v991_v35 }
 0x131   :  { %8074 = vst [vmem:[#allocation19_spill] sm:$0xff] %v5524_v56  ;;  %v4461_v51 = vpop.f32.mrb[44].mxu1  ;;  %840 = vadd.xlane.f32.xlu1 %v839_v50 }
 0x132   :  { %v760_v32 = vadd.f32 %v4461_v51, %v597_v36  ;;  %v751_v13 = vpop.f32.mrb[45].mxu1  ;;  %v1006_v36 = vsel %vm802_vm1, %v946_v49, 0.0  ;;  %v5562_v49 = vadd.f32 %v5317_v24, %v712_v43  ;;  %v948_v43 = vmul.f32 %v5437_v11, %v5437_v11 }
 0x133   :  { %v752_v26 = vadd.f32 %v751_v13, %v595_v21  ;;  %v4462_v35 = vpop.f32.mrb[46].mxu1  ;;  %849 = vadd.xlane.f32.xlu0 %v848_v19  ;;  %v1000_v21 = vsel %vm802_vm1, %v944_v30, 0.0  ;;  %v851_v19 = vsel %vm802_vm1, %v5437_v11, 0.0 }
 0x134   :  { %v5545_v53 = vadd.f32 %v5317_v24, %v760_v32  ;;  %v763_v44 = vadd.f32 %v4462_v35, %v598_v47  ;;  %v754_v50 = vpop.f32.mrb[47].mxu1  ;;  %v1009_v47 = vsel %vm802_vm1, %v947_v2, 0.0  ;;  %v945_v32 = vmul.f32 %v5536_v59, %v5536_v59  ;;  %v4607_v35 = vld [vmem:[%s8036_s2 + $0x18] sm:$0xff]  }
 0x135   :  { %v5549_v51 = vadd.f32 %v5317_v24, %v752_v26  ;;  %v755_v16 = vadd.f32 %v754_v50, %v596_v1  ;;  %1007 = vadd.xlane.f32.xlu1 %v1006_v36  ;;  %v857_v13 = vsel %vm802_vm1, %v5562_v49, 0.0  ;;  %v950_v1 = vmul.f32 %v5562_v49, %v5562_v49  ;;  %v4608_v36 = vld [vmem:[%s8036_s2 + $0x20] sm:$0xff]  }
 0x136   :  { %8075 = vst [vmem:[#allocation20_spill] sm:$0xff] %v5545_v53  ;;  %v5552_v15 = vadd.f32 %v5317_v24, %v763_v44  ;;  %v860_v26 = vsel %vm802_vm1, %v5443_v10, 0.0  ;;  %v854_v44 = vsel %vm802_vm1, %v5447_v22, 0.0  ;;  %v951_v50 = vmul.f32 %v5443_v10, %v5443_v10 }
 0x137   :  { %8076 = vst [vmem:[#allocation21_spill] sm:$0xff] %v5549_v51  ;;  %v5559_v29 = vadd.f32 %v5317_v24, %v755_v16  ;;  %843 = vadd.xlane.f32.xlu0 %v842_v34  ;;  %v1003_v16 = vsel %vm802_vm1, %v945_v32, 0.0  ;;  %v4606_v24 = vld [vmem:[%s8036_s2 + $0x10] sm:$0xff]   ;;  %v1018_v30 = vsel %vm802_vm1, %v950_v1, 0.0  ;;  %v1012_v34 = vsel %vm802_vm1, %v948_v43, 0.0 }
 0x138   :  { %8077 = vst [vmem:[#allocation22_spill] sm:$0xff] %v5552_v15  ;;  %4463 = vmatprep.subr.bf16.mxu0 %v4606_v24  ;;  %v1021_v2 = vsel %vm802_vm1, %v951_v50, 0.0  ;;  %v869_v32 = vsel %vm802_vm1, %v5469_v7, 0.0  ;;  %v953_v50 = vmul.f32 %v5487_v17, %v5487_v17 }
 0x139   :  { %8078 = vst [vmem:[#allocation23_spill] sm:$0xff] %v5559_v29  ;;  %1001 = vadd.xlane.f32.xlu1 %v1000_v21  ;;  %4464 = vmatpush3.bf16.msra.mxu0 %v4606_v24  ;;  %v949_v21 = vmul.f32 %v5447_v22, %v5447_v22  ;;  %v954_v24 = vmul.f32 %v5469_v7, %v5469_v7 }
 0x13a   :  { %4465 = vmatprep.subr.bf16.mxu0 %v4607_v35 }
 0x13b   :  { %1010 = vadd.xlane.f32.xlu0 %v1009_v47  ;;  %v4609_v47 = vld [vmem:[%s8036_s2 + $0x28] sm:$0xff]   ;;  %v1030_v1 = vsel %vm802_vm1, %v954_v24, 0.0  ;;  %v959_v24 = vmul.f32 %v5520_v3, %v5520_v3 }
 0x13d   :  { %858 = vadd.xlane.f32.xlu1 %v857_v13  ;;  %4466 = vmatpush3.bf16.msra.mxu0 %v4607_v35  ;;  %v1015_v13 = vsel %vm802_vm1, %v949_v21, 0.0  ;;  %v866_v35 = vsel %vm802_vm1, %v5487_v17, 0.0  ;;  %v958_v21 = vmul.f32 %v5508_v25, %v5508_v25 }
 0x13e   :  { %4467 = vmatprep.subr.bf16.mxu0 %v4608_v36 }
 0x13f   :  { %1004 = vadd.xlane.f32.xlu0 %v1003_v16  ;;  %v863_v16 = vsel %vm802_vm1, %v5473_v18, 0.0 }
 0x141   :  { %852 = vadd.xlane.f32.xlu1 %v851_v19  ;;  %4468 = vmatpush3.bf16.msra.mxu0 %v4608_v36  ;;  %v872_v19 = vsel %vm802_vm1, %v5478_v39, 0.0  ;;  %v881_v36 = vsel %vm802_vm1, %v5508_v25, 0.0 }
 0x142   :  { %4469 = vmatprep.subr.bf16.mxu0 %v4609_v47 }
 0x143   :  { %861 = vadd.xlane.f32.xlu0 %v860_v26  ;;  %v952_v26 = vmul.f32 %v5473_v18, %v5473_v18 }
 0x145   :  { %1019 = vadd.xlane.f32.xlu1 %v1018_v30  ;;  %4470 = vmatpush3.bf16.msra.mxu0 %v4609_v47  ;;  %v955_v30 = vmul.f32 %v5478_v39, %v5478_v39  ;;  %v1024_v43 = vsel %vm802_vm1, %v952_v26, 0.0  ;;  %v884_v47 = vsel %vm802_vm1, %v5520_v3, 0.0  ;;  %v957_v26 = vmul.f32 %v5524_v56, %v5524_v56 }
 0x147   :  { %855 = vadd.xlane.f32.xlu0 %v854_v44  ;;  %v1033_v44 = vsel %vm802_vm1, %v955_v30, 0.0  ;;  %v1039_v30 = vsel %vm802_vm1, %v957_v26, 0.0 }
 0x149   :  { %1013 = vadd.xlane.f32.xlu1 %v1012_v34  ;;  %v1027_v34 = vsel %vm802_vm1, %v953_v50, 0.0  ;;  %v896_v50 = vsel %vm802_vm1, %v5552_v15, 0.0 }
 0x14b   :  { %1022 = vadd.xlane.f32.xlu0 %v1021_v2  ;;  %v875_v2 = vsel %vm802_vm1, %v5513_v41, 0.0 }
 0x14d   :  { %870 = vadd.xlane.f32.xlu1 %v869_v32  ;;  %v1042_v32 = vsel %vm802_vm1, %v958_v21, 0.0  ;;  %v961_v21 = vmul.f32 %v5559_v29, %v5559_v29 }
 0x14f   :  { %1016 = vadd.xlane.f32.xlu0 %v1015_v13  ;;  %v956_v13 = vmul.f32 %v5513_v41, %v5513_v41 }
 0x151   :  { %864 = vadd.xlane.f32.xlu1 %v863_v16  ;;  %v878_v16 = vsel %vm802_vm1, %v5524_v56, 0.0 }
 0x153   :  { %873 = vadd.xlane.f32.xlu0 %v872_v19  ;;  %v1036_v19 = vsel %vm802_vm1, %v956_v13, 0.0  ;;  %v963_v13 = vmul.f32 %v5552_v15, %v5552_v15 }
 0x155   :  { %1031 = vadd.xlane.f32.xlu1 %v1030_v1  ;;  %v1045_v1 = vsel %vm802_vm1, %v959_v24, 0.0 }
 0x157   :  { %867 = vadd.xlane.f32.xlu0 %v866_v35  ;;  %v893_v35 = vsel %vm802_vm1, %v5545_v53, 0.0 }
 0x159   :  { %1025 = vadd.xlane.f32.xlu1 %v1024_v43  ;;  %v887_v43 = vsel %vm802_vm1, %v5549_v51, 0.0 }
 0x15b   :  { %1034 = vadd.xlane.f32.xlu0 %v1033_v44  ;;  %v960_v44 = vmul.f32 %v5549_v51, %v5549_v51 }
 0x15d   :  { %882 = vadd.xlane.f32.xlu1 %v881_v36  ;;  %v1048_v36 = vsel %vm802_vm1, %v960_v44, 0.0 }
 0x15f   :  { %1028 = vadd.xlane.f32.xlu0 %v1027_v34  ;;  %v962_v34 = vmul.f32 %v5545_v53, %v5545_v53 }
 0x161   :  { %876 = vadd.xlane.f32.xlu1 %v875_v2  ;;  %v890_v2 = vsel %vm802_vm1, %v5559_v29, 0.0 }
 0x163   :  { %885 = vadd.xlane.f32.xlu0 %v884_v47  ;;  %v1054_v47 = vsel %vm802_vm1, %v962_v34, 0.0 }
 0x165   :  { %1043 = vadd.xlane.f32.xlu1 %v1042_v32  ;;  %v1051_v32 = vsel %vm802_vm1, %v961_v21, 0.0 }
 0x167   :  { %879 = vadd.xlane.f32.xlu0 %v878_v16  ;;  %v1057_v16 = vsel %vm802_vm1, %v963_v13, 0.0 }
 0x169   :  { %1037 = vadd.xlane.f32.xlu1 %v1036_v19 }
 0x16b   :  { %1046 = vadd.xlane.f32.xlu0 %v1045_v1 }
 0x16d   :  { %894 = vadd.xlane.f32.xlu1 %v893_v35 }
 0x16f   :  { %1040 = vadd.xlane.f32.xlu0 %v1039_v30 }
 0x171   :  { %888 = vadd.xlane.f32.xlu1 %v887_v43 }
 0x173   :  { %897 = vadd.xlane.f32.xlu0 %v896_v50 }
 0x175   :  { %1049 = vadd.xlane.f32.xlu1 %v1048_v36 }
 0x177   :  { %891 = vadd.xlane.f32.xlu0 %v890_v2 }
 0x179   :  { %1055 = vadd.xlane.f32.xlu1 %v1054_v47 }
 0x17b   :  { %1052 = vadd.xlane.f32.xlu0 %v1051_v32 }
 0x17f   :  { %1058 = vadd.xlane.f32.xlu0 %v1057_v16 }
 0x18c   :  { %v811_v24 = vpop.xlane.xlu0 %810 }
 0x18d   :  { %v902_v19 = vmul.f32 0.015625, %v811_v24  ;;  %v8044_v24 = vsub.s32 2, %v5274_v5 }
 0x18e   :  { %v972_v1 = vpop.xlane.xlu1 %971 }
 0x18f   :  { %v1094_v26 = vmul.f32 %v902_v19, %v902_v19  ;;  %v1062_v35 = vmul.f32 0.015625, %v972_v1 }
 0x190   :  { %v805_v30 = vpop.xlane.xlu0 %804 }
 0x191   :  { %v1126_v43 = vsub.f32 %v1062_v35, %v1094_v26  ;;  %v900_v36 = vmul.f32 0.015625, %v805_v30  ;;  %v1322_v35 = vsub.s32 3, %v5274_v5 }
 0x192   :  { %v808_v44 = vpop.xlane.xlu1 %807 }
 0x193   :  { %v1190_v50 = vadd.f32 1e-05, %v1126_v43  ;;  %v1092_v47 = vmul.f32 %v900_v36, %v900_v36  ;;  %v5662_v8 = vmul.f32 0.015625, %v808_v44 }
 0x194   :  { %v814_v34 = vpop.xlane.xlu0 %813 }
 0x195   :  { %4618 = vrsqrt.f32 %v1190_v50  ;;  %v903_v2 = vmul.f32 0.015625, %v814_v34  ;;  %v1158_v50 = vsub.f32 %v5324_v33, %v902_v19  ;;  %v5669_v34 = vrot.slane %v5290_v12, %v8044_v24 }
 0x196   :  { %v966_v21 = vpop.xlane.xlu1 %965 }
 0x197   :  { %v1060_v14 = vmul.f32 0.015625, %v966_v21  ;;  %v1095_v9 = vmul.f32 %v903_v2, %v903_v2 }
 0x198   :  { %v975_v32 = vpop.xlane.xlu0 %974 }
 0x199   :  { %v1124_v13 = vsub.f32 %v1060_v14, %v1092_v47  ;;  %v1063_v16 = vmul.f32 0.015625, %v975_v32  ;;  %v1093_v14 = vmul.f32 %v5662_v8, %v5662_v8  ;;  %v5676_v32 = vrot.slane %v5290_v12, %v1322_v35 }
 0x19a   :  { %v823_v1 = vpop.xlane.xlu1 %822 }
 0x19b   :  { %v1188_v6 = vadd.f32 1e-05, %v1124_v13  ;;  %v1127_v26 = vsub.f32 %v1063_v16, %v1095_v9  ;;  %v5673_v9 = vmul.f32 0.015625, %v823_v1 }
 0x19c   :  { %v969_v30 = vpop.xlane.xlu0 %968 }
 0x19d   :  { %4620 = vrsqrt.f32 %v1188_v6  ;;  %v1191_v43 = vadd.f32 1e-05, %v1127_v26  ;;  %v1061_v44 = vmul.f32 0.015625, %v969_v30  ;;  %v1098_v24 = vmul.f32 %v5673_v9, %v5673_v9 }
 0x19e   :  { %v817_v21 = vpop.xlane.xlu1 %816 }
 0x19f   :  { %v4619_v47 = vpop.eup %4618  ;;  %4622 = vrsqrt.f32 %v1191_v43  ;;  %v1125_v13 = vsub.f32 %v1061_v44, %v1093_v14  ;;  %v5681_v4 = vmul.f32 0.015625, %v817_v21  ;;  %v1156_v14 = vsub.f32 %v5329_v37, %v900_v36 }
 0x1a0   :  { %v1254_v6 = vmul.f32 %v4619_v47, %v1158_v50  ;;  %v826_v33 = vpop.xlane.xlu0 %825 }
 0x1a1   :  { %v1189_v16 = vadd.f32 1e-05, %v1125_v13  ;;  %v5686_v12 = vmul.f32 0.015625, %v826_v33  ;;  %v1096_v21 = vmul.f32 %v5681_v4, %v5681_v4 }
 0x1a2   :  { %v1290_v19 = vmul.f32 %v5669_v34, %v1254_v6  ;;  %v984_v26 = vpop.xlane.xlu1 %983 }
 0x1a3   :  { %v1066_v30 = vmul.f32 0.015625, %v984_v26  ;;  %4624 = vrsqrt.f32 %v1189_v16 }
 0x1a4   :  { %v5684_v43 = vadd.f32 %v5676_v32, %v1290_v19  ;;  %v820_v1 = vpop.xlane.xlu0 %819  ;;  %v1159_v19 = vsub.f32 %v5343_v46, %v903_v2 }
 0x1a5   :  { %v1130_v35 = vsub.f32 %v1066_v30, %v1098_v24  ;;  %v1099_v24 = vmul.f32 %v5686_v12, %v5686_v12  ;;  %v5698_v62 = vmul.f32 0.015625, %v820_v1 }
 0x1a6   :  { %v1390_v50 = vmul.f32 %v5684_v43, %v5684_v43  ;;  %v978_v44 = vpop.xlane.xlu1 %977 }
 0x1a7   :  { %v4621_v47 = vpop.eup %4620  ;;  %v1194_v6 = vadd.f32 1e-05, %v1130_v35  ;;  %v1064_v13 = vmul.f32 0.015625, %v978_v44 }
 0x1a8   :  { %v1252_v26 = vmul.f32 %v4621_v47, %v1156_v14  ;;  %v987_v16 = vpop.xlane.xlu0 %986  ;;  %v1422_v33 = vmul.f32 %v1390_v50, %v5684_v43 }
 0x1a9   :  { %v4623_v0 = vpop.eup %4622  ;;  %4626 = vrsqrt.f32 %v1194_v6  ;;  %v1128_v30 = vsub.f32 %v1064_v13, %v1096_v21  ;;  %v1067_v37 = vmul.f32 0.015625, %v987_v16  ;;  %v1157_v21 = vsub.f32 %v5338_v42, %v5662_v8 }
 0x1aa   :  { %v1288_v36 = vmul.f32 %v5669_v34, %v1252_v26  ;;  %v1255_v63 = vmul.f32 %v4623_v0, %v1159_v19  ;;  %v835_v35 = vpop.xlane.xlu1 %834  ;;  %v1454_v44 = vmul.f32 0.044715, %v1422_v33  ;;  %v1097_v19 = vmul.f32 %v5698_v62, %v5698_v62 }
 0x1ab   :  { %v1192_v61 = vadd.f32 1e-05, %v1128_v30  ;;  %v1131_v46 = vsub.f32 %v1067_v37, %v1099_v24  ;;  %v5705_v13 = vmul.f32 0.015625, %v835_v35  ;;  %v1160_v35 = vsub.f32 %v5375_v40, %v5681_v4 }
 0x1ac   :  { %v1291_v2 = vmul.f32 %v5669_v34, %v1255_v63  ;;  %v981_v14 = vpop.xlane.xlu0 %980  ;;  %v1324_v50 = vadd.f32 %v5676_v32, %v1288_v36  ;;  %v1486_v47 = vadd.f32 %v1454_v44, %v5684_v43  ;;  %v1163_v44 = vsub.f32 %v5380_v45, %v5686_v12 }
 0x1ad   :  { %4628 = vrsqrt.f32 %v1192_v61  ;;  %v1195_v6 = vadd.f32 1e-05, %v1131_v46  ;;  %v4625_v0 = vpop.eup %4624  ;;  %v1065_v63 = vmul.f32 0.015625, %v981_v14  ;;  %v1162_v61 = vsub.f32 %v5364_v27, %v5673_v9 }
 0x1ae   :  { %v5708_v1 = vadd.f32 %v5676_v32, %v1291_v2  ;;  %v829_v26 = vpop.xlane.xlu1 %828  ;;  %v1388_v16 = vmul.f32 %v1324_v50, %v1324_v50  ;;  %v1253_v33 = vmul.f32 %v4625_v0, %v1157_v21  ;;  %v1518_v24 = vmul.f32 0.7978846, %v1486_v47 }
 0x1af   :  { %4630 = vrsqrt.f32 %v1195_v6  ;;  %v1129_v42 = vsub.f32 %v1065_v63, %v1097_v19  ;;  %v1102_v46 = vmul.f32 %v5705_v13, %v5705_v13  ;;  %v5723_v14 = vmul.f32 0.015625, %v829_v26 }
 0x1b0   :  { %v1391_v8 = vmul.f32 %v5708_v1, %v5708_v1  ;;  %v838_v30 = vpop.xlane.xlu0 %837  ;;  %v1420_v37 = vmul.f32 %v1388_v16, %v1324_v50  ;;  %v1289_v36 = vmul.f32 %v5669_v34, %v1253_v33  ;;  %4632 = vtanh.f32 %v1518_v24 }
 0x1b1   :  { %v1193_v2 = vadd.f32 1e-05, %v1129_v42  ;;  %v5726_v6 = vmul.f32 0.015625, %v838_v30  ;;  %v1161_v63 = vsub.f32 %v5394_v52, %v5698_v62  ;;  %v5732_v33 = vmul.f32 0.5, %v5684_v43 }
 0x1b2   :  { %v996_v47 = vpop.xlane.xlu1 %995  ;;  %v1452_v21 = vmul.f32 0.044715, %v1420_v37  ;;  %v1423_v27 = vmul.f32 %v1391_v8, %v5708_v1  ;;  %v1325_v19 = vadd.f32 %v5676_v32, %v1289_v36  ;;  %v5736_v30 = vmul.f32 0.5, %v1324_v50 }
 0x1b3   :  { %v4627_v9 = vpop.eup %4626  ;;  %v1070_v0 = vmul.f32 0.015625, %v996_v47  ;;  %4634 = vrsqrt.f32 %v1193_v2  ;;  %v1100_v36 = vmul.f32 %v5723_v14, %v5723_v14  ;;  %v1103_v62 = vmul.f32 %v5726_v6, %v5726_v6 }
 0x1b4   :  { %v1258_v4 = vmul.f32 %v4627_v9, %v1162_v61  ;;  %v832_v40 = vpop.xlane.xlu0 %831  ;;  %v1484_v45 = vadd.f32 %v1452_v21, %v1324_v50  ;;  %v1455_v12 = vmul.f32 0.044715, %v1423_v27  ;;  %v1389_v16 = vmul.f32 %v1325_v19, %v1325_v19 }
 0x1b5   :  { %v1134_v26 = vsub.f32 %v1070_v0, %v1102_v46  ;;  %v5744_v9 = vmul.f32 0.015625, %v832_v40  ;;  %v8079_v55 = vsub.f32 %v5416_v48, %v5705_v13  ;;  %v8080_v15 = vsub.f32 %v5432_v60, %v5723_v14 }
 0x1b6   :  { %v990_v42 = vpop.xlane.xlu1 %989  ;;  %v1516_v24 = vmul.f32 0.7978846, %v1484_v45  ;;  %v1487_v61 = vadd.f32 %v1455_v12, %v5708_v1  ;;  %v1294_v43 = vmul.f32 %v5669_v34, %v1258_v4  ;;  %v1421_v21 = vmul.f32 %v1389_v16, %v1325_v19 }
 0x1b7   :  { %v4629_v37 = vpop.eup %4628  ;;  %v1198_v52 = vadd.f32 1e-05, %v1134_v26  ;;  %v1068_v46 = vmul.f32 0.015625, %v990_v42  ;;  %v5750_v16 = vmul.f32 0.5, %v5708_v1  ;;  %v1101_v1 = vmul.f32 %v5744_v9, %v5744_v9 }
 0x1b8   :  { %v1256_v2 = vmul.f32 %v4629_v37, %v1160_v35  ;;  %v999_v47 = vpop.xlane.xlu0 %998  ;;  %v1519_v27 = vmul.f32 0.7978846, %v1487_v61  ;;  %4636 = vtanh.f32 %v1516_v24  ;;  %v1453_v57 = vmul.f32 0.044715, %v1421_v21 }
 0x1b9   :  { %v4631_v50 = vpop.eup %4630  ;;  %v1132_v0 = vsub.f32 %v1068_v46, %v1100_v36  ;;  %v1071_v45 = vmul.f32 0.015625, %v999_v47  ;;  %4638 = vrsqrt.f32 %v1198_v52  ;;  %v5754_v24 = vadd.f32 %v5676_v32, %v1294_v43 }
 0x1ba   :  { %v1292_v12 = vmul.f32 %v5669_v34, %v1256_v2  ;;  %v1259_v8 = vmul.f32 %v4631_v50, %v1163_v44  ;;  %v847_v58 = vpop.xlane.xlu1 %846  ;;  %v1485_v40 = vadd.f32 %v1453_v57, %v1325_v19  ;;  %4640 = vtanh.f32 %v1519_v27  ;;  %v4633_v44 = vpop.eup %4632 }
 0x1bb   :  { %v1196_v4 = vadd.f32 1e-05, %v1132_v0  ;;  %v1135_v35 = vsub.f32 %v1071_v45, %v1103_v62  ;;  %v5759_v52 = vmul.f32 0.5, %v1325_v19  ;;  %v5763_v57 = vmul.f32 0.015625, %v847_v58 }
 0x1bc   :  { %v993_v42 = vpop.xlane.xlu0 %992  ;;  %v1328_v61 = vadd.f32 %v5676_v32, %v1292_v12  ;;  %v1295_v37 = vmul.f32 %v5669_v34, %v1259_v8  ;;  %v1517_v47 = vmul.f32 0.7978846, %v1485_v40  ;;  %v1582_v19 = vadd.f32 1.0, %v4633_v44 }
 0x1bd   :  { %4642 = vrsqrt.f32 %v1196_v4  ;;  %v4635_v62 = vpop.eup %4634  ;;  %v1069_v46 = vmul.f32 0.015625, %v993_v42  ;;  %v1199_v8 = vadd.f32 1e-05, %v1135_v35  ;;  %v5768_v45 = vmul.f32 0.5, %v5754_v24 }
 0x1be   :  { %v841_v2 = vpop.xlane.xlu1 %840  ;;  %v1257_v43 = vmul.f32 %v4635_v62, %v1161_v63  ;;  %v1392_v27 = vmul.f32 %v1328_v61, %v1328_v61  ;;  %4644 = vtanh.f32 %v1517_v47  ;;  %v5774_v4 = vadd.f32 %v5676_v32, %v1295_v37 }
 0x1bf   :  { %v1133_v50 = vsub.f32 %v1069_v46, %v1101_v1  ;;  %v5771_v58 = vmul.f32 0.015625, %v841_v2  ;;  %v1394_v63 = vmul.f32 %v5754_v24, %v5754_v24  ;;  %v1106_v35 = vmul.f32 %v5763_v57, %v5763_v57 }
 0x1c0   :  { %v850_v0 = vpop.xlane.xlu0 %849  ;;  %v1293_v12 = vmul.f32 %v5669_v34, %v1257_v43  ;;  %v1424_v62 = vmul.f32 %v1392_v27, %v1328_v61  ;;  %4646 = vrsqrt.f32 %v1199_v8  ;;  %v5784_v47 = vmul.f32 0.5, %v1328_v61 }
 0x1c1   :  { %v1197_v40 = vadd.f32 1e-05, %v1133_v50  ;;  %v5782_v46 = vmul.f32 0.015625, %v850_v0  ;;  %v5787_v36 = vmul.f32 %v1582_v19, %v5732_v33  ;;  %v1104_v27 = vmul.f32 %v5771_v58, %v5771_v58 }
 0x1c2   :  { %v1008_v44 = vpop.xlane.xlu1 %1007  ;;  %v4637_v1 = vpop.eup %4636  ;;  %v5790_v21 = vadd.f32 %v5676_v32, %v1293_v12  ;;  %v1456_v42 = vmul.f32 0.044715, %v1424_v62  ;;  %v5797_v0 = vmul.f32 0.5, %v5774_v4  ;;  %v1395_v12 = vmul.f32 %v5774_v4, %v5774_v4 }
 0x1c3   :  { %v1074_v2 = vmul.f32 0.015625, %v1008_v44  ;;  %v4639_v37 = vpop.eup %4638  ;;  %4648 = vrsqrt.f32 %v1197_v40  ;;  %v1580_v26 = vadd.f32 1.0, %v4637_v1 }
 0x1c4   :  { %v844_v43 = vpop.xlane.xlu0 %843  ;;  %v4641_v44 = vpop.eup %4640  ;;  %v1393_v33 = vmul.f32 %v5790_v21, %v5790_v21  ;;  %v1488_v19 = vadd.f32 %v1456_v42, %v1328_v61  ;;  %v1262_v54 = vmul.f32 %v4639_v37, %v8079_v55  ;;  %v1427_v14 = vmul.f32 %v1395_v12, %v5774_v4 }
 0x1c5   :  { %v1138_v50 = vsub.f32 %v1074_v2, %v1106_v35  ;;  %v1107_v35 = vmul.f32 %v5782_v46, %v5782_v46  ;;  %v5810_v5 = vmul.f32 0.015625, %v844_v43  ;;  %v1583_v13 = vadd.f32 1.0, %v4641_v44 }
 0x1c6   :  { %v1002_v40 = vpop.xlane.xlu1 %1001  ;;  %v1425_v61 = vmul.f32 %v1393_v33, %v5790_v21  ;;  %v1520_v42 = vmul.f32 0.7978846, %v1488_v19  ;;  %v1426_v43 = vmul.f32 %v1394_v63, %v5754_v24  ;;  %v5819_v1 = vmul.f32 %v5669_v34, %v1262_v54 }
 0x1c7   :  { %v4643_v62 = vpop.eup %4642  ;;  %v1202_v2 = vadd.f32 1e-05, %v1138_v50  ;;  %v1072_v8 = vmul.f32 0.015625, %v1002_v40  ;;  %v1612_v40 = vmul.f32 %v1580_v26, %v5736_v30  ;;  %v1105_v60 = vmul.f32 %v5810_v5, %v5810_v5 }
 0x1c8   :  { %v1011_v29 = vpop.xlane.xlu0 %1010  ;;  %v1260_v51 = vmul.f32 %v4643_v62, %v8080_v15  ;;  %v4645_v37 = vpop.eup %4644  ;;  %v1457_v53 = vmul.f32 0.044715, %v1425_v61  ;;  %v1615_v63 = vmul.f32 %v1583_v13, %v5750_v16  ;;  %v1458_v61 = vmul.f32 0.044715, %v1426_v43 }
 0x1c9   :  { %v1136_v48 = vsub.f32 %v1072_v8, %v1104_v27  ;;  %v1075_v55 = vmul.f32 0.015625, %v1011_v29  ;;  %4650 = vrsqrt.f32 %v1202_v2  ;;  %v1581_v56 = vadd.f32 1.0, %v4645_v37  ;;  %v5825_v27 = vpop.f32.mrb[0].mxu0 }
 0x1ca   :  { %v859_v50 = vpop.xlane.xlu1 %858  ;;  %v1489_v29 = vadd.f32 %v1457_v53, %v5790_v21  ;;  %4652 = vtanh.f32 %v1520_v42  ;;  %8081 = vst [vmem:[#allocation24_spill] sm:$0xff] %v5825_v27  ;;  %v4647_v30 = vpop.eup %4646  ;;  %v1296_v26 = vmul.f32 %v5669_v34, %v1260_v51  ;;  %v8084_v12 = vsub.f32 %v5459_v38, %v5744_v9 }
 0x1cb   :  { %v1200_v33 = vadd.f32 1e-05, %v1136_v48  ;;  %v1139_v19 = vsub.f32 %v1075_v55, %v1107_v35  ;;  %v5829_v8 = vpop.f32.mrb[1].mxu0  ;;  %v1613_v2 = vmul.f32 %v1581_v56, %v5759_v52  ;;  %v5837_v51 = vmul.f32 0.015625, %v859_v50 }
 0x1cc   :  { %v1005_v15 = vpop.xlane.xlu0 %1004  ;;  %8082 = vst [vmem:[#allocation25_spill] sm:$0xff] %v5829_v8  ;;  %v1521_v53 = vmul.f32 0.7978846, %v1489_v29  ;;  %v5832_v42 = vpop.f32.mrb[2].mxu0  ;;  %v1459_v55 = vmul.f32 0.044715, %v1427_v14  ;;  %v1490_v56 = vadd.f32 %v1458_v61, %v5754_v24  ;;  %v8087_v43 = vsub.f32 %v5440_v20, %v5726_v6 }
 0x1cd   :  { %4654 = vrsqrt.f32 %v1200_v33  ;;  %v1203_v54 = vadd.f32 1e-05, %v1139_v19  ;;  %v4649_v44 = vpop.eup %4648  ;;  %v1073_v62 = vmul.f32 0.015625, %v1005_v15  ;;  %8083 = vst [vmem:[#allocation26_spill] sm:$0xff] %v5832_v42  ;;  %v5839_v16 = vpop.f32.mrb[3].mxu0  ;;  %v1644_v37 = vpack.c.bf16 %v1613_v2, %v1612_v40 }
 0x1ce   :  { %v853_v35 = vpop.xlane.xlu1 %852  ;;  %v1261_v48 = vmul.f32 %v4649_v44, %v8084_v12  ;;  %8085 = vst [vmem:[#allocation27_spill] sm:$0xff] %v5839_v16  ;;  %v5842_v52 = vpop.f32.mrb[4].mxu0  ;;  %v1263_v19 = vmul.f32 %v4647_v30, %v8087_v43  ;;  %v1645_v50 = vpack.c.bf16 %v1615_v63, %v5787_v36  ;;  %v1491_v24 = vadd.f32 %v1459_v55, %v5774_v4 }
 0x1cf   :  { %4656 = vrsqrt.f32 %v1203_v54  ;;  %v1137_v13 = vsub.f32 %v1073_v62, %v1105_v60  ;;  %8086 = vst [vmem:[#allocation28_spill] sm:$0xff] %v5842_v52  ;;  %v5848_v9 = vmul.f32 0.015625, %v853_v35  ;;  %v5851_v15 = vpop.f32.mrb[5].mxu0  ;;  %4471 = vmatprep.mubr.msk.bf16.mxu0 %vm802_vm1, %v1644_v37  ;;  %v1522_v29 = vmul.f32 0.7978846, %v1490_v56 }
 0x1d0   :  { %v862_v33 = vpop.xlane.xlu0 %861  ;;  %4658 = vtanh.f32 %v1521_v53  ;;  %v1297_v38 = vmul.f32 %v5669_v34, %v1261_v48  ;;  %8088 = vst [vmem:[#allocation29_spill] sm:$0xff] %v5851_v15  ;;  %v1332_v14 = vadd.f32 %v5676_v32, %v1296_v26  ;;  %v5856_v54 = vpop.f32.mrb[6].mxu0  ;;  %v1110_v20 = vmul.f32 %v5837_v51, %v5837_v51  ;;  %4472 = vmatmul.mubr.msk.bf16.vlgmr.msra.gmra.mrb[16].mxu0 %vm802_vm1, %v1645_v50 }
 0x1d1   :  { %v1201_v60 = vadd.f32 1e-05, %v1137_v13  ;;  %8089 = vst [vmem:[#allocation30_spill] sm:$0xff] %v5856_v54  ;;  %v5862_v36 = vmul.f32 0.5, %v5790_v21  ;;  %v5867_v63 = vpop.f32.mrb[7].mxu0  ;;  %v5871_v44 = vmul.f32 0.015625, %v862_v33  ;;  %v5876_v53 = vmul.f32 %v5669_v34, %v1263_v19 }
 0x1d2   :  { %v1020_v40 = vpop.xlane.xlu1 %1019  ;;  %v5865_v30 = vadd.f32 %v5676_v32, %v1297_v38  ;;  %8090 = vst [vmem:[#allocation31_spill] sm:$0xff] %v5867_v63  ;;  %v1523_v35 = vmul.f32 0.7978846, %v1491_v24  ;;  %v5873_v2 = vpop.f32.mrb[8].mxu0  ;;  %v1108_v55 = vmul.f32 %v5848_v9, %v5848_v9  ;;  %v1396_v37 = vmul.f32 %v1332_v14, %v1332_v14 }
 0x1d3   :  { %v1078_v6 = vmul.f32 0.015625, %v1020_v40  ;;  %v4651_v4 = vpop.eup %4650  ;;  %4660 = vrsqrt.f32 %v1201_v60  ;;  %8091 = vst [vmem:[#allocation32_spill] sm:$0xff] %v5873_v2  ;;  %v5880_v12 = vpop.f32.mrb[9].mxu0  ;;  %v8094_v19 = vsub.f32 %v5491_v23, %v5763_v57  ;;  %v8100_v50 = vsub.f32 %v5505_v28, %v5771_v58 }
 0x1d4   :  { %v856_v62 = vpop.xlane.xlu0 %855  ;;  %4662 = vtanh.f32 %v1522_v29  ;;  %8092 = vst [vmem:[#allocation33_spill] sm:$0xff] %v5880_v12  ;;  %v4653_v48 = vpop.eup %4652  ;;  %v1397_v33 = vmul.f32 %v5865_v30, %v5865_v30  ;;  %v1111_v29 = vmul.f32 %v5871_v44, %v5871_v44 }
 0x1d5   :  { %v1142_v61 = vsub.f32 %v1078_v6, %v1110_v20  ;;  %4664 = vtanh.f32 %v1523_v35  ;;  %v5886_v56 = vpop.f32.mrb[10].mxu0  ;;  %v1266_v38 = vmul.f32 %v4651_v4, %v8094_v19  ;;  %v5897_v20 = vmul.f32 0.015625, %v856_v62 }
 0x1d6   :  { %v1014_v13 = vpop.xlane.xlu1 %1013  ;;  %8093 = vst [vmem:[#allocation34_spill] sm:$0xff] %v5886_v56  ;;  %v5893_v24 = vpop.f32.mrb[11].mxu0  ;;  %v1428_v35 = vmul.f32 %v1396_v37, %v1332_v14  ;;  %v1429_v21 = vmul.f32 %v1397_v33, %v5865_v30  ;;  %v1584_v19 = vadd.f32 1.0, %v4653_v48  ;;  %v5906_v62 = vmul.f32 0.5, %v1332_v14 }
 0x1d7   :  { %v4655_v43 = vpop.eup %4654  ;;  %v1206_v60 = vadd.f32 1e-05, %v1142_v61  ;;  %v1076_v40 = vmul.f32 0.015625, %v1014_v13  ;;  %8095 = vst [vmem:[#allocation35_spill] sm:$0xff] %v5893_v24  ;;  %v5900_v26 = vpop.f32.mrb[12].mxu0  ;;  %v5909_v37 = vmul.f32 0.5, %v5865_v30 }
 0x1d8   :  { %v1023_v6 = vpop.xlane.xlu0 %1022  ;;  %8096 = vst [vmem:[#allocation36_spill] sm:$0xff] %v5900_v26  ;;  %v5902_v61 = vpop.f32.mrb[13].mxu0  ;;  %v1460_v33 = vmul.f32 0.044715, %v1428_v35  ;;  %v1109_v26 = vmul.f32 %v5897_v20, %v5897_v20  ;;  %v1461_v2 = vmul.f32 0.044715, %v1429_v21 }
 0x1d9   :  { %v4657_v23 = vpop.eup %4656  ;;  %4666 = vrsqrt.f32 %v1206_v60  ;;  %v1140_v57 = vsub.f32 %v1076_v40, %v1108_v55  ;;  %v1079_v4 = vmul.f32 0.015625, %v1023_v6  ;;  %8097 = vst [vmem:[#allocation37_spill] sm:$0xff] %v5902_v61  ;;  %v5911_v56 = vpop.f32.mrb[14].mxu0  ;;  %v5914_v60 = vmul.f32 %v5669_v34, %v1266_v38 }
 0x1da   :  { %v4659_v13 = vpop.eup %4658  ;;  %v871_v24 = vpop.xlane.xlu1 %870  ;;  %8098 = vst [vmem:[#allocation38_spill] sm:$0xff] %v5911_v56  ;;  %v1264_v61 = vmul.f32 %v4655_v43, %v8100_v50  ;;  %v1492_v35 = vadd.f32 %v1460_v33, %v1332_v14  ;;  %v8101_v56 = vsub.f32 %v5516_v31, %v5782_v46  ;;  %v1493_v58 = vadd.f32 %v1461_v2, %v5865_v30 }
 0x1db   :  { %v1204_v55 = vadd.f32 1e-05, %v1140_v57  ;;  %v1143_v48 = vsub.f32 %v1079_v4, %v1111_v29  ;;  %v1585_v40 = vadd.f32 1.0, %v4659_v13  ;;  %v5916_v6 = vpop.f32.mrb[15].mxu0  ;;  %v1616_v29 = vmul.f32 %v1584_v19, %v5784_v47 }
 0x1dc   :  { %8099 = vst [vmem:[#allocation39_spill] sm:$0xff] %v5916_v6  ;;  %v1017_v12 = vpop.xlane.xlu0 %1016  ;;  %v1267_v38 = vmul.f32 %v4657_v23, %v8101_v56  ;;  %v1524_v43 = vmul.f32 0.7978846, %v1492_v35  ;;  %v1173_v14 = vsub.f32 %v5447_v22, %v5897_v20  ;;  %v5931_v21 = vmul.f32 0.015625, %v871_v24 }
 0x1dd   :  { %4668 = vrsqrt.f32 %v1204_v55  ;;  %v1207_v57 = vadd.f32 1e-05, %v1143_v48  ;;  %v4661_v4 = vpop.eup %4660  ;;  %v1077_v13 = vmul.f32 0.015625, %v1017_v12  ;;  %v1617_v28 = vmul.f32 %v1585_v40, %v5862_v36 }
 0x1de   :  { %v865_v6 = vpop.xlane.xlu1 %864  ;;  %v4663_v50 = vpop.eup %4662  ;;  %v5935_v31 = vadd.f32 %v5676_v32, %v5819_v1  ;;  %v1525_v36 = vmul.f32 0.7978846, %v1493_v58  ;;  %v1300_v30 = vmul.f32 %v5669_v34, %v1264_v61  ;;  %v5939_v2 = vmul.f32 %v5669_v34, %v1267_v38 }
 0x1df   :  { %4670 = vrsqrt.f32 %v1207_v57  ;;  %v4665_v46 = vpop.eup %4664  ;;  %v1141_v47 = vsub.f32 %v1077_v13, %v1109_v26  ;;  %v1646_v12 = vpack.c.bf16 %v1617_v28, %v1616_v29  ;;  %v1586_v23 = vadd.f32 1.0, %v4663_v50 }
 0x1e0   :  { %v874_v56 = vpop.xlane.xlu0 %873  ;;  %v8102_v19 = vsub.f32 %v5536_v59, %v5810_v5  ;;  %v1335_v33 = vadd.f32 %v5676_v32, %v5876_v53  ;;  %v5946_v55 = vmul.f32 0.015625, %v865_v6  ;;  %v1587_v26 = vadd.f32 1.0, %v4665_v46 }
 0x1e1   :  { %v1205_v1 = vadd.f32 1e-05, %v1141_v47  ;;  %4475 = vmatprep.mubr.msk.bf16.mxu0 %vm802_vm1, %v1646_v12  ;;  %4672 = vtanh.f32 %v1524_v43  ;;  %v1114_v61 = vmul.f32 %v5931_v21, %v5931_v21  ;;  %v1178_v35 = vsub.f32 %v5469_v7, %v5931_v21 }
 0x1e2   :  { %v1265_v24 = vmul.f32 %v4661_v4, %v8102_v19  ;;  %v1032_v48 = vpop.xlane.xlu1 %1031  ;;  %4674 = vtanh.f32 %v1525_v36  ;;  %v5953_v59 = vmul.f32 0.015625, %v874_v56  ;;  %v1618_v53 = vmul.f32 %v1586_v23, %v5768_v45 }
 0x1e3   :  { %v4667_v40 = vpop.eup %4666  ;;  %v1082_v5 = vmul.f32 0.015625, %v1032_v48  ;;  %4676 = vrsqrt.f32 %v1205_v1  ;;  %v1619_v6 = vmul.f32 %v1587_v26, %v5797_v0  ;;  %v5958_v29 = vmul.f32 0.5, %v5935_v31 }
 0x1e4   :  { %v868_v38 = vpop.xlane.xlu0 %867  ;;  %v1398_v4 = vmul.f32 %v5935_v31, %v5935_v31  ;;  %v1399_v13 = vmul.f32 %v1335_v33, %v1335_v33  ;;  %v1301_v28 = vmul.f32 %v5669_v34, %v1265_v24  ;;  %v8103_v58 = vsub.f32 %v5562_v49, %v5837_v51 }
 0x1e5   :  { %v1146_v57 = vsub.f32 %v1082_v5, %v1114_v61  ;;  %v1112_v45 = vmul.f32 %v5946_v55, %v5946_v55  ;;  %v1647_v50 = vpack.c.bf16 %v1619_v6, %v1618_v53  ;;  %v1176_v47 = vsub.f32 %v5473_v18, %v5946_v55 }
 0x1e6   :  { %v1270_v43 = vmul.f32 %v4667_v40, %v8103_v58  ;;  %v1026_v0 = vpop.xlane.xlu1 %1025  ;;  %v5970_v56 = vmul.f32 0.015625, %v868_v38  ;;  %v1115_v36 = vmul.f32 %v5953_v59, %v5953_v59  ;;  %v1179_v49 = vsub.f32 %v5478_v39, %v5953_v59 }
 0x1e7   :  { %v4669_v46 = vpop.eup %4668  ;;  %v1210_v12 = vadd.f32 1e-05, %v1146_v57  ;;  %v1080_v23 = vmul.f32 0.015625, %v1026_v0  ;;  %4476 = vmatmul.mubr.msk.bf16.gmra.mrb[20].mxu0 %vm802_vm1, %v1647_v50  ;;  %v1430_v19 = vmul.f32 %v1398_v4, %v5935_v31  ;;  %v1431_v24 = vmul.f32 %v1399_v13, %v1335_v33 }
 0x1e8   :  { %v1035_v51 = vpop.xlane.xlu0 %1034  ;;  %v5979_v40 = vadd.f32 %v5676_v32, %v1300_v30  ;;  %v5982_v61 = vmul.f32 %v5669_v34, %v1270_v43  ;;  %v5984_v53 = vmul.f32 0.5, %v1335_v33  ;;  %v1113_v57 = vmul.f32 %v5970_v56, %v5970_v56 }
 0x1e9   :  { %v4671_v1 = vpop.eup %4670  ;;  %4678 = vrsqrt.f32 %v1210_v12  ;;  %v1144_v26 = vsub.f32 %v1080_v23, %v1112_v45  ;;  %v1083_v48 = vmul.f32 0.015625, %v1035_v51  ;;  %v1462_v6 = vmul.f32 0.044715, %v1430_v19 }
 0x1ea   :  { %v883_v5 = vpop.xlane.xlu1 %882  ;;  %v1463_v38 = vmul.f32 0.044715, %v1431_v24  ;;  %v5989_v58 = vadd.f32 %v5676_v32, %v1301_v28  ;;  %v8104_v30 = vsub.f32 %v5437_v11, %v5848_v9  ;;  %v8105_v19 = vsub.f32 %v5443_v10, %v5871_v44 }
 0x1eb   :  { %v1208_v4 = vadd.f32 1e-05, %v1144_v26  ;;  %v1147_v13 = vsub.f32 %v1083_v48, %v1115_v36  ;;  %v4673_v45 = vpop.eup %4672  ;;  %v1494_v12 = vadd.f32 %v1462_v6, %v5935_v31  ;;  %v1400_v24 = vmul.f32 %v5979_v40, %v5979_v40 }
 0x1ec   :  { %v1268_v50 = vmul.f32 %v4669_v46, %v8104_v30  ;;  %v1029_v0 = vpop.xlane.xlu0 %1028  ;;  %v1495_v23 = vadd.f32 %v1463_v38, %v1335_v33  ;;  %v4675_v51 = vpop.eup %4674  ;;  %v1271_v36 = vmul.f32 %v4671_v1, %v8105_v19  ;;  %v1588_v46 = vadd.f32 1.0, %v4673_v45 }
 0x1ed   :  { %4680 = vrsqrt.f32 %v1208_v4  ;;  %v1211_v28 = vadd.f32 1e-05, %v1147_v13  ;;  %v4677_v26 = vpop.eup %4676  ;;  %v1081_v11 = vmul.f32 0.015625, %v1029_v0  ;;  %v1589_v48 = vadd.f32 1.0, %v4675_v51 }
 0x1ee   :  { %v877_v9 = vpop.xlane.xlu1 %876  ;;  %v1526_v30 = vmul.f32 0.7978846, %v1494_v12  ;;  %v6002_v43 = vmul.f32 0.015625, %v883_v5  ;;  %v1527_v31 = vmul.f32 0.7978846, %v1495_v23  ;;  %v1401_v33 = vmul.f32 %v5989_v58, %v5989_v58 }
 0x1ef   :  { %4682 = vrsqrt.f32 %v1211_v28  ;;  %v1145_v10 = vsub.f32 %v1081_v11, %v1113_v57  ;;  %v1620_v44 = vmul.f32 %v1588_v46, %v5906_v62  ;;  %v1621_v1 = vmul.f32 %v1589_v48, %v5909_v37 }
 0x1f0   :  { %v886_v6 = vpop.xlane.xlu0 %885  ;;  %4684 = vtanh.f32 %v1526_v30  ;;  %v6009_v38 = vmul.f32 %v5669_v34, %v1268_v50  ;;  %v1269_v4 = vmul.f32 %v4677_v26, %v1173_v14  ;;  %v6015_v5 = vmul.f32 0.5, %v5979_v40 }
 0x1f1   :  { %v6018_v13 = vmul.f32 0.5, %v5989_v58  ;;  %v1209_v57 = vadd.f32 1e-05, %v1145_v10  ;;  %v1648_v45 = vpack.c.bf16 %v1621_v1, %v1620_v44  ;;  %4686 = vtanh.f32 %v1527_v31 }
 0x1f2   :  { %v1044_v62 = vpop.xlane.xlu1 %1043  ;;  %v1432_v37 = vmul.f32 %v1400_v24, %v5979_v40  ;;  %v1118_v50 = vmul.f32 %v6002_v43, %v6002_v43  ;;  %v6023_v12 = vmul.f32 0.015625, %v877_v9  ;;  %v1433_v20 = vmul.f32 %v1401_v33, %v5989_v58 }
 0x1f3   :  { %v4679_v0 = vpop.eup %4678  ;;  %v1086_v22 = vmul.f32 0.015625, %v1044_v62  ;;  %v6027_v14 = vmul.f32 %v5669_v34, %v1271_v36  ;;  %4479 = vmatprep.mubr.msk.bf16.mxu0 %vm802_vm1, %v1648_v45  ;;  %v6030_v23 = vmul.f32 0.015625, %v886_v6  ;;  %v1338_v28 = vadd.f32 %v5676_v32, %v5914_v60 }
 0x1f4   :  { %v880_v51 = vpop.xlane.xlu0 %879  ;;  %v1464_v19 = vmul.f32 0.044715, %v1432_v37  ;;  %v1182_v24 = vsub.f32 %v5508_v25, %v6002_v43  ;;  %v1465_v11 = vmul.f32 0.044715, %v1433_v20  ;;  %v1339_v9 = vadd.f32 %v5676_v32, %v5939_v2 }
 0x1f5   :  { %v1150_v26 = vsub.f32 %v1086_v22, %v1118_v50  ;;  %v6039_v36 = vmul.f32 %v5669_v34, %v1269_v4  ;;  %v1274_v46 = vmul.f32 %v4679_v0, %v1178_v35  ;;  %4688 = vrsqrt.f32 %v1209_v57 }
 0x1f6   :  { %v1038_v48 = vpop.xlane.xlu1 %1037  ;;  %v1496_v30 = vadd.f32 %v1464_v19, %v5979_v40  ;;  %v1116_v31 = vmul.f32 %v6023_v12, %v6023_v12  ;;  %v1180_v33 = vsub.f32 %v5513_v41, %v6023_v12  ;;  %v6049_v10 = vmul.f32 0.015625, %v880_v51 }
 0x1f7   :  { %v4681_v60 = vpop.eup %4680  ;;  %v1084_v2 = vmul.f32 0.015625, %v1038_v48  ;;  %v1119_v44 = vmul.f32 %v6030_v23, %v6030_v23  ;;  %v1497_v7 = vadd.f32 %v1465_v11, %v5989_v58  ;;  %v1402_v35 = vmul.f32 %v1338_v28, %v1338_v28 }
 0x1f8   :  { %v1047_v1 = vpop.xlane.xlu0 %1046  ;;  %v1528_v21 = vmul.f32 0.7978846, %v1496_v30  ;;  %v1214_v4 = vadd.f32 1e-05, %v1150_v26  ;;  %v1403_v45 = vmul.f32 %v1339_v9, %v1339_v9  ;;  %v6057_v37 = vmul.f32 %v5669_v34, %v1274_v46  ;;  %v8106_v26 = vld [vmem:[#allocation19_spill] sm:$0xff] }
 0x1f9   :  { %v4683_v6 = vpop.eup %4682  ;;  %v1087_v57 = vmul.f32 0.015625, %v1047_v1  ;;  %v1148_v0 = vsub.f32 %v1084_v2, %v1116_v31  ;;  %v1529_v22 = vmul.f32 0.7978846, %v1497_v7  ;;  %v1117_v58 = vmul.f32 %v6049_v10, %v6049_v10 }
 0x1fa   :  { %v4685_v62 = vpop.eup %4684  ;;  %v895_v50 = vpop.xlane.xlu1 %894  ;;  %4690 = vtanh.f32 %v1528_v21  ;;  %v6061_v19 = vmul.f32 0.5, %v1338_v28  ;;  %v1434_v1 = vmul.f32 %v1402_v35, %v1338_v28  ;;  %v1435_v46 = vmul.f32 %v1403_v45, %v1339_v9 }
 0x1fb   :  { %v1590_v20 = vadd.f32 1.0, %v4685_v62  ;;  %v1151_v51 = vsub.f32 %v1087_v57, %v1119_v44  ;;  %v4687_v11 = vpop.eup %4686  ;;  %4692 = vtanh.f32 %v1529_v22  ;;  %v1272_v31 = vmul.f32 %v4681_v60, %v1176_v47 }
 0x1fc   :  { %v1041_v30 = vpop.xlane.xlu0 %1040  ;;  %v1275_v2 = vmul.f32 %v4683_v6, %v1179_v49  ;;  %v1591_v7 = vadd.f32 1.0, %v4687_v11  ;;  %4694 = vrsqrt.f32 %v1214_v4  ;;  %v1212_v44 = vadd.f32 1e-05, %v1148_v0 }
 0x1fd   :  { %v6071_v21 = vmul.f32 0.015625, %v895_v50  ;;  %v1085_v57 = vmul.f32 0.015625, %v1041_v30  ;;  %v1466_v48 = vmul.f32 0.044715, %v1434_v1  ;;  %v1622_v22 = vmul.f32 %v1590_v20, %v5958_v29  ;;  %v8108_v30 = vld [vmem:[#allocation20_spill] sm:$0xff] }
 0x1fe   :  { %v889_v62 = vpop.xlane.xlu1 %888  ;;  %v1623_v35 = vmul.f32 %v1591_v7, %v5984_v53  ;;  %v1215_v45 = vadd.f32 1e-05, %v1151_v51  ;;  %v1467_v39 = vmul.f32 0.044715, %v1435_v46  ;;  %v6079_v49 = vadd.f32 %v5676_v32, %v6009_v38 }
 0x1ff   :  { %v6075_v40 = vmul.f32 0.015625, %v889_v62  ;;  %v4689_v18 = vpop.eup %4688  ;;  %v1149_v55 = vsub.f32 %v1085_v57, %v1117_v58  ;;  %v1498_v59 = vadd.f32 %v1466_v48, %v1338_v28  ;;  %v6082_v60 = vmul.f32 %v5669_v34, %v1272_v31 }
 0x200   :  { %v898_v47 = vpop.xlane.xlu0 %897  ;;  %v6085_v6 = vmul.f32 %v5669_v34, %v1275_v2  ;;  %v1649_v29 = vpack.c.bf16 %v1623_v35, %v1622_v22  ;;  %v6087_v53 = vmul.f32 0.5, %v1339_v9  ;;  %4696 = vrsqrt.f32 %v1212_v44 }
 0x201   :  { %v1213_v4 = vadd.f32 1e-05, %v1149_v55  ;;  %v1499_v0 = vadd.f32 %v1467_v39, %v1339_v9  ;;  %v1530_v50 = vmul.f32 0.7978846, %v1498_v59  ;;  %v8107_v28 = vsub.f32 %v5487_v17, %v5970_v56 }
 0x202   :  { %v1050_v20 = vpop.xlane.xlu1 %1049  ;;  %4480 = vmatmul.mubr.msk.bf16.gmra.mrb[24].mxu0 %vm802_vm1, %v1649_v29  ;;  %v1120_v38 = vmul.f32 %v6075_v40, %v6075_v40  ;;  %v1341_v11 = vadd.f32 %v5676_v32, %v6039_v36  ;;  %4698 = vrsqrt.f32 %v1215_v45  ;;  %v1122_v9 = vmul.f32 %v6071_v21, %v6071_v21  ;;  %v8109_v45 = vld [vmem:[#allocation21_spill] sm:$0xff] }
 0x203   :  { %v1273_v58 = vmul.f32 %v4689_v18, %v8107_v28  ;;  %v1088_v51 = vmul.f32 0.015625, %v1050_v20  ;;  %v1186_v1 = vsub.f32 %v8108_v30, %v6071_v21  ;;  %v1404_v17 = vmul.f32 %v6079_v49, %v6079_v49 }
 0x204   :  { %v4691_v48 = vpop.eup %4690  ;;  %v892_v46 = vpop.xlane.xlu0 %891  ;;  %v1531_v31 = vmul.f32 0.7978846, %v1499_v0  ;;  %4700 = vtanh.f32 %v1530_v50  ;;  %v6103_v44 = vmul.f32 0.015625, %v898_v47  ;;  %v1405_v62 = vmul.f32 %v1341_v11, %v1341_v11 }
 0x205   :  { %v1592_v56 = vadd.f32 1.0, %v4691_v48  ;;  %v1152_v2 = vsub.f32 %v1088_v51, %v1120_v38  ;;  %v4693_v7 = vpop.eup %4692  ;;  %4702 = vrsqrt.f32 %v1213_v4  ;;  %v6105_v36 = vmul.f32 0.015625, %v892_v46 }
 0x206   :  { %v1056_v57 = vpop.xlane.xlu1 %1055  ;;  %v4695_v22 = vpop.eup %4694  ;;  %v1309_v35 = vmul.f32 %v5669_v34, %v1273_v58  ;;  %v1184_v18 = vsub.f32 %v8109_v45, %v6075_v40  ;;  %v1593_v55 = vadd.f32 1.0, %v4693_v7  ;;  %4704 = vtanh.f32 %v1531_v31 }
 0x207   :  { %v1624_v39 = vmul.f32 %v1592_v56, %v6015_v5  ;;  %v1216_v59 = vadd.f32 1e-05, %v1152_v2  ;;  %v1090_v29 = vmul.f32 0.015625, %v1056_v57  ;;  %v6112_v47 = vmul.f32 0.5, %v6079_v49  ;;  %v8110_v2 = vld [vmem:[#allocation22_spill] sm:$0xff] }
 0x208   :  { %v1053_v0 = vpop.xlane.xlu0 %1052  ;;  %v1625_v4 = vmul.f32 %v1593_v55, %v6018_v13  ;;  %v1121_v50 = vmul.f32 %v6105_v36, %v6105_v36  ;;  %v1436_v28 = vmul.f32 %v1404_v17, %v6079_v49  ;;  %v1278_v58 = vmul.f32 %v4695_v22, %v1182_v24 }
 0x209   :  { %v1089_v20 = vmul.f32 0.015625, %v1053_v0  ;;  %v1123_v5 = vmul.f32 %v6103_v44, %v6103_v44  ;;  %v1154_v38 = vsub.f32 %v1090_v29, %v1122_v9  ;;  %v1437_v51 = vmul.f32 %v1405_v62, %v1341_v11 }
 0x20a   :  { %v1650_v48 = vpack.c.bf16 %v1625_v4, %v1624_v39  ;;  %v1468_v56 = vmul.f32 0.044715, %v1436_v28  ;;  %v6125_v13 = vadd.f32 %v5676_v32, %v5982_v61  ;;  %v4697_v31 = vpop.eup %4696  ;;  %v1187_v17 = vsub.f32 %v8110_v2, %v6103_v44 }
 0x20b   :  { %v1153_v46 = vsub.f32 %v1089_v20, %v1121_v50  ;;  %v1218_v7 = vadd.f32 1e-05, %v1154_v38  ;;  %v1469_v25 = vmul.f32 0.044715, %v1437_v51  ;;  %v1343_v43 = vadd.f32 %v5676_v32, %v6027_v14 }
 0x20c   :  { %v1059_v57 = vpop.xlane.xlu0 %1058  ;;  %4483 = vmatprep.mubr.msk.bf16.mxu0 %vm802_vm1, %v1650_v48  ;;  %4706 = vrsqrt.f32 %v1216_v59  ;;  %v1500_v62 = vadd.f32 %v1468_v56, %v6079_v49  ;;  %v4699_v22 = vpop.eup %4698  ;;  %v6134_v61 = vmul.f32 %v5669_v34, %v1278_v58  ;;  %v1406_v39 = vmul.f32 %v6125_v13, %v6125_v13 }
 0x20d   :  { %v1217_v24 = vadd.f32 1e-05, %v1153_v46  ;;  %v1091_v9 = vmul.f32 0.015625, %v1059_v57  ;;  %4708 = vrsqrt.f32 %v1218_v7  ;;  %v1501_v55 = vadd.f32 %v1469_v25, %v1341_v11 }
 0x20e   :  { %v4701_v29 = vpop.eup %4700  ;;  %v6138_v14 = vmul.f32 0.5, %v1341_v11  ;;  %v1532_v4 = vmul.f32 0.7978846, %v1500_v62  ;;  %v1407_v28 = vmul.f32 %v1343_v43, %v1343_v43  ;;  %v1438_v49 = vmul.f32 %v1406_v39, %v6125_v13  ;;  %v8111_v11 = vld [vmem:[#allocation23_spill] sm:$0xff] }
 0x20f   :  { %4710 = vrsqrt.f32 %v1217_v24  ;;  %v1155_v0 = vsub.f32 %v1091_v9, %v1123_v5  ;;  %v4703_v59 = vpop.eup %4702  ;;  %v1594_v50 = vadd.f32 1.0, %v4701_v29  ;;  %v1533_v20 = vmul.f32 0.7978846, %v1501_v55 }
 0x210   :  { %v4705_v38 = vpop.eup %4704  ;;  %v1276_v58 = vmul.f32 %v4697_v31, %v1180_v33  ;;  %4712 = vtanh.f32 %v1532_v4  ;;  %v1344_v48 = vadd.f32 %v5676_v32, %v6082_v60  ;;  %v1185_v46 = vsub.f32 %v8111_v11, %v6105_v36 }
 0x211   :  { %v1219_v51 = vadd.f32 1e-05, %v1155_v0  ;;  %v1595_v5 = vadd.f32 1.0, %v4705_v38  ;;  %4714 = vtanh.f32 %v1533_v20  ;;  %v1439_v56 = vmul.f32 %v1407_v28, %v1343_v43 }
 0x212   :  { %v8112_v7 = vsub.f32 %v5520_v3, %v6030_v23  ;;  %v8113_v25 = vsub.f32 %v8106_v26, %v6049_v10  ;;  %v1470_v12 = vmul.f32 0.044715, %v1438_v49  ;;  %v6155_v33 = vadd.f32 %v5676_v32, %v1309_v35 }
 0x213   :  { %v1626_v60 = vmul.f32 %v1594_v50, %v6061_v19  ;;  %v1627_v31 = vmul.f32 %v1595_v5, %v6087_v53  ;;  %v1471_v24 = vmul.f32 0.044715, %v1439_v56  ;;  %v1408_v36 = vmul.f32 %v1344_v48, %v1344_v48 }
 0x214   :  { %v1279_v57 = vmul.f32 %v4699_v22, %v8112_v7  ;;  %v1277_v41 = vmul.f32 %v4703_v59, %v8113_v25  ;;  %4716 = vrsqrt.f32 %v1219_v51  ;;  %v1502_v9 = vadd.f32 %v1470_v12, %v6125_v13 }
 0x215   :  { %v1409_v3 = vmul.f32 %v6155_v33, %v6155_v33  ;;  %v6164_v23 = vadd.f32 %v5676_v32, %v6057_v37  ;;  %v1312_v10 = vmul.f32 %v5669_v34, %v1276_v58  ;;  %v1651_v26 = vpack.c.bf16 %v1627_v31, %v1626_v60 }
 0x216   :  { %v1503_v35 = vadd.f32 %v1471_v24, %v1343_v43  ;;  %v1440_v62 = vmul.f32 %v1408_v36, %v1344_v48  ;;  %v4707_v19 = vpop.eup %4706  ;;  %v1315_v53 = vmul.f32 %v5669_v34, %v1279_v57  ;;  %v1534_v22 = vmul.f32 0.7978846, %v1502_v9 }
 0x217   :  { %v1441_v55 = vmul.f32 %v1409_v3, %v6155_v33  ;;  %v6171_v39 = vadd.f32 %v5676_v32, %v6085_v6  ;;  %v4709_v29 = vpop.eup %4708  ;;  %v1313_v0 = vmul.f32 %v5669_v34, %v1277_v41  ;;  %4484 = vmatmul.mubr.msk.bf16.gmra.mrb[28].mxu0 %vm802_vm1, %v1651_v26  ;;  %v1410_v59 = vmul.f32 %v6164_v23, %v6164_v23 }
 0x218   :  { %v1535_v37 = vmul.f32 0.7978846, %v1503_v35  ;;  %v1472_v4 = vmul.f32 0.044715, %v1440_v62  ;;  %v1374_v20 = vmul.f32 0.5, %v6125_v13  ;;  %v1375_v28 = vmul.f32 0.5, %v1343_v43 }
 0x219   :  { %v4711_v50 = vpop.eup %4710  ;;  %4718 = vtanh.f32 %v1534_v22  ;;  %v1473_v49 = vmul.f32 0.044715, %v1441_v55  ;;  %v1280_v6 = vmul.f32 %v4707_v19, %v1184_v18  ;;  %v1411_v58 = vmul.f32 %v6171_v39, %v6171_v39 }
 0x21a   :  { %4720 = vtanh.f32 %v1535_v37  ;;  %v1504_v38 = vadd.f32 %v1472_v4, %v1344_v48  ;;  %v4713_v51 = vpop.eup %4712  ;;  %v1281_v5 = vmul.f32 %v4711_v50, %v1185_v46  ;;  %v1442_v56 = vmul.f32 %v1410_v59, %v6164_v23 }
 0x21b   :  { %v1505_v11 = vadd.f32 %v1473_v49, %v6155_v33  ;;  %v6186_v13 = vadd.f32 %v5676_v32, %v1312_v10  ;;  %v4715_v43 = vpop.eup %4714  ;;  %v1596_v7 = vadd.f32 1.0, %v4713_v51  ;;  %v1443_v40 = vmul.f32 %v1411_v58, %v6171_v39 }
 0x21c   :  { %v1536_v57 = vmul.f32 0.7978846, %v1504_v38  ;;  %v6190_v45 = vadd.f32 %v5676_v32, %v1313_v0  ;;  %v1597_v18 = vadd.f32 1.0, %v4715_v43  ;;  %v1376_v25 = vmul.f32 0.5, %v1344_v48 }
 0x21d   :  { %v1537_v41 = vmul.f32 0.7978846, %v1505_v11  ;;  %v1474_v12 = vmul.f32 0.044715, %v1442_v56  ;;  %v1316_v46 = vmul.f32 %v5669_v34, %v1280_v6  ;;  %v1282_v60 = vmul.f32 %v4709_v29, %v1186_v1 }
 0x21e   :  { %4722 = vtanh.f32 %v1536_v57  ;;  %v1475_v31 = vmul.f32 0.044715, %v1443_v40  ;;  %v4717_v24 = vpop.eup %4716  ;;  %v1628_v36 = vmul.f32 %v1596_v7, %v6112_v47  ;;  %v1629_v9 = vmul.f32 %v1597_v18, %v6138_v14 }
 0x21f   :  { %4724 = vtanh.f32 %v1537_v41  ;;  %v1506_v3 = vadd.f32 %v1474_v12, %v6164_v23  ;;  %v1317_v48 = vmul.f32 %v5669_v34, %v1281_v5  ;;  %v1412_v26 = vmul.f32 %v6186_v13, %v6186_v13 }
 0x220   :  { %v1507_v10 = vadd.f32 %v1475_v31, %v6171_v39  ;;  %v1413_v21 = vmul.f32 %v6190_v45, %v6190_v45  ;;  %v1652_v30 = vpack.c.bf16 %v1629_v9, %v1628_v36  ;;  %v6207_v47 = vadd.f32 %v5676_v32, %v6134_v61 }
 0x221   :  { %v1538_v1 = vmul.f32 0.7978846, %v1506_v3  ;;  %v6210_v14 = vadd.f32 %v5676_v32, %v1315_v53  ;;  %v1283_v35 = vmul.f32 %v4717_v24, %v1187_v17  ;;  %v1444_v19 = vmul.f32 %v1412_v26, %v6186_v13 }
 0x222   :  { %v1539_v62 = vmul.f32 0.7978846, %v1507_v10  ;;  %v1445_v22 = vmul.f32 %v1413_v21, %v6190_v45  ;;  %4487 = vmatprep.mubr.msk.bf16.mxu0 %vm802_vm1, %v1652_v30  ;;  %v1377_v29 = vmul.f32 0.5, %v6155_v33  ;;  %v1414_v61 = vmul.f32 %v6207_v47, %v6207_v47 }
 0x223   :  { %v4719_v55 = vpop.eup %4718  ;;  %4726 = vtanh.f32 %v1538_v1  ;;  %v6222_v53 = vadd.f32 %v5676_v32, %v1316_v46  ;;  %v1476_v2 = vmul.f32 0.044715, %v1444_v19  ;;  %v1415_v4 = vmul.f32 %v6210_v14, %v6210_v14 }
 0x224   :  { %v4721_v0 = vpop.eup %4720  ;;  %v1598_v44 = vadd.f32 1.0, %v4719_v55  ;;  %4728 = vtanh.f32 %v1539_v62  ;;  %v1477_v17 = vmul.f32 0.044715, %v1445_v22  ;;  %v1446_v59 = vmul.f32 %v1414_v61, %v6207_v47 }
 0x225   :  { %v1599_v37 = vadd.f32 1.0, %v4721_v0  ;;  %v6228_v33 = vadd.f32 %v5676_v32, %v1317_v48  ;;  %v1318_v50 = vmul.f32 %v5669_v34, %v1282_v60  ;;  %v1319_v49 = vmul.f32 %v5669_v34, %v1283_v35 }
 0x226   :  { %v1508_v6 = vadd.f32 %v1476_v2, %v6186_v13  ;;  %v1509_v38 = vadd.f32 %v1477_v17, %v6190_v45  ;;  %v1630_v58 = vmul.f32 %v1598_v44, %v1374_v20  ;;  %v1447_v5 = vmul.f32 %v1415_v4, %v6210_v14 }
 0x227   :  { %v1631_v51 = vmul.f32 %v1599_v37, %v1375_v28  ;;  %v1478_v11 = vmul.f32 0.044715, %v1446_v59  ;;  %v1416_v57 = vmul.f32 %v6222_v53, %v6222_v53  ;;  %v1417_v40 = vmul.f32 %v6228_v33, %v6228_v33 }
 0x228   :  { %v4723_v56 = vpop.eup %4722  ;;  %v1540_v43 = vmul.f32 0.7978846, %v1508_v6  ;;  %v1541_v7 = vmul.f32 0.7978846, %v1509_v38  ;;  %v1479_v12 = vmul.f32 0.044715, %v1447_v5  ;;  %v6245_v10 = vadd.f32 %v5676_v32, %v1318_v50 }
 0x229   :  { %v4725_v18 = vpop.eup %4724  ;;  %v1653_v34 = vpack.c.bf16 %v1631_v51, %v1630_v58  ;;  %v1600_v41 = vadd.f32 1.0, %v4723_v56  ;;  %v1510_v46 = vadd.f32 %v1478_v11, %v6207_v47  ;;  %v1448_v28 = vmul.f32 %v1416_v57, %v6222_v53 }
 0x22a   :  { %v1601_v20 = vadd.f32 1.0, %v4725_v18  ;;  %4730 = vtanh.f32 %v1540_v43  ;;  %v1449_v60 = vmul.f32 %v1417_v40, %v6228_v33  ;;  %v1511_v24 = vadd.f32 %v1479_v12, %v6210_v14 }
 0x22b   :  { %4488 = vmatmul.mubr.msk.bf16.gmra.mrb[32].mxu0 %vm802_vm1, %v1653_v34  ;;  %v1632_v31 = vmul.f32 %v1600_v41, %v1376_v25  ;;  %4732 = vtanh.f32 %v1541_v7  ;;  %v1542_v36 = vmul.f32 0.7978846, %v1510_v46  ;;  %v1480_v3 = vmul.f32 0.044715, %v1448_v28 }
 0x22c   :  { %v1633_v9 = vmul.f32 %v1601_v20, %v1377_v29  ;;  %v1481_v48 = vmul.f32 0.044715, %v1449_v60  ;;  %v1543_v21 = vmul.f32 0.7978846, %v1511_v24  ;;  %v6248_v30 = vadd.f32 %v5676_v32, %v1319_v49 }
 0x22d   :  { %v4727_v26 = vpop.eup %4726  ;;  %4734 = vtanh.f32 %v1542_v36  ;;  %v1512_v25 = vadd.f32 %v1480_v3, %v6222_v53  ;;  %v1378_v22 = vmul.f32 0.5, %v6164_v23  ;;  %v1379_v55 = vmul.f32 0.5, %v6171_v39 }
 0x22e   :  { %v4729_v1 = vpop.eup %4728  ;;  %v1654_v35 = vpack.c.bf16 %v1633_v9, %v1632_v31  ;;  %v1602_v62 = vadd.f32 1.0, %v4727_v26  ;;  %v1513_v19 = vadd.f32 %v1481_v48, %v6228_v33  ;;  %4736 = vtanh.f32 %v1543_v21 }
 0x22f   :  { %v1603_v29 = vadd.f32 1.0, %v4729_v1  ;;  %v1544_v61 = vmul.f32 0.7978846, %v1512_v25  ;;  %v1418_v32 = vmul.f32 %v6245_v10, %v6245_v10  ;;  %v1419_v17 = vmul.f32 %v6248_v30, %v6248_v30 }
 0x230   :  { %4491 = vmatprep.mubr.msk.bf16.mxu0 %vm802_vm1, %v1654_v35  ;;  %v1545_v0 = vmul.f32 0.7978846, %v1513_v19  ;;  %v1634_v44 = vmul.f32 %v1602_v62, %v1378_v22  ;;  %v1380_v38 = vmul.f32 0.5, %v6186_v13  ;;  %v1381_v58 = vmul.f32 0.5, %v6190_v45 }
 0x231   :  { %v1635_v2 = vmul.f32 %v1603_v29, %v1379_v55  ;;  %4738 = vtanh.f32 %v1544_v61  ;;  %v1450_v37 = vmul.f32 %v1418_v32, %v6245_v10  ;;  %v1451_v39 = vmul.f32 %v1419_v17, %v6248_v30  ;;  %v6280_v29 = vld [vmem:[%s8039_s4] sm:$0xff] }
 0x232   :  { %4740 = vtanh.f32 %v1545_v0  ;;  %v1382_v34 = vmul.f32 0.5, %v6207_v47  ;;  %v1383_v46 = vmul.f32 0.5, %v6210_v14  ;;  %v1384_v36 = vmul.f32 0.5, %v6222_v53 }
 0x233   :  { %v1655_v23 = vpack.c.bf16 %v1635_v2, %v1634_v44  ;;  %v1482_v59 = vmul.f32 0.044715, %v1450_v37  ;;  %v1483_v6 = vmul.f32 0.044715, %v1451_v39  ;;  %v1385_v9 = vmul.f32 0.5, %v6228_v33  ;;  %v8114_v33 = vld [vmem:[#allocation11_spill] sm:$0xff] }
 0x234   :  { %v4731_v4 = vpop.eup %4730  ;;  %v1386_v35 = vmul.f32 0.5, %v6245_v10  ;;  %v1387_v62 = vmul.f32 0.5, %v6248_v30  ;;  %v1662_v55 = vsub.s32 4, %v8114_v33 }
 0x235   :  { %v4733_v50 = vpop.eup %4732  ;;  %4492 = vmatmul.mubr.msk.bf16.gmra.mrb[36].mxu0 %vm802_vm1, %v1655_v23  ;;  %v1604_v49 = vadd.f32 1.0, %v4731_v4  ;;  %v1514_v5 = vadd.f32 %v1482_v59, %v6245_v10  ;;  %v1515_v56 = vadd.f32 %v1483_v6, %v6248_v30 }
 0x236   :  { %v1605_v51 = vadd.f32 1.0, %v4733_v50  ;;  %v6283_v61 = vrot.slane %v6280_v29, %v1662_v55 }
 0x237   :  { %v4735_v11 = vpop.eup %4734  ;;  %v1636_v43 = vmul.f32 %v1604_v49, %v1380_v38  ;;  %v1546_v40 = vmul.f32 0.7978846, %v1514_v5  ;;  %v1547_v41 = vmul.f32 0.7978846, %v1515_v56 }
 0x238   :  { %v1637_v7 = vmul.f32 %v1605_v51, %v1381_v58  ;;  %v1606_v57 = vadd.f32 1.0, %v4735_v11  ;;  %v4737_v18 = vpop.eup %4736 }
 0x239   :  { %v1607_v13 = vadd.f32 1.0, %v4737_v18  ;;  %4742 = vtanh.f32 %v1546_v40 }
 0x23a   :  { %v1656_v12 = vpack.c.bf16 %v1637_v7, %v1636_v43  ;;  %4744 = vtanh.f32 %v1547_v41  ;;  %v1638_v20 = vmul.f32 %v1606_v57, %v1382_v34 }
 0x23b   :  { %v4739_v45 = vpop.eup %4738  ;;  %v1639_v28 = vmul.f32 %v1607_v13, %v1383_v46  ;;  %v4610_v13 = vld [vmem:[%s8036_s2 + $0x30] sm:$0xff]  }
 0x23c   :  { %4495 = vmatprep.mubr.msk.bf16.mxu0 %vm802_vm1, %v1656_v12  ;;  %v4741_v60 = vpop.eup %4740  ;;  %v1608_v31 = vadd.f32 1.0, %v4739_v45  ;;  %4503 = vmatprep.subr.bf16.mxu1 %v4610_v13 }
 0x23d   :  { %v1657_v24 = vpack.c.bf16 %v1639_v28, %v1638_v20  ;;  %v1609_v47 = vadd.f32 1.0, %v4741_v60  ;;  %4504 = vmatpush3.bf16.msra.mxu1 %v4610_v13 }
 0x23e   :  { %v1640_v3 = vmul.f32 %v1608_v31, %v1384_v36 }
 0x23f   :  { %4496 = vmatmul.mubr.msk.bf16.gmra.mrb[40].mxu0 %vm802_vm1, %v1657_v24  ;;  %v1641_v14 = vmul.f32 %v1609_v47, %v1385_v9 }
 0x241   :  { %v1658_v48 = vpack.c.bf16 %v1641_v14, %v1640_v3 }
 0x243   :  { %v4743_v26 = vpop.eup %4742  ;;  %4499 = vmatprep.mubr.msk.bf16.mxu0 %vm802_vm1, %v1658_v48 }
 0x244   :  { %v4745_v21 = vpop.eup %4744  ;;  %v1610_v1 = vadd.f32 1.0, %v4743_v26 }
 0x245   :  { %v1611_v25 = vadd.f32 1.0, %v4745_v21 }
 0x246   :  { %v1642_v19 = vmul.f32 %v1610_v1, %v1386_v35 }
 0x247   :  { %v1643_v53 = vmul.f32 %v1611_v25, %v1387_v62 }
 0x249   :  { %v1659_v22 = vpack.c.bf16 %v1643_v53, %v1642_v19  ;;  %v4611_v19 = vld [vmem:[%s8036_s2 + $0x38] sm:$0xff]  }
 0x24a   :  { %4505 = vmatprep.subr.bf16.mxu1 %v4611_v19 }
 0x24b   :  { %4500 = vmatmul.mubr.msk.bf16.gmra.mrb[44].mxu0 %vm802_vm1, %v1659_v22  ;;  %4506 = vmatpush3.bf16.msra.mxu1 %v4611_v19 }
 0x2a3   :  { %v4473_v0 = vpop.f32.mrb[16].mxu0 }
 0x2a4   :  { %v6286_v10 = vadd.f32 %v4473_v0, %v6283_v61  ;;  %v1770_v30 = vpop.f32.mrb[17].mxu0 }
 0x2a5   :  { %v4474_v32 = vpop.f32.mrb[18].mxu0  ;;  %v6289_v44 = vadd.f32 %v1770_v30, %v6283_v61 }
 0x2a6   :  { %v6292_v2 = vadd.f32 %v4474_v32, %v6283_v61  ;;  %v1773_v17 = vpop.f32.mrb[19].mxu0  ;;  %v1903_v37 = vsel %vm802_vm1, %v6286_v10, 0.0  ;;  %v2027_v59 = vmul.f32 %v6286_v10, %v6286_v10 }
 0x2a7   :  { %1904 = vadd.xlane.f32.xlu1 %v1903_v37  ;;  %v6297_v23 = vadd.f32 %v1773_v17, %v6283_v61  ;;  %v1897_v4 = vsel %vm802_vm1, %v6289_v44, 0.0  ;;  %v2025_v38 = vmul.f32 %v6289_v44, %v6289_v44 }
 0x2a8   :  { %v1906_v39 = vsel %vm802_vm1, %v6292_v2, 0.0  ;;  %v2028_v49 = vmul.f32 %v6292_v2, %v6292_v2  ;;  %v2063_v6 = vsel %vm802_vm1, %v2027_v59, 0.0 }
 0x2a9   :  { %1907 = vadd.xlane.f32.xlu0 %v1906_v39  ;;  %v1900_v50 = vsel %vm802_vm1, %v6297_v23, 0.0  ;;  %v2026_v51 = vmul.f32 %v6297_v23, %v6297_v23  ;;  %v2057_v5 = vsel %vm802_vm1, %v2025_v38, 0.0 }
 0x2aa   :  { %v2066_v58 = vsel %vm802_vm1, %v2028_v49, 0.0 }
 0x2ab   :  { %1898 = vadd.xlane.f32.xlu1 %v1897_v4  ;;  %v2060_v11 = vsel %vm802_vm1, %v2026_v51, 0.0 }
 0x2ad   :  { %1901 = vadd.xlane.f32.xlu0 %v1900_v50 }
 0x2af   :  { %2064 = vadd.xlane.f32.xlu1 %v2063_v6 }
 0x2b1   :  { %2067 = vadd.xlane.f32.xlu0 %v2066_v58 }
 0x2b3   :  { %2058 = vadd.xlane.f32.xlu1 %v2057_v5 }
 0x2b5   :  { %2061 = vadd.xlane.f32.xlu0 %v2060_v11 }
 0x2ba   :  { %v4477_v56 = vpop.f32.mrb[20].mxu0 }
 0x2bb   :  { %v6318_v43 = vadd.f32 %v4477_v56, %v6283_v61  ;;  %v1786_v7 = vpop.f32.mrb[21].mxu0 }
 0x2bc   :  { %v4478_v57 = vpop.f32.mrb[22].mxu0  ;;  %v6321_v40 = vadd.f32 %v1786_v7, %v6283_v61  ;;  %v4612_v7 = vld [vmem:[%s8036_s2 + $0x40] sm:$0xff]  }
 0x2bd   :  { %v6324_v18 = vadd.f32 %v4478_v57, %v6283_v61  ;;  %v1789_v34 = vpop.f32.mrb[23].mxu0  ;;  %v1915_v41 = vsel %vm802_vm1, %v6318_v43, 0.0  ;;  %v2031_v20 = vmul.f32 %v6318_v43, %v6318_v43  ;;  %4507 = vmatprep.subr.bf16.mxu1 %v4612_v7 }
 0x2be   :  { %1916 = vadd.xlane.f32.xlu1 %v1915_v41  ;;  %v6329_v12 = vadd.f32 %v1789_v34, %v6283_v61  ;;  %v1909_v45 = vsel %vm802_vm1, %v6321_v40, 0.0  ;;  %v2029_v24 = vmul.f32 %v6321_v40, %v6321_v40  ;;  %4508 = vmatpush3.bf16.msra.mxu1 %v4612_v7 }
 0x2bf   :  { %v1918_v46 = vsel %vm802_vm1, %v6324_v18, 0.0  ;;  %v2032_v60 = vmul.f32 %v6324_v18, %v6324_v18  ;;  %v2075_v31 = vsel %vm802_vm1, %v2031_v20, 0.0 }
 0x2c0   :  { %1919 = vadd.xlane.f32.xlu0 %v1918_v46  ;;  %v1912_v28 = vsel %vm802_vm1, %v6329_v12, 0.0  ;;  %v2030_v9 = vmul.f32 %v6329_v12, %v6329_v12  ;;  %v2069_v47 = vsel %vm802_vm1, %v2029_v24, 0.0 }
 0x2c1   :  { %v2078_v36 = vsel %vm802_vm1, %v2032_v60, 0.0 }
 0x2c2   :  { %1910 = vadd.xlane.f32.xlu1 %v1909_v45  ;;  %v2072_v3 = vsel %vm802_vm1, %v2030_v9, 0.0 }
 0x2c4   :  { %1913 = vadd.xlane.f32.xlu0 %v1912_v28 }
 0x2c6   :  { %2076 = vadd.xlane.f32.xlu1 %v2075_v31 }
 0x2c8   :  { %2079 = vadd.xlane.f32.xlu0 %v2078_v36 }
 0x2ca   :  { %2070 = vadd.xlane.f32.xlu1 %v2069_v47 }
 0x2cc   :  { %2073 = vadd.xlane.f32.xlu0 %v2072_v3 }
 0x2d5   :  { %v4481_v14 = vpop.f32.mrb[24].mxu0 }
 0x2d6   :  { %v6353_v48 = vadd.f32 %v4481_v14, %v6283_v61  ;;  %v1802_v26 = vpop.f32.mrb[25].mxu0 }
 0x2d7   :  { %v4482_v21 = vpop.f32.mrb[26].mxu0  ;;  %v6356_v1 = vadd.f32 %v1802_v26, %v6283_v61 }
 0x2d8   :  { %v6359_v35 = vadd.f32 %v4482_v21, %v6283_v61  ;;  %v1805_v62 = vpop.f32.mrb[27].mxu0  ;;  %v1927_v25 = vsel %vm802_vm1, %v6353_v48, 0.0  ;;  %v2035_v0 = vmul.f32 %v6353_v48, %v6353_v48 }
 0x2d9   :  { %1928 = vadd.xlane.f32.xlu1 %v1927_v25  ;;  %v6367_v53 = vadd.f32 %v1805_v62, %v6283_v61  ;;  %v1921_v55 = vsel %vm802_vm1, %v6356_v1, 0.0  ;;  %v2033_v37 = vmul.f32 %v6356_v1, %v6356_v1 }
 0x2da   :  { %v1930_v22 = vsel %vm802_vm1, %v6359_v35, 0.0  ;;  %v2036_v32 = vmul.f32 %v6359_v35, %v6359_v35  ;;  %v2087_v17 = vsel %vm802_vm1, %v2035_v0, 0.0 }
 0x2db   :  { %1931 = vadd.xlane.f32.xlu0 %v1930_v22  ;;  %v1924_v30 = vsel %vm802_vm1, %v6367_v53, 0.0  ;;  %v2034_v4 = vmul.f32 %v6367_v53, %v6367_v53  ;;  %v2081_v59 = vsel %vm802_vm1, %v2033_v37, 0.0 }
 0x2dc   :  { %v2090_v39 = vsel %vm802_vm1, %v2036_v32, 0.0 }
 0x2dd   :  { %1922 = vadd.xlane.f32.xlu1 %v1921_v55  ;;  %v2084_v50 = vsel %vm802_vm1, %v2034_v4, 0.0 }
 0x2df   :  { %1925 = vadd.xlane.f32.xlu0 %v1924_v30 }
 0x2e1   :  { %2088 = vadd.xlane.f32.xlu1 %v2087_v17 }
 0x2e3   :  { %2091 = vadd.xlane.f32.xlu0 %v2090_v39 }
 0x2e5   :  { %2082 = vadd.xlane.f32.xlu1 %v2081_v59  ;;  %v4613_v59 = vld [vmem:[%s8036_s2 + $0x48] sm:$0xff]  }
 0x2e6   :  { %4509 = vmatprep.subr.bf16.mxu1 %v4613_v59 }
 0x2e7   :  { %2085 = vadd.xlane.f32.xlu0 %v2084_v50  ;;  %4510 = vmatpush3.bf16.msra.mxu1 %v4613_v59 }
 0x2ea   :  { %v4485_v49 = vpop.f32.mrb[28].mxu0 }
 0x2eb   :  { %v6388_v6 = vadd.f32 %v4485_v49, %v6283_v61  ;;  %v1818_v38 = vpop.f32.mrb[29].mxu0 }
 0x2ec   :  { %v4486_v58 = vpop.f32.mrb[30].mxu0  ;;  %v6391_v51 = vadd.f32 %v1818_v38, %v6283_v61 }
 0x2ed   :  { %v6394_v5 = vadd.f32 %v4486_v58, %v6283_v61  ;;  %v1821_v11 = vpop.f32.mrb[31].mxu0  ;;  %v1939_v56 = vsel %vm802_vm1, %v6388_v6, 0.0  ;;  %v2039_v46 = vmul.f32 %v6388_v6, %v6388_v6 }
 0x2ee   :  { %1940 = vadd.xlane.f32.xlu1 %v1939_v56  ;;  %v6402_v57 = vadd.f32 %v1821_v11, %v6283_v61  ;;  %v1933_v41 = vsel %vm802_vm1, %v6391_v51, 0.0  ;;  %v2037_v28 = vmul.f32 %v6391_v51, %v6391_v51 }
 0x2ef   :  { %v1942_v34 = vsel %vm802_vm1, %v6394_v5, 0.0  ;;  %v2040_v45 = vmul.f32 %v6394_v5, %v6394_v5  ;;  %v2099_v20 = vsel %vm802_vm1, %v2039_v46, 0.0 }
 0x2f0   :  { %1943 = vadd.xlane.f32.xlu0 %v1942_v34  ;;  %v1936_v13 = vsel %vm802_vm1, %v6402_v57, 0.0  ;;  %v2038_v31 = vmul.f32 %v6402_v57, %v6402_v57  ;;  %v2093_v24 = vsel %vm802_vm1, %v2037_v28, 0.0 }
 0x2f1   :  { %v2102_v60 = vsel %vm802_vm1, %v2040_v45, 0.0 }
 0x2f2   :  { %1934 = vadd.xlane.f32.xlu1 %v1933_v41  ;;  %v2096_v36 = vsel %vm802_vm1, %v2038_v31, 0.0 }
 0x2f4   :  { %1937 = vadd.xlane.f32.xlu0 %v1936_v13 }
 0x2f6   :  { %2100 = vadd.xlane.f32.xlu1 %v2099_v20 }
 0x2f8   :  { %2103 = vadd.xlane.f32.xlu0 %v2102_v60 }
 0x2fa   :  { %2094 = vadd.xlane.f32.xlu1 %v2093_v24 }
 0x2fc   :  { %2097 = vadd.xlane.f32.xlu0 %v2096_v36 }
 0x2fe   :  { %v4489_v9 = vpop.f32.mrb[32].mxu0 }
 0x2ff   :  { %v6423_v47 = vadd.f32 %v4489_v9, %v6283_v61  ;;  %v1834_v3 = vpop.f32.mrb[33].mxu0 }
 0x300   :  { %v4490_v14 = vpop.f32.mrb[34].mxu0  ;;  %v6426_v26 = vadd.f32 %v1834_v3, %v6283_v61 }
 0x301   :  { %v6429_v21 = vadd.f32 %v4490_v14, %v6283_v61  ;;  %v1837_v62 = vpop.f32.mrb[35].mxu0  ;;  %v1951_v25 = vsel %vm802_vm1, %v6423_v47, 0.0  ;;  %v2043_v0 = vmul.f32 %v6423_v47, %v6423_v47 }
 0x302   :  { %1952 = vadd.xlane.f32.xlu1 %v1951_v25  ;;  %v6434_v19 = vadd.f32 %v1837_v62, %v6283_v61  ;;  %v1945_v55 = vsel %vm802_vm1, %v6426_v26, 0.0  ;;  %v2041_v39 = vmul.f32 %v6426_v26, %v6426_v26 }
 0x303   :  { %v1954_v22 = vsel %vm802_vm1, %v6429_v21, 0.0  ;;  %v2044_v32 = vmul.f32 %v6429_v21, %v6429_v21  ;;  %v2111_v37 = vsel %vm802_vm1, %v2043_v0, 0.0 }
 0x304   :  { %1955 = vadd.xlane.f32.xlu0 %v1954_v22  ;;  %v1948_v30 = vsel %vm802_vm1, %v6434_v19, 0.0  ;;  %v2042_v58 = vmul.f32 %v6434_v19, %v6434_v19  ;;  %v2105_v56 = vsel %vm802_vm1, %v2041_v39, 0.0 }
 0x305   :  { %v2114_v49 = vsel %vm802_vm1, %v2044_v32, 0.0 }
 0x306   :  { %1946 = vadd.xlane.f32.xlu1 %v1945_v55  ;;  %v2108_v34 = vsel %vm802_vm1, %v2042_v58, 0.0 }
 0x308   :  { %1949 = vadd.xlane.f32.xlu0 %v1948_v30  ;;  %v4493_v17 = vpop.f32.mrb[36].mxu0 }
 0x309   :  { %v1850_v4 = vpop.f32.mrb[37].mxu0  ;;  %v6454_v38 = vadd.f32 %v4493_v17, %v6283_v61 }
 0x30a   :  { %2112 = vadd.xlane.f32.xlu1 %v2111_v37  ;;  %v4494_v50 = vpop.f32.mrb[38].mxu0  ;;  %v6466_v46 = vadd.f32 %v1850_v4, %v6283_v61 }
 0x30b   :  { %v1853_v11 = vpop.f32.mrb[39].mxu0  ;;  %v6460_v7 = vadd.f32 %v4494_v50, %v6283_v61  ;;  %v1963_v41 = vsel %vm802_vm1, %v6454_v38, 0.0  ;;  %v2047_v31 = vmul.f32 %v6454_v38, %v6454_v38 }
 0x30c   :  { %2115 = vadd.xlane.f32.xlu0 %v2114_v49  ;;  %v6471_v45 = vadd.f32 %v1853_v11, %v6283_v61  ;;  %v1957_v60 = vsel %vm802_vm1, %v6466_v46, 0.0  ;;  %v2045_v62 = vmul.f32 %v6466_v46, %v6466_v46 }
 0x30d   :  { %v1966_v13 = vsel %vm802_vm1, %v6460_v7, 0.0  ;;  %v2048_v3 = vmul.f32 %v6460_v7, %v6460_v7  ;;  %v2123_v14 = vsel %vm802_vm1, %v2047_v31, 0.0 }
 0x30e   :  { %2106 = vadd.xlane.f32.xlu1 %v2105_v56  ;;  %v1960_v9 = vsel %vm802_vm1, %v6471_v45, 0.0  ;;  %v2046_v55 = vmul.f32 %v6471_v45, %v6471_v45  ;;  %v2117_v0 = vsel %vm802_vm1, %v2045_v62, 0.0 }
 0x30f   :  { %v2126_v25 = vsel %vm802_vm1, %v2048_v3, 0.0 }
 0x310   :  { %2109 = vadd.xlane.f32.xlu0 %v2108_v34  ;;  %v2120_v32 = vsel %vm802_vm1, %v2046_v55, 0.0 }
 0x312   :  { %1964 = vadd.xlane.f32.xlu1 %v1963_v41  ;;  %v4497_v20 = vpop.f32.mrb[40].mxu0 }
 0x313   :  { %v1866_v28 = vpop.f32.mrb[41].mxu0  ;;  %v6486_v22 = vadd.f32 %v4497_v20, %v6283_v61 }
 0x314   :  { %1967 = vadd.xlane.f32.xlu0 %v1966_v13  ;;  %v4498_v24 = vpop.f32.mrb[42].mxu0  ;;  %v6498_v4 = vadd.f32 %v1866_v28, %v6283_v61 }
 0x315   :  { %v1869_v36 = vpop.f32.mrb[43].mxu0  ;;  %v6492_v30 = vadd.f32 %v4498_v24, %v6283_v61  ;;  %v1975_v17 = vsel %vm802_vm1, %v6486_v22, 0.0  ;;  %v2051_v56 = vmul.f32 %v6486_v22, %v6486_v22 }
 0x316   :  { %1958 = vadd.xlane.f32.xlu1 %v1957_v60  ;;  %v6503_v58 = vadd.f32 %v1869_v36, %v6283_v61  ;;  %v1969_v11 = vsel %vm802_vm1, %v6498_v4, 0.0  ;;  %v2049_v20 = vmul.f32 %v6498_v4, %v6498_v4 }
 0x317   :  { %v1978_v59 = vsel %vm802_vm1, %v6492_v30, 0.0  ;;  %v2052_v41 = vmul.f32 %v6492_v30, %v6492_v30  ;;  %v2135_v13 = vsel %vm802_vm1, %v2051_v56, 0.0 }
 0x318   :  { %1961 = vadd.xlane.f32.xlu0 %v1960_v9  ;;  %v1972_v34 = vsel %vm802_vm1, %v6503_v58, 0.0  ;;  %v2050_v31 = vmul.f32 %v6503_v58, %v6503_v58  ;;  %v2129_v24 = vsel %vm802_vm1, %v2049_v20, 0.0 }
 0x319   :  { %v2138_v28 = vsel %vm802_vm1, %v2052_v41, 0.0 }
 0x31a   :  { %2124 = vadd.xlane.f32.xlu1 %v2123_v14  ;;  %v2132_v9 = vsel %vm802_vm1, %v2050_v31, 0.0 }
 0x31c   :  { %2127 = vadd.xlane.f32.xlu0 %v2126_v25 }
 0x31e   :  { %2118 = vadd.xlane.f32.xlu1 %v2117_v0  ;;  %v4501_v37 = vpop.f32.mrb[44].mxu0 }
 0x31f   :  { %v1882_v39 = vpop.f32.mrb[45].mxu0  ;;  %v6518_v60 = vadd.f32 %v4501_v37, %v6283_v61 }
 0x320   :  { %2121 = vadd.xlane.f32.xlu0 %v2120_v32  ;;  %v4502_v50 = vpop.f32.mrb[46].mxu0  ;;  %v6530_v14 = vadd.f32 %v1882_v39, %v6283_v61 }
 0x321   :  { %v1885_v49 = vpop.f32.mrb[47].mxu0  ;;  %v6524_v36 = vadd.f32 %v4502_v50, %v6283_v61  ;;  %v1987_v3 = vsel %vm802_vm1, %v6518_v60, 0.0 }
 0x322   :  { %1976 = vadd.xlane.f32.xlu1 %v1975_v17  ;;  %v6535_v25 = vadd.f32 %v1885_v49, %v6283_v61  ;;  %v1981_v55 = vsel %vm802_vm1, %v6530_v14, 0.0  ;;  %v2053_v0 = vmul.f32 %v6530_v14, %v6530_v14  ;;  %v2055_v61 = vmul.f32 %v6518_v60, %v6518_v60 }
 0x323   :  { %v1990_v62 = vsel %vm802_vm1, %v6524_v36, 0.0  ;;  %v2056_v49 = vmul.f32 %v6524_v36, %v6524_v36 }
 0x324   :  { %1979 = vadd.xlane.f32.xlu0 %v1978_v59  ;;  %v1984_v32 = vsel %vm802_vm1, %v6535_v25, 0.0  ;;  %v2054_v17 = vmul.f32 %v6535_v25, %v6535_v25  ;;  %v2141_v39 = vsel %vm802_vm1, %v2053_v0, 0.0 }
 0x325   :  { %v2150_v20 = vsel %vm802_vm1, %v2056_v49, 0.0 }
 0x326   :  { %1970 = vadd.xlane.f32.xlu1 %v1969_v11  ;;  %v2144_v50 = vsel %vm802_vm1, %v2054_v17, 0.0 }
 0x328   :  { %1973 = vadd.xlane.f32.xlu0 %v1972_v34  ;;  %v2147_v34 = vsel %vm802_vm1, %v2055_v61, 0.0 }
 0x32a   :  { %2136 = vadd.xlane.f32.xlu1 %v2135_v13 }
 0x32c   :  { %2139 = vadd.xlane.f32.xlu0 %v2138_v28 }
 0x32e   :  { %2130 = vadd.xlane.f32.xlu1 %v2129_v24 }
 0x330   :  { %2133 = vadd.xlane.f32.xlu0 %v2132_v9 }
 0x332   :  { %1988 = vadd.xlane.f32.xlu1 %v1987_v3 }
 0x334   :  { %1991 = vadd.xlane.f32.xlu0 %v1990_v62  ;;  %v1905_v37 = vpop.xlane.xlu1 %1904 }
 0x335   :  { %v1995_v56 = vmul.f32 0.015625, %v1905_v37 }
 0x336   :  { %1982 = vadd.xlane.f32.xlu1 %v1981_v55  ;;  %v1908_v59 = vpop.xlane.xlu0 %1907 }
 0x337   :  { %v1996_v13 = vmul.f32 0.015625, %v1908_v59  ;;  %v2187_v31 = vmul.f32 %v1995_v56, %v1995_v56 }
 0x338   :  { %1985 = vadd.xlane.f32.xlu0 %v1984_v32  ;;  %v1899_v11 = vpop.xlane.xlu1 %1898 }
 0x339   :  { %v1993_v24 = vmul.f32 0.015625, %v1899_v11  ;;  %v2188_v55 = vmul.f32 %v1996_v13, %v1996_v13 }
 0x33a   :  { %2142 = vadd.xlane.f32.xlu1 %v2141_v39  ;;  %v1902_v41 = vpop.xlane.xlu0 %1901 }
 0x33b   :  { %v1994_v3 = vmul.f32 0.015625, %v1902_v41  ;;  %v2185_v39 = vmul.f32 %v1993_v24, %v1993_v24 }
 0x33c   :  { %2145 = vadd.xlane.f32.xlu0 %v2144_v50  ;;  %v2065_v28 = vpop.xlane.xlu1 %2064 }
 0x33d   :  { %v2155_v9 = vmul.f32 0.015625, %v2065_v28  ;;  %v2186_v63 = vmul.f32 %v1994_v3, %v1994_v3  ;;  %v2379_v28 = vsub.s32 5, %v8114_v33 }
 0x33e   :  { %2148 = vadd.xlane.f32.xlu1 %v2147_v34  ;;  %v2068_v62 = vpop.xlane.xlu0 %2067 }
 0x33f   :  { %v2219_v0 = vsub.f32 %v2155_v9, %v2187_v31  ;;  %v2156_v32 = vmul.f32 0.015625, %v2068_v62  ;;  %v2415_v9 = vsub.s32 6, %v8114_v33 }
 0x340   :  { %2151 = vadd.xlane.f32.xlu0 %v2150_v20  ;;  %v2059_v17 = vpop.xlane.xlu1 %2058 }
 0x341   :  { %v2283_v37 = vadd.f32 1e-05, %v2219_v0  ;;  %v2220_v50 = vsub.f32 %v2156_v32, %v2188_v55  ;;  %v2153_v61 = vmul.f32 0.015625, %v2059_v17  ;;  %v2251_v55 = vsub.f32 %v6286_v10, %v1995_v56 }
 0x342   :  { %v2062_v34 = vpop.xlane.xlu0 %2061  ;;  %v6557_v0 = vrot.slane %v6280_v29, %v2379_v28 }
 0x343   :  { %4746 = vrsqrt.f32 %v2283_v37  ;;  %v2284_v59 = vadd.f32 1e-05, %v2220_v50  ;;  %v2217_v49 = vsub.f32 %v2153_v61, %v2185_v39  ;;  %v2154_v54 = vmul.f32 0.015625, %v2062_v34 }
 0x344   :  { %v2252_v39 = vsub.f32 %v6292_v2, %v1996_v13  ;;  %v2249_v34 = vsub.f32 %v6289_v44, %v1993_v24 }
 0x345   :  { %4748 = vrsqrt.f32 %v2284_v59  ;;  %v2281_v20 = vadd.f32 1e-05, %v2217_v49  ;;  %v2218_v11 = vsub.f32 %v2154_v54, %v2186_v63  ;;  %v6561_v54 = vrot.slane %v6280_v29, %v2415_v9 }
 0x346   :  { %v2250_v49 = vsub.f32 %v6297_v23, %v1994_v3 }
 0x347   :  { %4750 = vrsqrt.f32 %v2281_v20  ;;  %v2282_v41 = vadd.f32 1e-05, %v2218_v11 }
 0x349   :  { %4752 = vrsqrt.f32 %v2282_v41 }
 0x34b   :  { %v1917_v31 = vpop.xlane.xlu1 %1916 }
 0x34c   :  { %v6563_v50 = vmul.f32 0.015625, %v1917_v31 }
 0x34d   :  { %v1920_v62 = vpop.xlane.xlu0 %1919  ;;  %v4747_v32 = vpop.eup %4746 }
 0x34e   :  { %v2347_v63 = vmul.f32 %v4747_v32, %v2251_v55  ;;  %v6568_v20 = vmul.f32 0.015625, %v1920_v62  ;;  %v2191_v44 = vmul.f32 %v6563_v50, %v6563_v50 }
 0x34f   :  { %v1911_v17 = vpop.xlane.xlu1 %1910  ;;  %v4749_v37 = vpop.eup %4748 }
 0x350   :  { %v2383_v59 = vmul.f32 %v6557_v0, %v2347_v63  ;;  %v2348_v10 = vmul.f32 %v4749_v37, %v2252_v39  ;;  %v6570_v11 = vmul.f32 0.015625, %v1911_v17  ;;  %v2192_v32 = vmul.f32 %v6568_v20, %v6568_v20 }
 0x351   :  { %v1914_v61 = vpop.xlane.xlu0 %1913  ;;  %v4751_v56 = vpop.eup %4750 }
 0x352   :  { %v6573_v29 = vadd.f32 %v6561_v54, %v2383_v59  ;;  %v2384_v13 = vmul.f32 %v6557_v0, %v2348_v10  ;;  %v2345_v41 = vmul.f32 %v4751_v56, %v2249_v34  ;;  %v6578_v24 = vmul.f32 0.015625, %v1914_v61 }
 0x353   :  { %v2077_v2 = vpop.xlane.xlu1 %2076  ;;  %v4753_v31 = vpop.eup %4752  ;;  %v2189_v17 = vmul.f32 %v6570_v11, %v6570_v11 }
 0x354   :  { %v2159_v28 = vmul.f32 0.015625, %v2077_v2  ;;  %v2483_v23 = vmul.f32 %v6573_v29, %v6573_v29  ;;  %v6583_v3 = vadd.f32 %v6561_v54, %v2384_v13  ;;  %v2381_v62 = vmul.f32 %v6557_v0, %v2345_v41 }
 0x355   :  { %v2080_v9 = vpop.xlane.xlu0 %2079  ;;  %v2346_v55 = vmul.f32 %v4753_v31, %v2250_v49  ;;  %v2190_v41 = vmul.f32 %v6578_v24, %v6578_v24 }
 0x356   :  { %v2223_v39 = vsub.f32 %v2159_v28, %v2191_v44  ;;  %v2160_v63 = vmul.f32 0.015625, %v2080_v9  ;;  %v2484_v61 = vmul.f32 %v6583_v3, %v6583_v3  ;;  %v6594_v10 = vadd.f32 %v6561_v54, %v2381_v62 }
 0x357   :  { %v2071_v37 = vpop.xlane.xlu1 %2070  ;;  %v2382_v34 = vmul.f32 %v6557_v0, %v2346_v55  ;;  %v2515_v13 = vmul.f32 %v2483_v23, %v6573_v29 }
 0x358   :  { %v2157_v59 = vmul.f32 0.015625, %v2071_v37  ;;  %v2287_v56 = vadd.f32 1e-05, %v2223_v39  ;;  %v2224_v49 = vsub.f32 %v2160_v63, %v2192_v32  ;;  %v2481_v55 = vmul.f32 %v6594_v10, %v6594_v10 }
 0x359   :  { %v2074_v2 = vpop.xlane.xlu0 %2073  ;;  %v2418_v44 = vadd.f32 %v6561_v54, %v2382_v34  ;;  %v2516_v62 = vmul.f32 %v2484_v61, %v6583_v3  ;;  %v2547_v63 = vmul.f32 0.044715, %v2515_v13  ;;  %v2255_v13 = vsub.f32 %v6318_v43, %v6563_v50 }
 0x35a   :  { %v2221_v28 = vsub.f32 %v2157_v59, %v2189_v17  ;;  %v2158_v31 = vmul.f32 0.015625, %v2074_v2  ;;  %4754 = vrsqrt.f32 %v2287_v56  ;;  %v2288_v9 = vadd.f32 1e-05, %v2224_v49 }
 0x35b   :  { %v2482_v32 = vmul.f32 %v2418_v44, %v2418_v44  ;;  %v2513_v23 = vmul.f32 %v2481_v55, %v6594_v10  ;;  %v2548_v15 = vmul.f32 0.044715, %v2516_v62  ;;  %v2579_v34 = vadd.f32 %v2547_v63, %v6573_v29 }
 0x35c   :  { %v2285_v37 = vadd.f32 1e-05, %v2221_v28  ;;  %v2222_v39 = vsub.f32 %v2158_v31, %v2190_v41  ;;  %4756 = vrsqrt.f32 %v2288_v9  ;;  %v2254_v43 = vsub.f32 %v6329_v12, %v6578_v24 }
 0x35d   :  { %v2514_v59 = vmul.f32 %v2482_v32, %v2418_v44  ;;  %v2545_v2 = vmul.f32 0.044715, %v2513_v23  ;;  %v2580_v56 = vadd.f32 %v2548_v15, %v6583_v3  ;;  %v2611_v28 = vmul.f32 0.7978846, %v2579_v34 }
 0x35e   :  { %4758 = vrsqrt.f32 %v2285_v37  ;;  %v2286_v17 = vadd.f32 1e-05, %v2222_v39  ;;  %v2256_v37 = vsub.f32 %v6324_v18, %v6568_v20  ;;  %v2253_v23 = vsub.f32 %v6321_v40, %v6570_v11 }
 0x35f   :  { %v2546_v49 = vmul.f32 0.044715, %v2514_v59  ;;  %v2577_v61 = vadd.f32 %v2545_v2, %v6594_v10  ;;  %v2612_v41 = vmul.f32 0.7978846, %v2580_v56  ;;  %v2451_v12 = vmul.f32 0.5, %v6573_v29 }
 0x360   :  { %4760 = vrsqrt.f32 %v2286_v17  ;;  %v2452_v24 = vmul.f32 0.5, %v6583_v3 }
 0x361   :  { %v2578_v31 = vadd.f32 %v2546_v49, %v2418_v44  ;;  %v2609_v9 = vmul.f32 0.7978846, %v2577_v61  ;;  %4762 = vtanh.f32 %v2611_v28 }
 0x362   :  { %4764 = vtanh.f32 %v2612_v41 }
 0x363   :  { %v2610_v55 = vmul.f32 0.7978846, %v2578_v31  ;;  %4766 = vtanh.f32 %v2609_v9 }
 0x364   :  { %v4755_v62 = vpop.eup %4754 }
 0x365   :  { %v2351_v15 = vmul.f32 %v4755_v62, %v2255_v13  ;;  %4768 = vtanh.f32 %v2610_v55  ;;  %v2449_v55 = vmul.f32 0.5, %v6594_v10  ;;  %v2450_v62 = vmul.f32 0.5, %v2418_v44 }
 0x366   :  { %v1929_v39 = vpop.xlane.xlu1 %1928  ;;  %v4757_v32 = vpop.eup %4756 }
 0x367   :  { %v2387_v17 = vmul.f32 %v6557_v0, %v2351_v15  ;;  %v2352_v59 = vmul.f32 %v4757_v32, %v2256_v37  ;;  %v6616_v56 = vmul.f32 0.015625, %v1929_v39 }
 0x368   :  { %v4759_v63 = vpop.eup %4758  ;;  %v1932_v2 = vpop.xlane.xlu0 %1931 }
 0x369   :  { %v2349_v50 = vmul.f32 %v4759_v63, %v2253_v23  ;;  %v6618_v18 = vmul.f32 0.015625, %v1932_v2  ;;  %v2388_v49 = vmul.f32 %v6557_v0, %v2352_v59  ;;  %v6623_v11 = vadd.f32 %v6561_v54, %v2387_v17 }
 0x36a   :  { %v4761_v34 = vpop.eup %4760  ;;  %v1923_v20 = vpop.xlane.xlu1 %1922  ;;  %v2195_v15 = vmul.f32 %v6616_v56, %v6616_v56 }
 0x36b   :  { %v2385_v61 = vmul.f32 %v6557_v0, %v2349_v50  ;;  %v2350_v40 = vmul.f32 %v4761_v34, %v2254_v43  ;;  %v6625_v28 = vmul.f32 0.015625, %v1923_v20  ;;  %v4763_v31 = vpop.eup %4762  ;;  %v2196_v39 = vmul.f32 %v6618_v18, %v6618_v18 }
 0x36c   :  { %v1926_v41 = vpop.xlane.xlu0 %1925  ;;  %v4765_v37 = vpop.eup %4764  ;;  %v2675_v23 = vadd.f32 1.0, %v4763_v31  ;;  %v6641_v59 = vadd.f32 %v6561_v54, %v2388_v49  ;;  %v2487_v10 = vmul.f32 %v6623_v11, %v6623_v11 }
 0x36d   :  { %v2386_v9 = vmul.f32 %v6557_v0, %v2350_v40  ;;  %v6630_v13 = vmul.f32 0.015625, %v1926_v41  ;;  %v6638_v29 = vadd.f32 %v6561_v54, %v2385_v61  ;;  %v4767_v3 = vpop.eup %4766  ;;  %v2676_v17 = vadd.f32 1.0, %v4765_v37 }
 0x36e   :  { %v2089_v32 = vpop.xlane.xlu1 %2088  ;;  %v2193_v2 = vmul.f32 %v6625_v28, %v6625_v28  ;;  %v2673_v34 = vadd.f32 1.0, %v4767_v3 }
 0x36f   :  { %v2163_v63 = vmul.f32 0.015625, %v2089_v32  ;;  %v4769_v44 = vpop.eup %4768  ;;  %v2194_v43 = vmul.f32 %v6630_v13, %v6630_v13  ;;  %v6650_v20 = vadd.f32 %v6561_v54, %v2386_v9  ;;  %v2708_v49 = vmul.f32 %v2676_v17, %v2452_v24 }
 0x370   :  { %v2092_v50 = vpop.xlane.xlu0 %2091  ;;  %v2674_v41 = vadd.f32 1.0, %v4769_v44  ;;  %v2705_v37 = vmul.f32 %v2673_v34, %v2449_v55  ;;  %v2707_v32 = vmul.f32 %v2675_v23, %v2451_v12  ;;  %v2485_v52 = vmul.f32 %v6638_v29, %v6638_v29 }
 0x371   :  { %v2227_v61 = vsub.f32 %v2163_v63, %v2195_v15  ;;  %v2164_v40 = vmul.f32 0.015625, %v2092_v50  ;;  %v2486_v16 = vmul.f32 %v6650_v20, %v6650_v20  ;;  %v2488_v24 = vmul.f32 %v6641_v59, %v6641_v59 }
 0x372   :  { %v2083_v31 = vpop.xlane.xlu1 %2082  ;;  %v2706_v3 = vmul.f32 %v2674_v41, %v2450_v62  ;;  %v2738_v9 = vpack.c.bf16 %v2708_v49, %v2707_v32  ;;  %v2517_v15 = vmul.f32 %v2485_v52, %v6638_v29 }
 0x373   :  { %v2291_v42 = vadd.f32 1e-05, %v2227_v61  ;;  %v2228_v8 = vsub.f32 %v2164_v40, %v2196_v39  ;;  %v2161_v27 = vmul.f32 0.015625, %v2083_v31  ;;  %v2518_v63 = vmul.f32 %v2486_v16, %v6650_v20 }
 0x374   :  { %v2086_v33 = vpop.xlane.xlu0 %2085  ;;  %v2737_v17 = vpack.c.bf16 %v2706_v3, %v2705_v37  ;;  %v2549_v44 = vmul.f32 0.044715, %v2517_v15  ;;  %v2519_v39 = vmul.f32 %v2487_v10, %v6623_v11  ;;  %v2520_v61 = vmul.f32 %v2488_v24, %v6641_v59 }
 0x375   :  { %4770 = vrsqrt.f32 %v2291_v42  ;;  %v2292_v12 = vadd.f32 1e-05, %v2228_v8  ;;  %v2225_v55 = vsub.f32 %v2161_v27, %v2193_v2  ;;  %v2162_v23 = vmul.f32 0.015625, %v2086_v33 }
 0x376   :  { %v2550_v50 = vmul.f32 0.044715, %v2518_v63  ;;  %4511 = vmatprep.mubr.msk.bf16.mxu1 %vm802_vm1, %v2737_v17  ;;  %v2581_v16 = vadd.f32 %v2549_v44, %v6638_v29  ;;  %v2551_v42 = vmul.f32 0.044715, %v2519_v39  ;;  %v2552_v8 = vmul.f32 0.044715, %v2520_v61 }
 0x377   :  { %4772 = vrsqrt.f32 %v2292_v12  ;;  %v2289_v62 = vadd.f32 1e-05, %v2225_v55  ;;  %v2226_v34 = vsub.f32 %v2162_v23, %v2194_v43  ;;  %4512 = vmatmul.mubr.msk.bf16.vlgmr.msra.gmra.mrb[48].mxu1 %vm802_vm1, %v2738_v9  ;;  %v2259_v37 = vsub.f32 %v6353_v48, %v6616_v56 }
 0x378   :  { %v2582_v52 = vadd.f32 %v2550_v50, %v6650_v20  ;;  %v2613_v33 = vmul.f32 0.7978846, %v2581_v16  ;;  %v2583_v10 = vadd.f32 %v2551_v42, %v6623_v11  ;;  %v2584_v40 = vadd.f32 %v2552_v8, %v6641_v59 }
 0x379   :  { %4774 = vrsqrt.f32 %v2289_v62  ;;  %v2290_v27 = vadd.f32 1e-05, %v2226_v34  ;;  %v2260_v9 = vsub.f32 %v6359_v35, %v6618_v18  ;;  %v2257_v23 = vsub.f32 %v6356_v1, %v6625_v28 }
 0x37a   :  { %v2614_v2 = vmul.f32 0.7978846, %v2582_v52  ;;  %v2615_v41 = vmul.f32 0.7978846, %v2583_v10  ;;  %v2616_v31 = vmul.f32 0.7978846, %v2584_v40  ;;  %v2258_v62 = vsub.f32 %v6367_v53, %v6630_v13 }
 0x37b   :  { %4776 = vrsqrt.f32 %v2290_v27  ;;  %v1941_v43 = vpop.xlane.xlu1 %1940  ;;  %v2455_v48 = vmul.f32 0.5, %v6623_v11  ;;  %v2456_v18 = vmul.f32 0.5, %v6641_v59  ;;  %v2453_v42 = vmul.f32 0.5, %v6638_v29 }
 0x37c   :  { %4778 = vtanh.f32 %v2613_v33  ;;  %v6672_v63 = vmul.f32 0.015625, %v1941_v43  ;;  %v2454_v27 = vmul.f32 0.5, %v6650_v20 }
 0x37d   :  { %v1944_v49 = vpop.xlane.xlu0 %1943  ;;  %4780 = vtanh.f32 %v2614_v2 }
 0x37e   :  { %4782 = vtanh.f32 %v2615_v41  ;;  %v6674_v12 = vmul.f32 0.015625, %v1944_v49  ;;  %v2199_v1 = vmul.f32 %v6672_v63, %v6672_v63 }
 0x37f   :  { %v4771_v32 = vpop.eup %4770  ;;  %v1935_v3 = vpop.xlane.xlu1 %1934  ;;  %4784 = vtanh.f32 %v2616_v31 }
 0x380   :  { %v2355_v15 = vmul.f32 %v4771_v32, %v2259_v37  ;;  %v6680_v50 = vmul.f32 0.015625, %v1935_v3  ;;  %v2200_v16 = vmul.f32 %v6674_v12, %v6674_v12 }
 0x381   :  { %v4773_v24 = vpop.eup %4772  ;;  %v1938_v55 = vpop.xlane.xlu0 %1937 }
 0x382   :  { %v2356_v17 = vmul.f32 %v4773_v24, %v2260_v9  ;;  %v2391_v44 = vmul.f32 %v6557_v0, %v2355_v15  ;;  %v6682_v39 = vmul.f32 0.015625, %v1938_v55  ;;  %v2197_v10 = vmul.f32 %v6680_v50, %v6680_v50 }
 0x383   :  { %v4775_v56 = vpop.eup %4774  ;;  %v2101_v35 = vpop.xlane.xlu1 %2100 }
 0x384   :  { %v2353_v34 = vmul.f32 %v4775_v56, %v2257_v23  ;;  %v2167_v28 = vmul.f32 0.015625, %v2101_v35  ;;  %v2392_v11 = vmul.f32 %v6557_v0, %v2356_v17  ;;  %v2198_v43 = vmul.f32 %v6682_v39, %v6682_v39 }
 0x385   :  { %v4777_v61 = vpop.eup %4776  ;;  %v2104_v52 = vpop.xlane.xlu0 %2103  ;;  %v2427_v49 = vadd.f32 %v6561_v54, %v2391_v44 }
 0x386   :  { %v4779_v59 = vpop.eup %4778  ;;  %v2389_v8 = vmul.f32 %v6557_v0, %v2353_v34  ;;  %v2354_v53 = vmul.f32 %v4777_v61, %v2258_v62  ;;  %v2231_v13 = vsub.f32 %v2167_v28, %v2199_v1  ;;  %v2168_v33 = vmul.f32 0.015625, %v2104_v52 }
 0x387   :  { %v4781_v2 = vpop.eup %4780  ;;  %v2095_v40 = vpop.xlane.xlu1 %2094  ;;  %v2677_v41 = vadd.f32 1.0, %v4779_v59  ;;  %v2428_v23 = vadd.f32 %v6561_v54, %v2392_v11 }
 0x388   :  { %v4783_v29 = vpop.eup %4782  ;;  %v2390_v20 = vmul.f32 %v6557_v0, %v2354_v53  ;;  %v2295_v31 = vadd.f32 1e-05, %v2231_v13  ;;  %v2232_v37 = vsub.f32 %v2168_v33, %v2200_v16  ;;  %v2165_v32 = vmul.f32 0.015625, %v2095_v40 }
 0x389   :  { %v4785_v3 = vpop.eup %4784  ;;  %v2098_v9 = vpop.xlane.xlu0 %2097  ;;  %v2678_v15 = vadd.f32 1.0, %v4781_v2  ;;  %v2679_v24 = vadd.f32 1.0, %v4783_v29  ;;  %v2425_v55 = vadd.f32 %v6561_v54, %v2389_v8  ;;  %v2709_v62 = vmul.f32 %v2677_v41, %v2453_v42 }
 0x38a   :  { %4786 = vrsqrt.f32 %v2295_v31  ;;  %v2296_v17 = vadd.f32 1e-05, %v2232_v37  ;;  %v2229_v56 = vsub.f32 %v2165_v32, %v2197_v10  ;;  %v2166_v35 = vmul.f32 0.015625, %v2098_v9 }
 0x38b   :  { %v2710_v44 = vmul.f32 %v2678_v15, %v2454_v27  ;;  %v2680_v34 = vadd.f32 1.0, %v4785_v3  ;;  %v2426_v1 = vadd.f32 %v6561_v54, %v2390_v20  ;;  %v2491_v16 = vmul.f32 %v2427_v49, %v2427_v49 }
 0x38c   :  { %4788 = vrsqrt.f32 %v2296_v17  ;;  %v2293_v28 = vadd.f32 1e-05, %v2229_v56  ;;  %v2230_v61 = vsub.f32 %v2166_v35, %v2198_v43  ;;  %v2711_v59 = vmul.f32 %v2679_v24, %v2455_v48 }
 0x38d   :  { %v2739_v52 = vpack.c.bf16 %v2710_v44, %v2709_v62  ;;  %v2712_v53 = vmul.f32 %v2680_v34, %v2456_v18  ;;  %v2489_v13 = vmul.f32 %v2425_v55, %v2425_v55  ;;  %v2490_v33 = vmul.f32 %v2426_v1, %v2426_v1 }
 0x38e   :  { %4790 = vrsqrt.f32 %v2293_v28  ;;  %v2294_v8 = vadd.f32 1e-05, %v2230_v61  ;;  %v2492_v27 = vmul.f32 %v2428_v23, %v2428_v23  ;;  %v2523_v41 = vmul.f32 %v2491_v16, %v2427_v49 }
 0x38f   :  { %v1953_v11 = vpop.xlane.xlu1 %1952  ;;  %4515 = vmatprep.mubr.msk.bf16.mxu1 %vm802_vm1, %v2739_v52  ;;  %v2740_v2 = vpack.c.bf16 %v2712_v53, %v2711_v59  ;;  %v2521_v42 = vmul.f32 %v2489_v13, %v2425_v55  ;;  %v2522_v40 = vmul.f32 %v2490_v33, %v2426_v1  ;;  %v2263_v43 = vsub.f32 %v6388_v6, %v6672_v63 }
 0x390   :  { %4792 = vrsqrt.f32 %v2294_v8  ;;  %v2264_v48 = vsub.f32 %v6394_v5, %v6674_v12  ;;  %v2261_v29 = vsub.f32 %v6391_v51, %v6680_v50  ;;  %v2524_v37 = vmul.f32 %v2492_v27, %v2428_v23 }
 0x391   :  { %v1956_v10 = vpop.xlane.xlu0 %1955  ;;  %4516 = vmatmul.mubr.msk.bf16.gmra.mrb[52].mxu1 %vm802_vm1, %v2740_v2  ;;  %v2553_v18 = vmul.f32 0.044715, %v2521_v42  ;;  %v2554_v31 = vmul.f32 0.044715, %v2522_v40  ;;  %v2555_v32 = vmul.f32 0.044715, %v2523_v41  ;;  %v2262_v3 = vsub.f32 %v6402_v57, %v6682_v39 }
 0x392   :  { %v6714_v9 = vmul.f32 0.015625, %v1953_v11  ;;  %v6716_v15 = vmul.f32 0.015625, %v1956_v10  ;;  %v6718_v24 = vmul.f32 0.5, %v2427_v49  ;;  %v2556_v17 = vmul.f32 0.044715, %v2524_v37 }
 0x393   :  { %v1947_v20 = vpop.xlane.xlu1 %1946  ;;  %v2585_v6 = vadd.f32 %v2553_v18, %v2425_v55  ;;  %v2586_v12 = vadd.f32 %v2554_v31, %v2426_v1  ;;  %v2587_v56 = vadd.f32 %v2555_v32, %v2427_v49  ;;  %v6722_v35 = vmul.f32 0.5, %v2425_v55 }
 0x394   :  { %v4787_v63 = vpop.eup %4786  ;;  %v6720_v50 = vmul.f32 0.015625, %v1947_v20  ;;  %v6724_v62 = vmul.f32 0.5, %v2426_v1  ;;  %v2588_v28 = vadd.f32 %v2556_v17, %v2428_v23  ;;  %v2203_v52 = vmul.f32 %v6714_v9, %v6714_v9 }
 0x395   :  { %v1950_v5 = vpop.xlane.xlu0 %1949  ;;  %v2359_v51 = vmul.f32 %v4787_v63, %v2263_v43  ;;  %v2617_v44 = vmul.f32 0.7978846, %v2585_v6  ;;  %v2618_v34 = vmul.f32 0.7978846, %v2586_v12  ;;  %v2619_v61 = vmul.f32 0.7978846, %v2587_v56 }
 0x396   :  { %v4789_v57 = vpop.eup %4788  ;;  %v2204_v49 = vmul.f32 %v6716_v15, %v6716_v15  ;;  %v6730_v59 = vmul.f32 0.5, %v2428_v23  ;;  %v2620_v8 = vmul.f32 0.7978846, %v2588_v28  ;;  %v2201_v27 = vmul.f32 %v6720_v50, %v6720_v50 }
 0x397   :  { %v2113_v39 = vpop.xlane.xlu1 %2112  ;;  %v2360_v16 = vmul.f32 %v4789_v57, %v2264_v48  ;;  %v2395_v55 = vmul.f32 %v6557_v0, %v2359_v51  ;;  %4794 = vtanh.f32 %v2617_v44  ;;  %v6736_v10 = vmul.f32 0.015625, %v1950_v5 }
 0x398   :  { %v4791_v53 = vpop.eup %4790  ;;  %v2171_v1 = vmul.f32 0.015625, %v2113_v39  ;;  %4796 = vtanh.f32 %v2618_v34  ;;  %v2268_v57 = vsub.f32 %v6429_v21, %v6716_v15  ;;  %v2265_v44 = vsub.f32 %v6426_v26, %v6720_v50 }
 0x399   :  { %v2116_v13 = vpop.xlane.xlu0 %2115  ;;  %v2396_v11 = vmul.f32 %v6557_v0, %v2360_v16  ;;  %v2357_v33 = vmul.f32 %v4791_v53, %v2261_v29  ;;  %4798 = vtanh.f32 %v2619_v61  ;;  %v6740_v29 = vadd.f32 %v6561_v54, %v2395_v55 }
 0x39a   :  { %v2172_v2 = vmul.f32 0.015625, %v2116_v13  ;;  %v4793_v42 = vpop.eup %4792  ;;  %v2235_v23 = vsub.f32 %v2171_v1, %v2203_v52  ;;  %4800 = vtanh.f32 %v2620_v8  ;;  %v2202_v12 = vmul.f32 %v6736_v10, %v6736_v10 }
 0x39b   :  { %v2107_v40 = vpop.xlane.xlu1 %2106  ;;  %v2393_v41 = vmul.f32 %v6557_v0, %v2357_v33  ;;  %v2358_v43 = vmul.f32 %v4793_v42, %v2262_v3  ;;  %v6743_v37 = vadd.f32 %v6561_v54, %v2396_v11  ;;  %v2267_v3 = vsub.f32 %v6423_v47, %v6714_v9 }
 0x39c   :  { %v2236_v48 = vsub.f32 %v2172_v2, %v2204_v49  ;;  %v2169_v18 = vmul.f32 0.015625, %v2107_v40  ;;  %v2299_v20 = vadd.f32 1e-05, %v2235_v23  ;;  %v2266_v34 = vsub.f32 %v6434_v19, %v6736_v10 }
 0x39d   :  { %v2110_v31 = vpop.xlane.xlu0 %2109  ;;  %v2429_v32 = vadd.f32 %v6561_v54, %v2393_v41  ;;  %v2394_v6 = vmul.f32 %v6557_v0, %v2358_v43  ;;  %v6761_v16 = vmul.f32 0.5, %v6740_v29  ;;  %v6764_v52 = vmul.f32 0.5, %v6743_v37 }
 0x39e   :  { %v2300_v63 = vadd.f32 1e-05, %v2236_v48  ;;  %v2233_v5 = vsub.f32 %v2169_v18, %v2201_v27  ;;  %4802 = vrsqrt.f32 %v2299_v20  ;;  %v2170_v17 = vmul.f32 0.015625, %v2110_v31 }
 0x39f   :  { %v1965_v56 = vpop.xlane.xlu1 %1964  ;;  %v2430_v51 = vadd.f32 %v6561_v54, %v2394_v6  ;;  %v2493_v28 = vmul.f32 %v2429_v32, %v2429_v32  ;;  %v2495_v50 = vmul.f32 %v6740_v29, %v6740_v29  ;;  %v6772_v11 = vmul.f32 0.5, %v2429_v32 }
 0x3a0   :  { %4804 = vrsqrt.f32 %v2300_v63  ;;  %v2297_v39 = vadd.f32 1e-05, %v2233_v5  ;;  %v2234_v47 = vsub.f32 %v2170_v17, %v2202_v12  ;;  %v6758_v61 = vmul.f32 0.015625, %v1965_v56 }
 0x3a1   :  { %v1968_v9 = vpop.xlane.xlu0 %1967  ;;  %v4795_v21 = vpop.eup %4794  ;;  %v2494_v53 = vmul.f32 %v2430_v51, %v2430_v51  ;;  %v2525_v26 = vmul.f32 %v2493_v28, %v2429_v32  ;;  %v2496_v48 = vmul.f32 %v6743_v37, %v6743_v37 }
 0x3a2   :  { %4806 = vrsqrt.f32 %v2297_v39  ;;  %v2298_v15 = vadd.f32 1e-05, %v2234_v47  ;;  %v4797_v55 = vpop.eup %4796  ;;  %v6768_v1 = vmul.f32 0.015625, %v1968_v9  ;;  %v2681_v8 = vadd.f32 1.0, %v4795_v21 }
 0x3a3   :  { %v1959_v49 = vpop.xlane.xlu1 %1958  ;;  %v4799_v33 = vpop.eup %4798  ;;  %v2682_v42 = vadd.f32 1.0, %v4797_v55  ;;  %v2526_v27 = vmul.f32 %v2494_v53, %v2430_v51  ;;  %v2557_v23 = vmul.f32 0.044715, %v2525_v26  ;;  %v2207_v40 = vmul.f32 %v6758_v61, %v6758_v61 }
 0x3a4   :  { %v6770_v13 = vmul.f32 0.015625, %v1959_v49  ;;  %4808 = vrsqrt.f32 %v2298_v15  ;;  %v2271_v41 = vsub.f32 %v6454_v38, %v6758_v61  ;;  %v2713_v43 = vmul.f32 %v2681_v8, %v6722_v35  ;;  %v4801_v18 = vpop.eup %4800 }
 0x3a5   :  { %v1962_v2 = vpop.xlane.xlu0 %1961  ;;  %v2714_v31 = vmul.f32 %v2682_v42, %v6724_v62  ;;  %v2683_v6 = vadd.f32 1.0, %v4799_v33  ;;  %v2558_v63 = vmul.f32 0.044715, %v2526_v27  ;;  %v2589_v5 = vadd.f32 %v2557_v23, %v2429_v32 }
 0x3a6   :  { %v2208_v12 = vmul.f32 %v6768_v1, %v6768_v1  ;;  %v2684_v56 = vadd.f32 1.0, %v4801_v18  ;;  %v6784_v39 = vmul.f32 0.5, %v2430_v51  ;;  %v2205_v35 = vmul.f32 %v6770_v13, %v6770_v13 }
 0x3a7   :  { %v2125_v20 = vpop.xlane.xlu1 %2124  ;;  %v2741_v28 = vpack.c.bf16 %v2714_v31, %v2713_v43  ;;  %v2590_v21 = vadd.f32 %v2558_v63, %v2430_v51  ;;  %v2621_v15 = vmul.f32 0.7978846, %v2589_v5  ;;  %v6788_v62 = vmul.f32 0.015625, %v1962_v2 }
 0x3a8   :  { %v2175_v17 = vmul.f32 0.015625, %v2125_v20  ;;  %v4803_v47 = vpop.eup %4802  ;;  %v2716_v26 = vmul.f32 %v2684_v56, %v6730_v59  ;;  %v2715_v33 = vmul.f32 %v2683_v6, %v6718_v24  ;;  %v2269_v19 = vsub.f32 %v6466_v46, %v6770_v13 }
 0x3a9   :  { %v2128_v9 = vpop.xlane.xlu0 %2127  ;;  %v2363_v55 = vmul.f32 %v4803_v47, %v2267_v3  ;;  %4519 = vmatprep.mubr.msk.bf16.mxu1 %vm802_vm1, %v2741_v28  ;;  %v2622_v42 = vmul.f32 0.7978846, %v2590_v21  ;;  %4810 = vtanh.f32 %v2621_v15  ;;  %v2206_v59 = vmul.f32 %v6788_v62, %v6788_v62 }
 0x3aa   :  { %v4805_v49 = vpop.eup %4804  ;;  %v2239_v53 = vsub.f32 %v2175_v17, %v2207_v40  ;;  %v2176_v32 = vmul.f32 0.015625, %v2128_v9  ;;  %v2742_v31 = vpack.c.bf16 %v2716_v26, %v2715_v33  ;;  %v2527_v40 = vmul.f32 %v2495_v50, %v6740_v29 }
 0x3ab   :  { %v2119_v8 = vpop.xlane.xlu1 %2118  ;;  %v2364_v23 = vmul.f32 %v4805_v49, %v2268_v57  ;;  %4812 = vtanh.f32 %v2622_v42  ;;  %v2399_v6 = vmul.f32 %v6557_v0, %v2363_v55 }
 0x3ac   :  { %v4807_v27 = vpop.eup %4806  ;;  %v2303_v43 = vadd.f32 1e-05, %v2239_v53  ;;  %v2240_v51 = vsub.f32 %v2176_v32, %v2208_v12  ;;  %v2173_v18 = vmul.f32 0.015625, %v2119_v8  ;;  %4520 = vmatmul.mubr.msk.bf16.gmra.mrb[56].mxu1 %vm802_vm1, %v2742_v31  ;;  %v2559_v28 = vmul.f32 0.044715, %v2527_v40 }
 0x3ad   :  { %v2361_v20 = vmul.f32 %v4807_v27, %v2265_v44  ;;  %v2122_v2 = vpop.xlane.xlu0 %2121  ;;  %v2528_v44 = vmul.f32 %v2496_v48, %v6743_v37  ;;  %v2400_v17 = vmul.f32 %v6557_v0, %v2364_v23  ;;  %v2272_v48 = vsub.f32 %v6460_v7, %v6768_v1 }
 0x3ae   :  { %4814 = vrsqrt.f32 %v2303_v43  ;;  %v2304_v3 = vadd.f32 1e-05, %v2240_v51  ;;  %v2237_v63 = vsub.f32 %v2173_v18, %v2205_v35  ;;  %v4809_v24 = vpop.eup %4808  ;;  %v2174_v5 = vmul.f32 0.015625, %v2122_v2 }
 0x3af   :  { %v2397_v57 = vmul.f32 %v6557_v0, %v2361_v20  ;;  %v1977_v12 = vpop.xlane.xlu1 %1976  ;;  %v2362_v50 = vmul.f32 %v4809_v24, %v2266_v34  ;;  %v2560_v21 = vmul.f32 0.044715, %v2528_v44  ;;  %v2591_v53 = vadd.f32 %v2559_v28, %v6740_v29 }
 0x3b0   :  { %4816 = vrsqrt.f32 %v2304_v3  ;;  %v2301_v56 = vadd.f32 1e-05, %v2237_v63  ;;  %v2238_v35 = vsub.f32 %v2174_v5, %v2206_v59  ;;  %v6810_v49 = vmul.f32 0.015625, %v1977_v12 }
 0x3b1   :  { %v6805_v47 = vadd.f32 %v6561_v54, %v2397_v57  ;;  %v1980_v9 = vpop.xlane.xlu0 %1979  ;;  %v2398_v15 = vmul.f32 %v6557_v0, %v2362_v50  ;;  %v2592_v32 = vadd.f32 %v2560_v21, %v6743_v37  ;;  %v6817_v26 = vadd.f32 %v6561_v54, %v2399_v6 }
 0x3b2   :  { %4818 = vrsqrt.f32 %v2301_v56  ;;  %v2302_v10 = vadd.f32 1e-05, %v2238_v35  ;;  %v2270_v7 = vsub.f32 %v6471_v45, %v6788_v62  ;;  %v6824_v1 = vmul.f32 0.015625, %v1980_v9 }
 0x3b3   :  { %v1971_v34 = vpop.xlane.xlu1 %1970  ;;  %v6820_v55 = vadd.f32 %v6561_v54, %v2398_v15  ;;  %v4811_v8 = vpop.eup %4810  ;;  %v6827_v46 = vadd.f32 %v6561_v54, %v2400_v17  ;;  %v2623_v29 = vmul.f32 0.7978846, %v2591_v53  ;;  %v2497_v37 = vmul.f32 %v6805_v47, %v6805_v47 }
 0x3b4   :  { %4820 = vrsqrt.f32 %v2302_v10  ;;  %v2211_v33 = vmul.f32 %v6810_v49, %v6810_v49  ;;  %v2275_v42 = vsub.f32 %v6486_v22, %v6810_v49  ;;  %v6835_v27 = vmul.f32 0.015625, %v1971_v34 }
 0x3b5   :  { %v1974_v13 = vpop.xlane.xlu0 %1973  ;;  %v2685_v45 = vadd.f32 1.0, %v4811_v8  ;;  %v4813_v62 = vpop.eup %4812  ;;  %v2624_v43 = vmul.f32 0.7978846, %v2592_v32  ;;  %4822 = vtanh.f32 %v2623_v29  ;;  %v6838_v51 = vmul.f32 0.5, %v6805_v47 }
 0x3b6   :  { %v2498_v18 = vmul.f32 %v6820_v55, %v6820_v55  ;;  %v2212_v2 = vmul.f32 %v6824_v1, %v6824_v1  ;;  %v2276_v31 = vsub.f32 %v6492_v30, %v6824_v1  ;;  %v2686_v59 = vadd.f32 1.0, %v4813_v62 }
 0x3b7   :  { %v2137_v23 = vpop.xlane.xlu1 %2136  ;;  %v6846_v3 = vmul.f32 0.015625, %v1974_v13  ;;  %v2717_v24 = vmul.f32 %v2685_v45, %v6772_v11  ;;  %4824 = vtanh.f32 %v2624_v43  ;;  %v2529_v6 = vmul.f32 %v2497_v37, %v6805_v47 }
 0x3b8   :  { %v4815_v20 = vpop.eup %4814  ;;  %v2179_v40 = vmul.f32 0.015625, %v2137_v23  ;;  %v2718_v44 = vmul.f32 %v2686_v59, %v6784_v39  ;;  %v2530_v17 = vmul.f32 %v2498_v18, %v6820_v55  ;;  %v2209_v35 = vmul.f32 %v6835_v27, %v6835_v27 }
 0x3b9   :  { %v2140_v63 = vpop.xlane.xlu0 %2139  ;;  %v2367_v50 = vmul.f32 %v4815_v20, %v2271_v41  ;;  %v2561_v11 = vmul.f32 0.044715, %v2529_v6  ;;  %v2273_v39 = vsub.f32 %v6498_v4, %v6835_v27  ;;  %v2210_v32 = vmul.f32 %v6846_v3, %v6846_v3 }
 0x3ba   :  { %v4817_v57 = vpop.eup %4816  ;;  %v2243_v5 = vsub.f32 %v2179_v40, %v2211_v33  ;;  %v2180_v12 = vmul.f32 0.015625, %v2140_v63  ;;  %v2743_v34 = vpack.c.bf16 %v2718_v44, %v2717_v24  ;;  %v2562_v61 = vmul.f32 0.044715, %v2530_v17 }
 0x3bb   :  { %v2368_v56 = vmul.f32 %v4817_v57, %v2272_v48  ;;  %v2131_v9 = vpop.xlane.xlu1 %2130  ;;  %v2403_v29 = vmul.f32 %v6557_v0, %v2367_v50  ;;  %v2593_v33 = vadd.f32 %v2561_v11, %v6805_v47  ;;  %v6868_v40 = vmul.f32 0.5, %v6820_v55 }
 0x3bc   :  { %v4819_v28 = vpop.eup %4818  ;;  %v2307_v21 = vadd.f32 1e-05, %v2243_v5  ;;  %v2244_v15 = vsub.f32 %v2180_v12, %v2212_v2  ;;  %v2177_v10 = vmul.f32 0.015625, %v2131_v9  ;;  %4523 = vmatprep.mubr.msk.bf16.mxu1 %vm802_vm1, %v2743_v34  ;;  %v2594_v45 = vadd.f32 %v2562_v61, %v6820_v55 }
 0x3bd   :  { %v2365_v53 = vmul.f32 %v4819_v28, %v2269_v19  ;;  %v2134_v38 = vpop.xlane.xlu0 %2133  ;;  %v2404_v37 = vmul.f32 %v6557_v0, %v2368_v56  ;;  %v2625_v59 = vmul.f32 0.7978846, %v2593_v33  ;;  %v2274_v24 = vsub.f32 %v6503_v58, %v6846_v3 }
 0x3be   :  { %4826 = vrsqrt.f32 %v2307_v21  ;;  %v2308_v41 = vadd.f32 1e-05, %v2244_v15  ;;  %v2241_v48 = vsub.f32 %v2177_v10, %v2209_v35  ;;  %v2178_v8 = vmul.f32 0.015625, %v2134_v38  ;;  %v4821_v13 = vpop.eup %4820 }
 0x3bf   :  { %v1989_v19 = vpop.xlane.xlu1 %1988  ;;  %v2366_v62 = vmul.f32 %v4821_v13, %v2270_v7  ;;  %v4823_v18 = vpop.eup %4822  ;;  %v2401_v20 = vmul.f32 %v6557_v0, %v2365_v53  ;;  %v2626_v63 = vmul.f32 0.7978846, %v2594_v45  ;;  %v6876_v44 = vmul.f32 0.5, %v6817_v26 }
 0x3c0   :  { %4828 = vrsqrt.f32 %v2308_v41  ;;  %v2305_v23 = vadd.f32 1e-05, %v2241_v48  ;;  %v2242_v43 = vsub.f32 %v2178_v8, %v2210_v32  ;;  %v6872_v6 = vmul.f32 0.015625, %v1989_v19 }
 0x3c1   :  { %v1992_v2 = vpop.xlane.xlu0 %1991  ;;  %v4825_v7 = vpop.eup %4824  ;;  %v2402_v57 = vmul.f32 %v6557_v0, %v2366_v62  ;;  %v2687_v5 = vadd.f32 1.0, %v4823_v18  ;;  %v6879_v55 = vadd.f32 %v6561_v54, %v2403_v29  ;;  %v6882_v17 = vadd.f32 %v6561_v54, %v2404_v37 }
 0x3c2   :  { %4830 = vrsqrt.f32 %v2305_v23  ;;  %v2306_v47 = vadd.f32 1e-05, %v2242_v43  ;;  %v6884_v50 = vmul.f32 0.015625, %v1992_v2  ;;  %v6887_v56 = vadd.f32 %v6561_v54, %v2401_v20 }
 0x3c3   :  { %v1983_v12 = vpop.xlane.xlu1 %1982  ;;  %4832 = vtanh.f32 %v2625_v59  ;;  %v2688_v35 = vadd.f32 1.0, %v4825_v7  ;;  %v2215_v28 = vmul.f32 %v6872_v6, %v6872_v6  ;;  %v2499_v15 = vmul.f32 %v6817_v26, %v6817_v26 }
 0x3c4   :  { %4834 = vrsqrt.f32 %v2306_v47  ;;  %v6889_v9 = vmul.f32 0.015625, %v1983_v12  ;;  %v2500_v10 = vmul.f32 %v6827_v46, %v6827_v46  ;;  %v6900_v34 = vadd.f32 %v6561_v54, %v2402_v57 }
 0x3c5   :  { %v1986_v11 = vpop.xlane.xlu0 %1985  ;;  %4836 = vtanh.f32 %v2626_v63  ;;  %v2279_v53 = vsub.f32 %v6518_v60, %v6872_v6  ;;  %v2719_v32 = vmul.f32 %v2687_v5, %v6761_v16  ;;  %v2720_v38 = vmul.f32 %v2688_v35, %v6764_v52 }
 0x3c6   :  { %v6893_v21 = vmul.f32 0.015625, %v1986_v11  ;;  %v2216_v48 = vmul.f32 %v6884_v50, %v6884_v50  ;;  %v2213_v8 = vmul.f32 %v6889_v9, %v6889_v9  ;;  %v2531_v29 = vmul.f32 %v2499_v15, %v6817_v26 }
 0x3c7   :  { %v2143_v61 = vpop.xlane.xlu1 %2142  ;;  %v2280_v37 = vsub.f32 %v6524_v36, %v6884_v50  ;;  %v2744_v19 = vpack.c.bf16 %v2720_v38, %v2719_v32  ;;  %v6914_v16 = vmul.f32 0.5, %v6827_v46  ;;  %v2532_v52 = vmul.f32 %v2500_v10, %v6827_v46 }
 0x3c8   :  { %v4827_v41 = vpop.eup %4826  ;;  %v2181_v13 = vmul.f32 0.015625, %v2143_v61  ;;  %v2214_v62 = vmul.f32 %v6893_v21, %v6893_v21  ;;  %v2563_v18 = vmul.f32 0.044715, %v2531_v29  ;;  %v2277_v2 = vsub.f32 %v6530_v14, %v6889_v9 }
 0x3c9   :  { %v2146_v33 = vpop.xlane.xlu0 %2145  ;;  %v2371_v20 = vmul.f32 %v4827_v41, %v2275_v42  ;;  %4524 = vmatmul.mubr.msk.bf16.gmra.mrb[60].mxu1 %vm802_vm1, %v2744_v19  ;;  %v2564_v63 = vmul.f32 0.044715, %v2532_v52  ;;  %v6926_v47 = vmul.f32 0.5, %v6887_v56  ;;  %v2501_v35 = vmul.f32 %v6887_v56, %v6887_v56 }
 0x3ca   :  { %v4829_v45 = vpop.eup %4828  ;;  %v2245_v23 = vsub.f32 %v2181_v13, %v2213_v8  ;;  %v2182_v43 = vmul.f32 0.015625, %v2146_v33  ;;  %v2595_v15 = vadd.f32 %v2563_v18, %v6817_v26  ;;  %v2502_v4 = vmul.f32 %v6900_v34, %v6900_v34 }
 0x3cb   :  { %v2149_v59 = vpop.xlane.xlu1 %2148  ;;  %v2372_v22 = vmul.f32 %v4829_v45, %v2276_v31  ;;  %v2596_v10 = vadd.f32 %v2564_v63, %v6827_v46  ;;  %v2407_v52 = vmul.f32 %v6557_v0, %v2371_v20  ;;  %v6963_v18 = vmul.f32 0.5, %v6900_v34 }
 0x3cc   :  { %v4831_v7 = vpop.eup %4830  ;;  %v2309_v57 = vadd.f32 1e-05, %v2245_v23  ;;  %v2246_v5 = vsub.f32 %v2182_v43, %v2214_v62  ;;  %v2183_v12 = vmul.f32 0.015625, %v2149_v59  ;;  %v2627_v29 = vmul.f32 0.7978846, %v2595_v15 }
 0x3cd   :  { %v4833_v11 = vpop.eup %4832  ;;  %v2369_v49 = vmul.f32 %v4831_v7, %v2273_v39  ;;  %v2152_v42 = vpop.xlane.xlu0 %2151  ;;  %v2628_v3 = vmul.f32 0.7978846, %v2596_v10  ;;  %v2534_v33 = vmul.f32 %v2502_v4, %v6900_v34  ;;  %v2408_v45 = vmul.f32 %v6557_v0, %v2372_v22 }
 0x3ce   :  { %v4835_v32 = vpop.eup %4834  ;;  %4838 = vrsqrt.f32 %v2309_v57  ;;  %v2310_v38 = vadd.f32 1e-05, %v2246_v5  ;;  %v2247_v61 = vsub.f32 %v2183_v12, %v2215_v28  ;;  %v2184_v41 = vmul.f32 0.015625, %v2152_v42 }
 0x3cf   :  { %v4837_v8 = vpop.eup %4836  ;;  %v2405_v13 = vmul.f32 %v6557_v0, %v2369_v49  ;;  %v2370_v30 = vmul.f32 %v4835_v32, %v2274_v24  ;;  %v2689_v1 = vadd.f32 1.0, %v4833_v11  ;;  %v2566_v23 = vmul.f32 0.044715, %v2534_v33 }
 0x3d0   :  { %4840 = vrsqrt.f32 %v2310_v38  ;;  %v2311_v26 = vadd.f32 1e-05, %v2247_v61  ;;  %v2248_v27 = vsub.f32 %v2184_v41, %v2216_v48  ;;  %v2690_v46 = vadd.f32 1.0, %v4837_v8 }
 0x3d1   :  { %v6945_v31 = vadd.f32 %v6561_v54, %v2405_v13  ;;  %v2406_v39 = vmul.f32 %v6557_v0, %v2370_v30  ;;  %v2721_v28 = vmul.f32 %v2689_v1, %v6838_v51  ;;  %v2533_v48 = vmul.f32 %v2501_v35, %v6887_v56 }
 0x3d2   :  { %4842 = vrsqrt.f32 %v2311_v26  ;;  %v2312_v19 = vadd.f32 1e-05, %v2248_v27  ;;  %v2722_v58 = vmul.f32 %v2690_v46, %v6868_v40  ;;  %v2503_v40 = vmul.f32 %v6879_v55, %v6879_v55 }
 0x3d3   :  { %v6951_v24 = vadd.f32 %v6561_v54, %v2406_v39  ;;  %4844 = vtanh.f32 %v2627_v29  ;;  %v2565_v62 = vmul.f32 0.044715, %v2533_v48  ;;  %v2278_v43 = vsub.f32 %v6535_v25, %v6893_v21 }
 0x3d4   :  { %4846 = vrsqrt.f32 %v2312_v19  ;;  %v2745_v51 = vpack.c.bf16 %v2722_v58, %v2721_v28  ;;  %v2504_v20 = vmul.f32 %v6882_v17, %v6882_v17  ;;  %v2505_v59 = vmul.f32 %v6945_v31, %v6945_v31 }
 0x3d5   :  { %4848 = vtanh.f32 %v2628_v3  ;;  %v2597_v63 = vadd.f32 %v2565_v62, %v6887_v56  ;;  %v2598_v7 = vadd.f32 %v2566_v23, %v6900_v34  ;;  %v2535_v57 = vmul.f32 %v2503_v40, %v6879_v55 }
 0x3d6   :  { %4527 = vmatprep.mubr.msk.bf16.mxu1 %vm802_vm1, %v2745_v51  ;;  %v2506_v25 = vmul.f32 %v6951_v24, %v6951_v24  ;;  %v6975_v5 = vadd.f32 %v6561_v54, %v2407_v52  ;;  %v6978_v12 = vadd.f32 %v6561_v54, %v2408_v45  ;;  %v2536_v35 = vmul.f32 %v2504_v20, %v6882_v17 }
 0x3d7   :  { %v2537_v11 = vmul.f32 %v2505_v59, %v6945_v31  ;;  %v2629_v34 = vmul.f32 0.7978846, %v2597_v63  ;;  %v2630_v22 = vmul.f32 0.7978846, %v2598_v7  ;;  %v2567_v49 = vmul.f32 0.044715, %v2535_v57 }
 0x3d8   :  { %v4839_v21 = vpop.eup %4838  ;;  %v6986_v15 = vmul.f32 0.5, %v6879_v55  ;;  %v2568_v10 = vmul.f32 0.044715, %v2536_v35  ;;  %v2538_v32 = vmul.f32 %v2506_v25, %v6951_v24  ;;  %v2507_v27 = vmul.f32 %v6975_v5, %v6975_v5 }
 0x3d9   :  { %v2373_v56 = vmul.f32 %v4839_v21, %v2277_v2  ;;  %v2569_v38 = vmul.f32 0.044715, %v2537_v11  ;;  %4850 = vtanh.f32 %v2629_v34  ;;  %v2599_v8 = vadd.f32 %v2567_v49, %v6879_v55 }
 0x3da   :  { %v4841_v42 = vpop.eup %4840  ;;  %4852 = vtanh.f32 %v2630_v22  ;;  %v2600_v14 = vadd.f32 %v2568_v10, %v6882_v17  ;;  %v2570_v9 = vmul.f32 0.044715, %v2538_v32  ;;  %v2508_v45 = vmul.f32 %v6978_v12, %v6978_v12 }
 0x3db   :  { %v2409_v61 = vmul.f32 %v6557_v0, %v2373_v56  ;;  %v2374_v41 = vmul.f32 %v4841_v42, %v2278_v43  ;;  %v2601_v2 = vadd.f32 %v2569_v38, %v6945_v31  ;;  %v2631_v26 = vmul.f32 0.7978846, %v2599_v8 }
 0x3dc   :  { %v4843_v13 = vpop.eup %4842  ;;  %v2632_v39 = vmul.f32 0.7978846, %v2600_v14  ;;  %v2602_v28 = vadd.f32 %v2570_v9, %v6951_v24  ;;  %v2539_v50 = vmul.f32 %v2507_v27, %v6975_v5  ;;  %v2472_v62 = vmul.f32 0.5, %v6882_v17 }
 0x3dd   :  { %v4845_v30 = vpop.eup %4844  ;;  %v2410_v1 = vmul.f32 %v6557_v0, %v2374_v41  ;;  %v2375_v4 = vmul.f32 %v4843_v13, %v2279_v53  ;;  %v2633_v29 = vmul.f32 0.7978846, %v2601_v2  ;;  %v7001_v58 = vadd.f32 %v6561_v54, %v2409_v61 }
 0x3de   :  { %v4847_v46 = vpop.eup %4846  ;;  %v2691_v55 = vadd.f32 1.0, %v4845_v30  ;;  %4854 = vtanh.f32 %v2631_v26  ;;  %v2634_v48 = vmul.f32 0.7978846, %v2602_v28  ;;  %v2540_v23 = vmul.f32 %v2508_v45, %v6978_v12 }
 0x3df   :  { %v4849_v19 = vpop.eup %4848  ;;  %v2411_v3 = vmul.f32 %v6557_v0, %v2375_v4  ;;  %v2376_v60 = vmul.f32 %v4847_v46, %v2280_v37  ;;  %v7008_v6 = vadd.f32 %v6561_v54, %v2410_v1  ;;  %4856 = vtanh.f32 %v2632_v39 }
 0x3e0   :  { %v2692_v53 = vadd.f32 1.0, %v4849_v19  ;;  %4858 = vtanh.f32 %v2633_v29  ;;  %v2723_v51 = vmul.f32 %v2691_v55, %v6876_v44  ;;  %v2473_v43 = vmul.f32 0.5, %v6945_v31 }
 0x3e1   :  { %v7011_v33 = vadd.f32 %v6561_v54, %v2411_v3  ;;  %v2412_v52 = vmul.f32 %v6557_v0, %v2376_v60  ;;  %4860 = vtanh.f32 %v2634_v48  ;;  %v2509_v0 = vmul.f32 %v7001_v58, %v7001_v58 }
 0x3e2   :  { %v2724_v36 = vmul.f32 %v2692_v53, %v6914_v16  ;;  %v2571_v20 = vmul.f32 0.044715, %v2539_v50  ;;  %v2510_v44 = vmul.f32 %v7008_v6, %v7008_v6  ;;  %v2474_v59 = vmul.f32 0.5, %v6951_v24 }
 0x3e3   :  { %v7020_v37 = vadd.f32 %v6561_v54, %v2412_v52  ;;  %v4851_v16 = vpop.eup %4850  ;;  %v2572_v63 = vmul.f32 0.044715, %v2540_v23  ;;  %v2541_v54 = vmul.f32 %v2509_v0, %v7001_v58  ;;  %v2511_v17 = vmul.f32 %v7011_v33, %v7011_v33 }
 0x3e4   :  { %v2746_v40 = vpack.c.bf16 %v2724_v36, %v2723_v51  ;;  %v4853_v7 = vpop.eup %4852  ;;  %v2693_v57 = vadd.f32 1.0, %v4851_v16  ;;  %v2603_v25 = vadd.f32 %v2571_v20, %v6975_v5  ;;  %v2542_v31 = vmul.f32 %v2510_v44, %v7008_v6 }
 0x3e5   :  { %v2512_v21 = vmul.f32 %v7020_v37, %v7020_v37  ;;  %v2694_v35 = vadd.f32 1.0, %v4853_v7  ;;  %v2604_v24 = vadd.f32 %v2572_v63, %v6978_v12  ;;  %v2573_v11 = vmul.f32 0.044715, %v2541_v54 }
 0x3e6   :  { %4528 = vmatmul.mubr.msk.bf16.gmra.mrb[64].mxu1 %vm802_vm1, %v2746_v40  ;;  %v2543_v56 = vmul.f32 %v2511_v17, %v7011_v33  ;;  %v2725_v34 = vmul.f32 %v2693_v57, %v6926_v47  ;;  %v2635_v22 = vmul.f32 0.7978846, %v2603_v25  ;;  %v2574_v49 = vmul.f32 0.044715, %v2542_v31 }
 0x3e7   :  { %v2544_v42 = vmul.f32 %v2512_v21, %v7020_v37  ;;  %v2726_v32 = vmul.f32 %v2694_v35, %v6963_v18  ;;  %v2636_v38 = vmul.f32 0.7978846, %v2604_v24  ;;  %v2605_v61 = vadd.f32 %v2573_v11, %v7001_v58  ;;  %v5003_v11 = vld [vmem:[%s8039_s4] sm:$0xff] }
 0x3e8   :  { %v4855_v10 = vpop.eup %4854  ;;  %v2575_v41 = vmul.f32 0.044715, %v2543_v56  ;;  %4862 = vtanh.f32 %v2635_v22  ;;  %v2606_v14 = vadd.f32 %v2574_v49, %v7008_v6  ;;  %v2475_v51 = vmul.f32 0.5, %v6975_v5  ;;  %v8117_v49 = vld [vmem:[#allocation25_spill] sm:$0xff] }
 0x3e9   :  { %v4857_v8 = vpop.eup %4856  ;;  %v2695_v13 = vadd.f32 1.0, %v4855_v10  ;;  %v2576_v9 = vmul.f32 0.044715, %v2544_v42  ;;  %v2747_v30 = vpack.c.bf16 %v2726_v32, %v2725_v34  ;;  %4864 = vtanh.f32 %v2636_v38  ;;  %v8116_v34 = vld [vmem:[#allocation24_spill] sm:$0xff]  ;;  %v8118_v38 = vld [vmem:[#allocation26_spill] sm:$0xff] }
 0x3ea   :  { %v4859_v2 = vpop.eup %4858  ;;  %v2696_v47 = vadd.f32 1.0, %v4857_v8  ;;  %v2637_v1 = vmul.f32 0.7978846, %v2605_v61  ;;  %v2638_v18 = vmul.f32 0.7978846, %v2606_v14  ;;  %v2607_v46 = vadd.f32 %v2575_v41, %v7011_v33  ;;  %v8119_v8 = vld [vmem:[#allocation27_spill] sm:$0xff] }
 0x3eb   :  { %v4861_v4 = vpop.eup %4860  ;;  %v2727_v26 = vmul.f32 %v2695_v13, %v6986_v15  ;;  %v2697_v27 = vadd.f32 1.0, %v4859_v2  ;;  %4531 = vmatprep.mubr.msk.bf16.mxu1 %vm802_vm1, %v2747_v30  ;;  %v2608_v28 = vadd.f32 %v2576_v9, %v7020_v37  ;;  %v2476_v36 = vmul.f32 0.5, %v6978_v12 }
 0x3ec   :  { %v2728_v55 = vmul.f32 %v2696_v47, %v2472_v62  ;;  %v2698_v39 = vadd.f32 1.0, %v4861_v4  ;;  %4866 = vtanh.f32 %v2637_v1  ;;  %v2639_v29 = vmul.f32 0.7978846, %v2607_v46 }
 0x3ed   :  { %4868 = vtanh.f32 %v2638_v18  ;;  %v2729_v3 = vmul.f32 %v2697_v27, %v2473_v43  ;;  %v2640_v53 = vmul.f32 0.7978846, %v2608_v28  ;;  %v2477_v20 = vmul.f32 0.5, %v7001_v58 }
 0x3ee   :  { %v2748_v19 = vpack.c.bf16 %v2728_v55, %v2727_v26  ;;  %v2730_v60 = vmul.f32 %v2698_v39, %v2474_v59  ;;  %4870 = vtanh.f32 %v2639_v29  ;;  %v2478_v44 = vmul.f32 0.5, %v7008_v6  ;;  %v8115_v6 = vld [vmem:[#allocation11_spill] sm:$0xff] }
 0x3ef   :  { %4872 = vtanh.f32 %v2640_v53  ;;  %v2479_v5 = vmul.f32 0.5, %v7011_v33  ;;  %v2480_v12 = vmul.f32 0.5, %v7020_v37  ;;  %v3020_v24 = vsub.s32 7, %v8115_v6 }
 0x3f0   :  { %4532 = vmatmul.mubr.msk.bf16.gmra.mrb[68].mxu1 %vm802_vm1, %v2748_v19  ;;  %v2749_v15 = vpack.c.bf16 %v2730_v60, %v2729_v3  ;;  %v8120_v3 = vld [vmem:[#allocation28_spill] sm:$0xff] }
 0x3f1   :  { %v7064_v56 = vrot.slane %v5003_v11, %v3020_v24  ;;  %v8125_v24 = vld [vmem:[#allocation33_spill] sm:$0xff] }
 0x3f2   :  { %4535 = vmatprep.mubr.msk.bf16.mxu1 %vm802_vm1, %v2749_v15  ;;  %v4863_v48 = vpop.eup %4862  ;;  %v8121_v15 = vld [vmem:[#allocation29_spill] sm:$0xff] }
 0x3f3   :  { %v4865_v52 = vpop.eup %4864  ;;  %v2699_v45 = vadd.f32 1.0, %v4863_v48 }
 0x3f4   :  { %v2700_v50 = vadd.f32 1.0, %v4865_v52 }
 0x3f5   :  { %v2731_v0 = vmul.f32 %v2699_v45, %v2475_v51  ;;  %v8122_v51 = vld [vmem:[#allocation30_spill] sm:$0xff] }
 0x3f6   :  { %v4867_v62 = vpop.eup %4866  ;;  %v2732_v40 = vmul.f32 %v2700_v50, %v2476_v36 }
 0x3f7   :  { %v4869_v23 = vpop.eup %4868  ;;  %v2701_v43 = vadd.f32 1.0, %v4867_v62  ;;  %v8123_v62 = vld [vmem:[#allocation31_spill] sm:$0xff] }
 0x3f8   :  { %v2702_v16 = vadd.f32 1.0, %v4869_v23  ;;  %v4871_v59 = vpop.eup %4870  ;;  %v2750_v63 = vpack.c.bf16 %v2732_v40, %v2731_v0 }
 0x3f9   :  { %v4873_v54 = vpop.eup %4872  ;;  %v2733_v17 = vmul.f32 %v2701_v43, %v2477_v20  ;;  %v2703_v57 = vadd.f32 1.0, %v4871_v59 }
 0x3fa   :  { %v2734_v7 = vmul.f32 %v2702_v16, %v2478_v44  ;;  %4536 = vmatmul.mubr.msk.bf16.gmra.mrb[72].mxu1 %vm802_vm1, %v2750_v63  ;;  %v2704_v25 = vadd.f32 1.0, %v4873_v54 }
 0x3fb   :  { %v2735_v21 = vmul.f32 %v2703_v57, %v2479_v5 }
 0x3fc   :  { %v2751_v31 = vpack.c.bf16 %v2734_v7, %v2733_v17  ;;  %v2736_v35 = vmul.f32 %v2704_v25, %v2480_v12 }
 0x3fe   :  { %4539 = vmatprep.mubr.msk.bf16.mxu1 %vm802_vm1, %v2751_v31  ;;  %v2752_v58 = vpack.c.bf16 %v2736_v35, %v2735_v21  ;;  %v8124_v21 = vld [vmem:[#allocation32_spill] sm:$0xff] }
 0x402   :  { %4540 = vmatmul.mubr.msk.bf16.gmra.mrb[76].mxu1 %vm802_vm1, %v2752_v58 }
 0x44a   :  { %v4513_v33 = vpop.f32.mrb[48].mxu1 }
 0x44b   :  { %v2988_v37 = vsub.f32 %v8116_v34, %v4513_v33  ;;  %v2859_v22 = vpop.f32.mrb[49].mxu1 }
 0x44c   :  { %v2986_v42 = vsub.f32 %v8117_v49, %v2859_v22  ;;  %v4514_v10 = vpop.f32.mrb[50].mxu1 }
 0x44d   :  { %v7069_v32 = vadd.f32 %v7064_v56, %v2988_v37  ;;  %v2989_v61 = vsub.f32 %v8118_v38, %v4514_v10  ;;  %v2862_v41 = vpop.f32.mrb[51].mxu1  ;;  %v8126_v37 = vld [vmem:[#allocation34_spill] sm:$0xff] }
 0x44e   :  { %v2987_v13 = vsub.f32 %v8119_v8, %v2862_v41  ;;  %v7074_v14 = vadd.f32 %v7064_v56, %v2986_v42  ;;  %v8127_v42 = vld [vmem:[#allocation35_spill] sm:$0xff] }
 0x44f   :  { %v7077_v9 = vadd.f32 %v7064_v56, %v2989_v61  ;;  %v3060_v2 = vsel %vm802_vm1, %v7069_v32, 0.0  ;;  %v3184_v4 = vmul.f32 %v7069_v32, %v7069_v32 }
 0x450   :  { %3061 = vadd.xlane.f32.xlu1 %v3060_v2  ;;  %v7082_v30 = vadd.f32 %v7064_v56, %v2987_v13  ;;  %v3054_v1 = vsel %vm802_vm1, %v7074_v14, 0.0  ;;  %v3182_v46 = vmul.f32 %v7074_v14, %v7074_v14 }
 0x451   :  { %v3063_v47 = vsel %vm802_vm1, %v7077_v9, 0.0  ;;  %v3185_v27 = vmul.f32 %v7077_v9, %v7077_v9  ;;  %v3220_v18 = vsel %vm802_vm1, %v3184_v4, 0.0 }
 0x452   :  { %3064 = vadd.xlane.f32.xlu0 %v3063_v47  ;;  %v3057_v26 = vsel %vm802_vm1, %v7082_v30, 0.0  ;;  %v3183_v39 = vmul.f32 %v7082_v30, %v7082_v30  ;;  %v3214_v28 = vsel %vm802_vm1, %v3182_v46, 0.0 }
 0x453   :  { %v3223_v55 = vsel %vm802_vm1, %v3185_v27, 0.0 }
 0x454   :  { %3055 = vadd.xlane.f32.xlu1 %v3054_v1  ;;  %v3217_v29 = vsel %vm802_vm1, %v3183_v39, 0.0 }
 0x456   :  { %3058 = vadd.xlane.f32.xlu0 %v3057_v26 }
 0x458   :  { %3221 = vadd.xlane.f32.xlu1 %v3220_v18 }
 0x45a   :  { %3224 = vadd.xlane.f32.xlu0 %v3223_v55 }
 0x45c   :  { %3215 = vadd.xlane.f32.xlu1 %v3214_v28 }
 0x45e   :  { %3218 = vadd.xlane.f32.xlu0 %v3217_v29  ;;  %v8128_v29 = vld [vmem:[#allocation36_spill] sm:$0xff] }
 0x464   :  { %v4517_v19 = vpop.f32.mrb[52].mxu1 }
 0x465   :  { %v2992_v60 = vsub.f32 %v8120_v3, %v4517_v19  ;;  %v2875_v53 = vpop.f32.mrb[53].mxu1 }
 0x466   :  { %v2990_v48 = vsub.f32 %v8121_v15, %v2875_v53  ;;  %v4518_v52 = vpop.f32.mrb[54].mxu1 }
 0x467   :  { %v7105_v45 = vadd.f32 %v7064_v56, %v2992_v60  ;;  %v2993_v36 = vsub.f32 %v8122_v51, %v4518_v52  ;;  %v2878_v50 = vpop.f32.mrb[55].mxu1  ;;  %v8129_v60 = vld [vmem:[#allocation37_spill] sm:$0xff]  ;;  %v8130_v52 = vld [vmem:[#allocation38_spill] sm:$0xff] }
 0x468   :  { %v2991_v23 = vsub.f32 %v8123_v62, %v2878_v50  ;;  %v7110_v0 = vadd.f32 %v7064_v56, %v2990_v48  ;;  %v8131_v50 = vld [vmem:[#allocation39_spill] sm:$0xff] }
 0x469   :  { %v7113_v40 = vadd.f32 %v7064_v56, %v2993_v36  ;;  %v3072_v43 = vsel %vm802_vm1, %v7105_v45, 0.0  ;;  %v3188_v59 = vmul.f32 %v7105_v45, %v7105_v45 }
 0x46a   :  { %3073 = vadd.xlane.f32.xlu1 %v3072_v43  ;;  %v7118_v20 = vadd.f32 %v7064_v56, %v2991_v23  ;;  %v3066_v16 = vsel %vm802_vm1, %v7110_v0, 0.0  ;;  %v3186_v7 = vmul.f32 %v7110_v0, %v7110_v0 }
 0x46b   :  { %v3075_v44 = vsel %vm802_vm1, %v7113_v40, 0.0  ;;  %v3189_v54 = vmul.f32 %v7113_v40, %v7113_v40  ;;  %v3232_v17 = vsel %vm802_vm1, %v3188_v59, 0.0 }
 0x46c   :  { %3076 = vadd.xlane.f32.xlu0 %v3075_v44  ;;  %v3069_v63 = vsel %vm802_vm1, %v7118_v20, 0.0  ;;  %v3187_v5 = vmul.f32 %v7118_v20, %v7118_v20  ;;  %v3226_v12 = vsel %vm802_vm1, %v3186_v7, 0.0 }
 0x46d   :  { %v3235_v57 = vsel %vm802_vm1, %v3189_v54, 0.0 }
 0x46e   :  { %3067 = vadd.xlane.f32.xlu1 %v3066_v16  ;;  %v3229_v25 = vsel %vm802_vm1, %v3187_v5, 0.0 }
 0x470   :  { %3070 = vadd.xlane.f32.xlu0 %v3069_v63 }
 0x472   :  { %3233 = vadd.xlane.f32.xlu1 %v3232_v17 }
 0x474   :  { %3236 = vadd.xlane.f32.xlu0 %v3235_v57 }
 0x476   :  { %3227 = vadd.xlane.f32.xlu1 %v3226_v12 }
 0x478   :  { %3230 = vadd.xlane.f32.xlu0 %v3229_v25 }
 0x47f   :  { %v4521_v31 = vpop.f32.mrb[56].mxu1 }
 0x480   :  { %v2996_v35 = vsub.f32 %v8124_v21, %v4521_v31  ;;  %v2891_v58 = vpop.f32.mrb[57].mxu1 }
 0x481   :  { %v2994_v11 = vsub.f32 %v8125_v24, %v2891_v58  ;;  %v4522_v33 = vpop.f32.mrb[58].mxu1  ;;  %v8132_v58 = vld [vmem:[#allocation2_spill] sm:$0xff] }
 0x482   :  { %v7141_v34 = vadd.f32 %v7064_v56, %v2996_v35  ;;  %v2997_v22 = vsub.f32 %v8126_v37, %v4522_v33  ;;  %v2894_v49 = vpop.f32.mrb[59].mxu1  ;;  %v4614_v33 = vld [vmem:[%s8040_s3] sm:$0xff]   ;;  %v8133_v37 = vld [vmem:[#allocation3_spill] sm:$0xff] }
 0x483   :  { %v2995_v10 = vsub.f32 %v8127_v42, %v2894_v49  ;;  %v7146_v38 = vadd.f32 %v7064_v56, %v2994_v11  ;;  %v4615_v42 = vld [vmem:[%s8040_s3 + $0x8] sm:$0xff]   ;;  %4543 = vmatprep.subr.bf16.mxu0 %v4614_v33 }
 0x484   :  { %v7149_v61 = vadd.f32 %v7064_v56, %v2997_v22  ;;  %v3084_v41 = vsel %vm802_vm1, %v7141_v34, 0.0  ;;  %v3192_v47 = vmul.f32 %v7141_v34, %v7141_v34  ;;  %4544 = vmatpush3.bf16.msra.mxu0 %v4614_v33 }
 0x485   :  { %3085 = vadd.xlane.f32.xlu1 %v3084_v41  ;;  %v7154_v8 = vadd.f32 %v7064_v56, %v2995_v10  ;;  %v3078_v2 = vsel %vm802_vm1, %v7146_v38, 0.0  ;;  %v3190_v27 = vmul.f32 %v7146_v38, %v7146_v38  ;;  %v8134_v41 = vld [vmem:[#allocation4_spill] sm:$0xff]  ;;  %4545 = vmatprep.subr.bf16.mxu0 %v4615_v42 }
 0x486   :  { %v3087_v13 = vsel %vm802_vm1, %v7149_v61, 0.0  ;;  %v3193_v4 = vmul.f32 %v7149_v61, %v7149_v61  ;;  %v3244_v26 = vsel %vm802_vm1, %v3192_v47, 0.0  ;;  %v8135_v47 = vld [vmem:[#allocation5_spill] sm:$0xff] }
 0x487   :  { %3088 = vadd.xlane.f32.xlu0 %v3087_v13  ;;  %v3081_v1 = vsel %vm802_vm1, %v7154_v8, 0.0  ;;  %v3191_v46 = vmul.f32 %v7154_v8, %v7154_v8  ;;  %v3238_v55 = vsel %vm802_vm1, %v3190_v27, 0.0 }
 0x488   :  { %v3247_v18 = vsel %vm802_vm1, %v3193_v4, 0.0  ;;  %4546 = vmatpush3.bf16.msra.mxu0 %v4615_v42  ;;  %v8141_v42 = vld [vmem:[#allocation12_spill] sm:$0xff] }
 0x489   :  { %3079 = vadd.xlane.f32.xlu1 %v3078_v2  ;;  %v3241_v39 = vsel %vm802_vm1, %v3191_v46, 0.0 }
 0x48b   :  { %3082 = vadd.xlane.f32.xlu0 %v3081_v1 }
 0x48d   :  { %3245 = vadd.xlane.f32.xlu1 %v3244_v26 }
 0x48f   :  { %3248 = vadd.xlane.f32.xlu0 %v3247_v18 }
 0x491   :  { %3239 = vadd.xlane.f32.xlu1 %v3238_v55 }
 0x493   :  { %3242 = vadd.xlane.f32.xlu0 %v3241_v39 }
 0x49c   :  { %v4525_v28 = vpop.f32.mrb[60].mxu1 }
 0x49d   :  { %v3000_v19 = vsub.f32 %v8128_v29, %v4525_v28  ;;  %v2907_v3 = vpop.f32.mrb[61].mxu1 }
 0x49e   :  { %v2998_v53 = vsub.f32 %v8129_v60, %v2907_v3  ;;  %v4526_v15 = vpop.f32.mrb[62].mxu1  ;;  %v8136_v3 = vld [vmem:[#allocation6_spill] sm:$0xff] }
 0x49f   :  { %v7177_v48 = vadd.f32 %v7064_v56, %v3000_v19  ;;  %v3001_v51 = vsub.f32 %v8130_v52, %v4526_v15  ;;  %v2910_v36 = vpop.f32.mrb[63].mxu1  ;;  %v8137_v52 = vld [vmem:[#allocation7_spill] sm:$0xff] }
 0x4a0   :  { %v2999_v62 = vsub.f32 %v8131_v50, %v2910_v36  ;;  %v7182_v23 = vadd.f32 %v7064_v56, %v2998_v53 }
 0x4a1   :  { %v7185_v43 = vadd.f32 %v7064_v56, %v3001_v51  ;;  %v3096_v44 = vsel %vm802_vm1, %v7177_v48, 0.0  ;;  %v3196_v54 = vmul.f32 %v7177_v48, %v7177_v48 }
 0x4a2   :  { %3097 = vadd.xlane.f32.xlu1 %v3096_v44  ;;  %v7190_v16 = vadd.f32 %v7064_v56, %v2999_v62  ;;  %v3090_v63 = vsel %vm802_vm1, %v7182_v23, 0.0  ;;  %v3194_v5 = vmul.f32 %v7182_v23, %v7182_v23  ;;  %v8138_v62 = vld [vmem:[#allocation8_spill] sm:$0xff] }
 0x4a3   :  { %v3099_v59 = vsel %vm802_vm1, %v7185_v43, 0.0  ;;  %v3197_v7 = vmul.f32 %v7185_v43, %v7185_v43  ;;  %v3256_v57 = vsel %vm802_vm1, %v3196_v54, 0.0 }
 0x4a4   :  { %3100 = vadd.xlane.f32.xlu0 %v3099_v59  ;;  %v3093_v17 = vsel %vm802_vm1, %v7190_v16, 0.0  ;;  %v3195_v25 = vmul.f32 %v7190_v16, %v7190_v16  ;;  %v3250_v31 = vsel %vm802_vm1, %v3194_v5, 0.0  ;;  %v4616_v5 = vld [vmem:[%s8040_s3 + $0x10] sm:$0xff]  }
 0x4a5   :  { %v3259_v12 = vsel %vm802_vm1, %v3197_v7, 0.0  ;;  %4547 = vmatprep.subr.bf16.mxu0 %v4616_v5 }
 0x4a6   :  { %3091 = vadd.xlane.f32.xlu1 %v3090_v63  ;;  %v3253_v21 = vsel %vm802_vm1, %v3195_v25, 0.0  ;;  %4548 = vmatpush3.bf16.msra.mxu0 %v4616_v5 }
 0x4a8   :  { %3094 = vadd.xlane.f32.xlu0 %v3093_v17  ;;  %v8139_v17 = vld [vmem:[#allocation9_spill] sm:$0xff] }
 0x4aa   :  { %3257 = vadd.xlane.f32.xlu1 %v3256_v57 }
 0x4ac   :  { %3260 = vadd.xlane.f32.xlu0 %v3259_v12 }
 0x4ae   :  { %3251 = vadd.xlane.f32.xlu1 %v3250_v31 }
 0x4b0   :  { %3254 = vadd.xlane.f32.xlu0 %v3253_v21 }
 0x4b9   :  { %v4529_v35 = vpop.f32.mrb[64].mxu1 }
 0x4ba   :  { %v3004_v24 = vsub.f32 %v8132_v58, %v4529_v35  ;;  %v2923_v11 = vpop.f32.mrb[65].mxu1  ;;  %v4617_v35 = vld [vmem:[%s8040_s3 + $0x18] sm:$0xff]  }
 0x4bb   :  { %v3002_v22 = vsub.f32 %v8133_v37, %v2923_v11  ;;  %v4530_v49 = vpop.f32.mrb[66].mxu1  ;;  %4549 = vmatprep.subr.bf16.mxu0 %v4617_v35  ;;  %v8140_v37 = vld [vmem:[#allocation10_spill] sm:$0xff] }
 0x4bc   :  { %v7219_v10 = vadd.f32 %v7064_v56, %v3004_v24  ;;  %v3005_v13 = vsub.f32 %v8134_v41, %v4530_v49  ;;  %v2926_v2 = vpop.f32.mrb[67].mxu1  ;;  %4550 = vmatpush3.bf16.msra.mxu0 %v4617_v35 }
 0x4bd   :  { %v3003_v1 = vsub.f32 %v8135_v47, %v2926_v2  ;;  %v7224_v4 = vadd.f32 %v7064_v56, %v3002_v22 }
 0x4be   :  { %v7227_v26 = vadd.f32 %v7064_v56, %v3005_v13  ;;  %v3108_v27 = vsel %vm802_vm1, %v7219_v10, 0.0  ;;  %v3200_v39 = vmul.f32 %v7219_v10, %v7219_v10 }
 0x4bf   :  { %3109 = vadd.xlane.f32.xlu1 %v3108_v27  ;;  %v7232_v18 = vadd.f32 %v7064_v56, %v3003_v1  ;;  %v3102_v55 = vsel %vm802_vm1, %v7224_v4, 0.0  ;;  %v3198_v36 = vmul.f32 %v7224_v4, %v7224_v4  ;;  %v8142_v1 = vld [vmem:[#allocation13_spill] sm:$0xff] }
 0x4c0   :  { %v3111_v46 = vsel %vm802_vm1, %v7227_v26, 0.0  ;;  %v3201_v29 = vmul.f32 %v7227_v26, %v7227_v26  ;;  %v3268_v15 = vsel %vm802_vm1, %v3200_v39, 0.0 }
 0x4c1   :  { %3112 = vadd.xlane.f32.xlu0 %v3111_v46  ;;  %v3105_v28 = vsel %vm802_vm1, %v7232_v18, 0.0  ;;  %v3199_v57 = vmul.f32 %v7232_v18, %v7232_v18  ;;  %v3262_v12 = vsel %vm802_vm1, %v3198_v36, 0.0 }
 0x4c2   :  { %v3271_v63 = vsel %vm802_vm1, %v3201_v29, 0.0 }
 0x4c3   :  { %3103 = vadd.xlane.f32.xlu1 %v3102_v55  ;;  %v4533_v19 = vpop.f32.mrb[68].mxu1  ;;  %v3265_v31 = vsel %vm802_vm1, %v3199_v57, 0.0  ;;  %v8143_v55 = vld [vmem:[#allocation14_spill] sm:$0xff] }
 0x4c4   :  { %v3008_v60 = vsub.f32 %v8136_v3, %v4533_v19  ;;  %v2939_v53 = vpop.f32.mrb[69].mxu1 }
 0x4c5   :  { %3106 = vadd.xlane.f32.xlu0 %v3105_v28  ;;  %v3006_v51 = vsub.f32 %v8137_v52, %v2939_v53  ;;  %v4534_v50 = vpop.f32.mrb[70].mxu1 }
 0x4c6   :  { %v3009_v44 = vsub.f32 %v8138_v62, %v4534_v50  ;;  %v2942_v59 = vpop.f32.mrb[71].mxu1  ;;  %v7252_v54 = vadd.f32 %v7064_v56, %v3008_v60  ;;  %v8145_v62 = vld [vmem:[#allocation16_spill] sm:$0xff] }
 0x4c7   :  { %3269 = vadd.xlane.f32.xlu1 %v3268_v15  ;;  %v3007_v7 = vsub.f32 %v8139_v17, %v2942_v59  ;;  %v7271_v58 = vadd.f32 %v7064_v56, %v3006_v51  ;;  %v8144_v51 = vld [vmem:[#allocation15_spill] sm:$0xff] }
 0x4c8   :  { %v7262_v25 = vadd.f32 %v7064_v56, %v3009_v44  ;;  %v3120_v21 = vsel %vm802_vm1, %v7252_v54, 0.0  ;;  %v3204_v47 = vmul.f32 %v7252_v54, %v7252_v54 }
 0x4c9   :  { %3272 = vadd.xlane.f32.xlu0 %v3271_v63  ;;  %v7276_v33 = vadd.f32 %v7064_v56, %v3007_v7  ;;  %v3114_v2 = vsel %vm802_vm1, %v7271_v58, 0.0  ;;  %v3202_v3 = vmul.f32 %v7271_v58, %v7271_v58  ;;  %v8146_v7 = vld [vmem:[#allocation17_spill] sm:$0xff] }
 0x4ca   :  { %v3123_v24 = vsel %vm802_vm1, %v7262_v25, 0.0  ;;  %v3205_v29 = vmul.f32 %v7262_v25, %v7262_v25  ;;  %v3280_v19 = vsel %vm802_vm1, %v3204_v47, 0.0 }
 0x4cb   :  { %3263 = vadd.xlane.f32.xlu1 %v3262_v12  ;;  %v3117_v28 = vsel %vm802_vm1, %v7276_v33, 0.0  ;;  %v3203_v52 = vmul.f32 %v7276_v33, %v7276_v33  ;;  %v3274_v63 = vsel %vm802_vm1, %v3202_v3, 0.0  ;;  %v8147_v12 = vld [vmem:[#allocation18_spill] sm:$0xff] }
 0x4cc   :  { %v3283_v53 = vsel %vm802_vm1, %v3205_v29, 0.0 }
 0x4cd   :  { %3266 = vadd.xlane.f32.xlu0 %v3265_v31  ;;  %v4537_v11 = vpop.f32.mrb[72].mxu1 }
 0x4ce   :  { %v3012_v22 = vsub.f32 %v8140_v37, %v4537_v11  ;;  %v2955_v49 = vpop.f32.mrb[73].mxu1 }
 0x4cf   :  { %3121 = vadd.xlane.f32.xlu1 %v3120_v21  ;;  %v3010_v41 = vsub.f32 %v8141_v42, %v2955_v49  ;;  %v4538_v13 = vpop.f32.mrb[74].mxu1  ;;  %v3277_v21 = vsel %vm802_vm1, %v3203_v52, 0.0 }
 0x4d0   :  { %v3013_v27 = vsub.f32 %v8142_v1, %v4538_v13  ;;  %v2958_v46 = vpop.f32.mrb[75].mxu1  ;;  %v7295_v15 = vadd.f32 %v7064_v56, %v3012_v22 }
 0x4d1   :  { %3124 = vadd.xlane.f32.xlu0 %v3123_v24  ;;  %v3011_v39 = vsub.f32 %v8143_v55, %v2958_v46  ;;  %v7311_v24 = vadd.f32 %v7064_v56, %v3010_v41 }
 0x4d2   :  { %v7303_v17 = vadd.f32 %v7064_v56, %v3013_v27  ;;  %v3132_v35 = vsel %vm802_vm1, %v7295_v15, 0.0  ;;  %v3208_v42 = vmul.f32 %v7295_v15, %v7295_v15 }
 0x4d3   :  { %3115 = vadd.xlane.f32.xlu1 %v3114_v2  ;;  %v7316_v37 = vadd.f32 %v7064_v56, %v3011_v39  ;;  %v3126_v49 = vsel %vm802_vm1, %v7311_v24, 0.0  ;;  %v3206_v46 = vmul.f32 %v7311_v24, %v7311_v24 }
 0x4d4   :  { %v3135_v11 = vsel %vm802_vm1, %v7303_v17, 0.0  ;;  %v3209_v2 = vmul.f32 %v7303_v17, %v7303_v17  ;;  %v3292_v27 = vsel %vm802_vm1, %v3208_v42, 0.0 }
 0x4d5   :  { %3118 = vadd.xlane.f32.xlu0 %v3117_v28  ;;  %v4541_v60 = vpop.f32.mrb[76].mxu1  ;;  %v3129_v41 = vsel %vm802_vm1, %v7316_v37, 0.0 }
 0x4d6   :  { %v3016_v36 = vsub.f32 %v8144_v51, %v4541_v60  ;;  %v2971_v50 = vpop.f32.mrb[77].mxu1  ;;  %v3295_v29 = vsel %vm802_vm1, %v3209_v2, 0.0 }
 0x4d7   :  { %3281 = vadd.xlane.f32.xlu1 %v3280_v19  ;;  %v3014_v44 = vsub.f32 %v8145_v62, %v2971_v50  ;;  %v4542_v59 = vpop.f32.mrb[78].mxu1  ;;  %v3207_v19 = vmul.f32 %v7316_v37, %v7316_v37  ;;  %v3286_v50 = vsel %vm802_vm1, %v3206_v46, 0.0 }
 0x4d8   :  { %v3017_v57 = vsub.f32 %v8146_v7, %v4542_v59  ;;  %v2974_v5 = vpop.f32.mrb[79].mxu1  ;;  %v7334_v28 = vadd.f32 %v7064_v56, %v3016_v36 }
 0x4d9   :  { %3284 = vadd.xlane.f32.xlu0 %v3283_v53  ;;  %v3015_v31 = vsub.f32 %v8147_v12, %v2974_v5  ;;  %v3289_v5 = vsel %vm802_vm1, %v3207_v19, 0.0 }
 0x4da   :  { %v7344_v51 = vadd.f32 %v7064_v56, %v3017_v57  ;;  %v3144_v12 = vsel %vm802_vm1, %v7334_v28, 0.0 }
 0x4db   :  { %3275 = vadd.xlane.f32.xlu1 %v3274_v63  ;;  %v7364_v46 = vadd.f32 %v7064_v56, %v3015_v31  ;;  %v86_v31 = vld [vmem:[%s8039_s4 + $0x8] sm:$0x7] }
 0x4dc   :  { %v3147_v42 = vsel %vm802_vm1, %v7344_v51, 0.0 }
 0x4dd   :  { %3278 = vadd.xlane.f32.xlu0 %v3277_v21  ;;  %v3062_v22 = vpop.xlane.xlu1 %3061 }
 0x4de   :  { %v7326_v1 = vmul.f32 0.015625, %v3062_v22 }
 0x4df   :  { %3133 = vadd.xlane.f32.xlu1 %v3132_v35  ;;  %v3065_v13 = vpop.xlane.xlu0 %3064 }
 0x4e0   :  { %v7331_v39 = vmul.f32 0.015625, %v3065_v13  ;;  %v3344_v60 = vmul.f32 %v7326_v1, %v7326_v1 }
 0x4e1   :  { %3136 = vadd.xlane.f32.xlu0 %v3135_v11  ;;  %v3056_v47 = vpop.xlane.xlu1 %3055 }
 0x4e2   :  { %v7341_v53 = vmul.f32 0.015625, %v3056_v47  ;;  %v3345_v59 = vmul.f32 %v7331_v39, %v7331_v39 }
 0x4e3   :  { %3127 = vadd.xlane.f32.xlu1 %v3126_v49  ;;  %v3059_v55 = vpop.xlane.xlu0 %3058  ;;  %v7357_v49 = vadd.f32 %v7064_v56, %v3014_v44  ;;  %v3211_v56 = vmul.f32 %v7364_v46, %v7364_v46 }
 0x4e4   :  { %v7347_v36 = vmul.f32 0.015625, %v3059_v55  ;;  %v3342_v57 = vmul.f32 %v7341_v53, %v7341_v53 }
 0x4e5   :  { %3130 = vadd.xlane.f32.xlu0 %v3129_v41  ;;  %v3222_v3 = vpop.xlane.xlu1 %3221  ;;  %v3210_v19 = vmul.f32 %v7357_v49, %v7357_v49 }
 0x4e6   :  { %v3312_v52 = vmul.f32 0.015625, %v3222_v3  ;;  %v3343_v13 = vmul.f32 %v7347_v36, %v7347_v36 }
 0x4e7   :  { %3293 = vadd.xlane.f32.xlu1 %v3292_v27  ;;  %v3225_v62 = vpop.xlane.xlu0 %3224 }
 0x4e8   :  { %v3376_v63 = vsub.f32 %v3312_v52, %v3344_v60  ;;  %v3313_v7 = vmul.f32 0.015625, %v3225_v62  ;;  %v3141_v60 = vsel %vm802_vm1, %v7364_v46, 0.0  ;;  %v3298_v52 = vsel %vm802_vm1, %v3210_v19, 0.0 }
 0x4e9   :  { %3296 = vadd.xlane.f32.xlu0 %v3295_v29  ;;  %v3216_v21 = vpop.xlane.xlu1 %3215  ;;  %v3138_v29 = vsel %vm802_vm1, %v7357_v49, 0.0  ;;  %v8148_v62 = vsub.s32 0, %v8115_v6 }
 0x4ea   :  { %v3440_v35 = vadd.f32 1e-05, %v3376_v63  ;;  %v3377_v11 = vsub.f32 %v3313_v7, %v3345_v59  ;;  %v3310_v22 = vmul.f32 0.015625, %v3216_v21  ;;  %v3301_v63 = vsel %vm802_vm1, %v3211_v56, 0.0 }
 0x4eb   :  { %3287 = vadd.xlane.f32.xlu1 %v3286_v50  ;;  %v3219_v41 = vpop.xlane.xlu0 %3218  ;;  %v3212_v50 = vmul.f32 %v7334_v28, %v7334_v28  ;;  %v7382_v59 = vrot.slane %v86_v31, %v8148_v62  ;;  %v3213_v7 = vmul.f32 %v7344_v51, %v7344_v51 }
 0x4ec   :  { %4874 = vrsqrt.f32 %v3440_v35  ;;  %v3441_v2 = vadd.f32 1e-05, %v3377_v11  ;;  %v3374_v47 = vsub.f32 %v3310_v22, %v3342_v57  ;;  %v3311_v27 = vmul.f32 0.015625, %v3219_v41 }
 0x4ed   :  { %3290 = vadd.xlane.f32.xlu0 %v3289_v5  ;;  %v3408_v5 = vsub.f32 %v7069_v32, %v7326_v1  ;;  %v8149_v57 = vsub.s32 1, %v8115_v6  ;;  %v3304_v11 = vsel %vm802_vm1, %v3212_v50, 0.0  ;;  %v3409_v22 = vsub.f32 %v7077_v9, %v7331_v39 }
 0x4ee   :  { %4876 = vrsqrt.f32 %v3441_v2  ;;  %v3438_v55 = vadd.f32 1e-05, %v3374_v47  ;;  %v3375_v44 = vsub.f32 %v3311_v27, %v3343_v13  ;;  %v3307_v2 = vsel %vm802_vm1, %v3213_v7, 0.0 }
 0x4ef   :  { %3145 = vadd.xlane.f32.xlu1 %v3144_v12  ;;  %v7391_v35 = vrot.slane %v86_v31, %v8149_v57  ;;  %v3406_v32 = vsub.f32 %v7074_v14, %v7341_v53  ;;  %v3407_v9 = vsub.f32 %v7082_v30, %v7347_v36 }
 0x4f0   :  { %4878 = vrsqrt.f32 %v3438_v55  ;;  %v3439_v3 = vadd.f32 1e-05, %v3375_v44 }
 0x4f1   :  { %3148 = vadd.xlane.f32.xlu0 %v3147_v42 }
 0x4f2   :  { %4880 = vrsqrt.f32 %v3439_v3 }
 0x4f3   :  { %3139 = vadd.xlane.f32.xlu1 %v3138_v29 }
 0x4f5   :  { %3142 = vadd.xlane.f32.xlu0 %v3141_v60 }
 0x4f6   :  { %v4875_v21 = vpop.eup %4874 }
 0x4f7   :  { %3299 = vadd.xlane.f32.xlu1 %v3298_v52  ;;  %v3074_v12 = vpop.xlane.xlu1 %3073  ;;  %v3504_v42 = vmul.f32 %v4875_v21, %v3408_v5 }
 0x4f8   :  { %v4877_v41 = vpop.eup %4876  ;;  %v7400_v44 = vmul.f32 0.015625, %v3074_v12 }
 0x4f9   :  { %3302 = vadd.xlane.f32.xlu0 %v3301_v63  ;;  %v3077_v13 = vpop.xlane.xlu0 %3076  ;;  %v3540_v1 = vmul.f32 %v7382_v59, %v3504_v42  ;;  %v3505_v47 = vmul.f32 %v4877_v41, %v3409_v22 }
 0x4fa   :  { %v4879_v55 = vpop.eup %4878  ;;  %v7408_v14 = vmul.f32 0.015625, %v3077_v13  ;;  %v3348_v50 = vmul.f32 %v7400_v44, %v7400_v44 }
 0x4fb   :  { %3305 = vadd.xlane.f32.xlu1 %v3304_v11  ;;  %v3068_v27 = vpop.xlane.xlu1 %3067  ;;  %v7405_v39 = vadd.f32 %v7391_v35, %v3540_v1  ;;  %v3541_v29 = vmul.f32 %v7382_v59, %v3505_v47  ;;  %v3502_v19 = vmul.f32 %v4879_v55, %v3406_v32 }
 0x4fc   :  { %v4881_v60 = vpop.eup %4880  ;;  %v7410_v53 = vmul.f32 0.015625, %v3068_v27  ;;  %v3349_v11 = vmul.f32 %v7408_v14, %v7408_v14 }
 0x4fd   :  { %3308 = vadd.xlane.f32.xlu0 %v3307_v2  ;;  %v3071_v3 = vpop.xlane.xlu0 %3070  ;;  %v3640_v56 = vmul.f32 %v7405_v39, %v7405_v39  ;;  %v7415_v31 = vadd.f32 %v7391_v35, %v3541_v29  ;;  %v3538_v30 = vmul.f32 %v7382_v59, %v3502_v19  ;;  %v3503_v36 = vmul.f32 %v4881_v60, %v3407_v9 }
 0x4fe   :  { %v7420_v62 = vmul.f32 0.015625, %v3071_v3  ;;  %v3346_v32 = vmul.f32 %v7410_v53, %v7410_v53 }
 0x4ff   :  { %v3234_v52 = vpop.xlane.xlu1 %3233  ;;  %v3672_v7 = vmul.f32 %v3640_v56, %v7405_v39  ;;  %v3641_v5 = vmul.f32 %v7415_v31, %v7415_v31  ;;  %v7426_v12 = vadd.f32 %v7391_v35, %v3538_v30  ;;  %v3539_v21 = vmul.f32 %v7382_v59, %v3503_v36 }
 0x500   :  { %v3316_v63 = vmul.f32 0.015625, %v3234_v52  ;;  %v3347_v19 = vmul.f32 %v7420_v62, %v7420_v62 }
 0x501   :  { %v3237_v57 = vpop.xlane.xlu0 %3236  ;;  %v3704_v13 = vmul.f32 0.044715, %v3672_v7  ;;  %v3673_v41 = vmul.f32 %v3641_v5, %v7415_v31  ;;  %v7433_v2 = vadd.f32 %v7391_v35, %v3539_v21  ;;  %v3638_v9 = vmul.f32 %v7426_v12, %v7426_v12 }
 0x502   :  { %v3380_v22 = vsub.f32 %v3316_v63, %v3348_v50  ;;  %v3317_v42 = vmul.f32 0.015625, %v3237_v57 }
 0x503   :  { %v3228_v1 = vpop.xlane.xlu1 %3227  ;;  %v3705_v29 = vmul.f32 0.044715, %v3673_v41  ;;  %v3639_v60 = vmul.f32 %v7433_v2, %v7433_v2  ;;  %v3736_v56 = vadd.f32 %v3704_v13, %v7405_v39  ;;  %v3670_v50 = vmul.f32 %v3638_v9, %v7426_v12 }
 0x504   :  { %v3444_v47 = vadd.f32 1e-05, %v3380_v22  ;;  %v3381_v27 = vsub.f32 %v3317_v42, %v3349_v11  ;;  %v3314_v55 = vmul.f32 0.015625, %v3228_v1  ;;  %v3413_v9 = vsub.f32 %v7113_v40, %v7408_v14 }
 0x505   :  { %v3231_v3 = vpop.xlane.xlu0 %3230  ;;  %v3671_v63 = vmul.f32 %v3639_v60, %v7433_v2  ;;  %v3737_v7 = vadd.f32 %v3705_v29, %v7415_v31  ;;  %v3768_v5 = vmul.f32 0.7978846, %v3736_v56  ;;  %v3702_v11 = vmul.f32 0.044715, %v3670_v50 }
 0x506   :  { %4882 = vrsqrt.f32 %v3444_v47  ;;  %v3445_v30 = vadd.f32 1e-05, %v3381_v27  ;;  %v3378_v36 = vsub.f32 %v3314_v55, %v3346_v32  ;;  %v3315_v52 = vmul.f32 0.015625, %v3231_v3 }
 0x507   :  { %v3703_v22 = vmul.f32 0.044715, %v3671_v63  ;;  %v3769_v42 = vmul.f32 0.7978846, %v3737_v7  ;;  %v3734_v41 = vadd.f32 %v3702_v11, %v7426_v12  ;;  %v3412_v55 = vsub.f32 %v7105_v45, %v7400_v44 }
 0x508   :  { %4884 = vrsqrt.f32 %v3445_v30  ;;  %v3442_v21 = vadd.f32 1e-05, %v3378_v36  ;;  %v3379_v57 = vsub.f32 %v3315_v52, %v3347_v19  ;;  %v3410_v60 = vsub.f32 %v7110_v0, %v7410_v53 }
 0x509   :  { %4886 = vtanh.f32 %v3768_v5  ;;  %v3735_v32 = vadd.f32 %v3703_v22, %v7433_v2  ;;  %v3766_v1 = vmul.f32 0.7978846, %v3734_v41  ;;  %v3411_v50 = vsub.f32 %v7118_v20, %v7420_v62 }
 0x50a   :  { %4888 = vrsqrt.f32 %v3442_v21  ;;  %v3443_v13 = vadd.f32 1e-05, %v3379_v57  ;;  %v3609_v40 = vmul.f32 0.5, %v7415_v31  ;;  %v3608_v31 = vmul.f32 0.5, %v7405_v39 }
 0x50b   :  { %4890 = vtanh.f32 %v3769_v42  ;;  %v3767_v47 = vmul.f32 0.7978846, %v3735_v32 }
 0x50c   :  { %4892 = vrsqrt.f32 %v3443_v13 }
 0x50d   :  { %4894 = vtanh.f32 %v3766_v1 }
 0x50e   :  { %4896 = vtanh.f32 %v3767_v47  ;;  %v3606_v47 = vmul.f32 0.5, %v7426_v12 }
 0x510   :  { %v4883_v27 = vpop.eup %4882 }
 0x511   :  { %v3508_v19 = vmul.f32 %v4883_v27, %v3412_v55  ;;  %v3607_v27 = vmul.f32 0.5, %v7433_v2 }
 0x512   :  { %v4885_v29 = vpop.eup %4884  ;;  %v3086_v36 = vpop.xlane.xlu1 %3085 }
 0x513   :  { %v4887_v3 = vpop.eup %4886  ;;  %v3509_v56 = vmul.f32 %v4885_v29, %v3413_v9  ;;  %v3544_v45 = vmul.f32 %v7382_v59, %v3508_v19  ;;  %v7461_v57 = vmul.f32 0.015625, %v3086_v36 }
 0x514   :  { %v4889_v30 = vpop.eup %4888  ;;  %v3089_v44 = vpop.xlane.xlu0 %3088  ;;  %v3832_v53 = vadd.f32 1.0, %v4887_v3 }
 0x515   :  { %v4891_v52 = vpop.eup %4890  ;;  %v3506_v63 = vmul.f32 %v4889_v30, %v3410_v60  ;;  %v3545_v5 = vmul.f32 %v7382_v59, %v3509_v56  ;;  %v7463_v11 = vmul.f32 0.015625, %v3089_v44  ;;  %v7471_v32 = vadd.f32 %v7391_v35, %v3544_v45 }
 0x516   :  { %v4893_v7 = vpop.eup %4892  ;;  %v3833_v14 = vadd.f32 1.0, %v4891_v52  ;;  %v3080_v22 = vpop.xlane.xlu1 %3079  ;;  %v3864_v39 = vmul.f32 %v3832_v53, %v3608_v31  ;;  %v3352_v3 = vmul.f32 %v7461_v57, %v7461_v57 }
 0x517   :  { %v3542_v21 = vmul.f32 %v7382_v59, %v3506_v63  ;;  %v3507_v0 = vmul.f32 %v4893_v7, %v3411_v50  ;;  %v4895_v20 = vpop.eup %4894  ;;  %v7476_v9 = vadd.f32 %v7391_v35, %v3545_v5  ;;  %v7481_v19 = vmul.f32 0.015625, %v3080_v22 }
 0x518   :  { %v3865_v13 = vmul.f32 %v3833_v14, %v3609_v40  ;;  %v4897_v41 = vpop.eup %4896  ;;  %v3083_v1 = vpop.xlane.xlu0 %3082  ;;  %v3830_v55 = vadd.f32 1.0, %v4895_v20  ;;  %v3353_v60 = vmul.f32 %v7463_v11, %v7463_v11  ;;  %v3644_v40 = vmul.f32 %v7471_v32, %v7471_v32 }
 0x519   :  { %v7466_v62 = vadd.f32 %v7391_v35, %v3542_v21  ;;  %v3543_v42 = vmul.f32 %v7382_v59, %v3507_v0  ;;  %v3831_v12 = vadd.f32 1.0, %v4897_v41  ;;  %v7489_v30 = vmul.f32 0.015625, %v3083_v1 }
 0x51a   :  { %v3246_v56 = vpop.xlane.xlu1 %3245  ;;  %v3862_v52 = vmul.f32 %v3830_v55, %v3606_v47  ;;  %v3895_v50 = vpack.c.bf16 %v3865_v13, %v3864_v39  ;;  %v3350_v14 = vmul.f32 %v7481_v19, %v7481_v19  ;;  %v3645_v0 = vmul.f32 %v7476_v9, %v7476_v9 }
 0x51b   :  { %v7479_v29 = vadd.f32 %v7391_v35, %v3543_v42  ;;  %v3642_v2 = vmul.f32 %v7466_v62, %v7466_v62  ;;  %v3320_v36 = vmul.f32 0.015625, %v3246_v56  ;;  %v3863_v7 = vmul.f32 %v3831_v12, %v3607_v27 }
 0x51c   :  { %v3249_v63 = vpop.xlane.xlu0 %3248  ;;  %v3676_v31 = vmul.f32 %v3644_v40, %v7471_v32  ;;  %v3677_v47 = vmul.f32 %v3645_v0, %v7476_v9  ;;  %v3351_v27 = vmul.f32 %v7489_v30, %v7489_v30 }
 0x51d   :  { %v3643_v45 = vmul.f32 %v7479_v29, %v7479_v29  ;;  %v3674_v44 = vmul.f32 %v3642_v2, %v7466_v62  ;;  %v3384_v5 = vsub.f32 %v3320_v36, %v3352_v3  ;;  %v3321_v21 = vmul.f32 0.015625, %v3249_v63 }
 0x51e   :  { %v3240_v53 = vpop.xlane.xlu1 %3239  ;;  %v3894_v22 = vpack.c.bf16 %v3863_v7, %v3862_v52  ;;  %v3708_v56 = vmul.f32 0.044715, %v3676_v31  ;;  %v3709_v63 = vmul.f32 0.044715, %v3677_v47 }
 0x51f   :  { %v3675_v20 = vmul.f32 %v3643_v45, %v7479_v29  ;;  %v3706_v42 = vmul.f32 0.044715, %v3674_v44  ;;  %v3448_v13 = vadd.f32 1e-05, %v3384_v5  ;;  %v3385_v41 = vsub.f32 %v3321_v21, %v3353_v60 }
 0x520   :  { %v3318_v1 = vmul.f32 0.015625, %v3240_v53  ;;  %v3243_v55 = vpop.xlane.xlu0 %3242  ;;  %4551 = vmatprep.mubr.msk.bf16.mxu0 %vm802_vm1, %v3894_v22  ;;  %v3740_v7 = vadd.f32 %v3708_v56, %v7471_v32  ;;  %v3741_v5 = vadd.f32 %v3709_v63, %v7476_v9  ;;  %v3416_v53 = vsub.f32 %v7141_v34, %v7461_v57 }
 0x521   :  { %v3707_v39 = vmul.f32 0.044715, %v3675_v20  ;;  %v3738_v3 = vadd.f32 %v3706_v42, %v7466_v62  ;;  %4898 = vrsqrt.f32 %v3448_v13  ;;  %v3449_v12 = vadd.f32 1e-05, %v3385_v41  ;;  %4552 = vmatmul.mubr.msk.bf16.vlgmr.msra.gmra.mrb[48].mxu0 %vm802_vm1, %v3895_v50 }
 0x522   :  { %v3382_v2 = vsub.f32 %v3318_v1, %v3350_v14  ;;  %v3319_v36 = vmul.f32 0.015625, %v3243_v55  ;;  %v3772_v21 = vmul.f32 0.7978846, %v3740_v7  ;;  %v3773_v14 = vmul.f32 0.7978846, %v3741_v5 }
 0x523   :  { %v3739_v60 = vadd.f32 %v3707_v39, %v7479_v29  ;;  %v3770_v52 = vmul.f32 0.7978846, %v3738_v3  ;;  %4900 = vrsqrt.f32 %v3449_v12  ;;  %v3417_v22 = vsub.f32 %v7149_v61, %v7463_v11 }
 0x524   :  { %v3446_v45 = vadd.f32 1e-05, %v3382_v2  ;;  %v3383_v44 = vsub.f32 %v3319_v36, %v3351_v27  ;;  %v3414_v13 = vsub.f32 %v7146_v38, %v7481_v19  ;;  %v3415_v39 = vsub.f32 %v7154_v8, %v7489_v30 }
 0x525   :  { %v3771_v40 = vmul.f32 0.7978846, %v3739_v60  ;;  %4902 = vtanh.f32 %v3770_v52  ;;  %v3610_v34 = vmul.f32 0.5, %v7466_v62  ;;  %v3611_v12 = vmul.f32 0.5, %v7479_v29 }
 0x526   :  { %4904 = vrsqrt.f32 %v3446_v45  ;;  %v3447_v0 = vadd.f32 1e-05, %v3383_v44  ;;  %v3612_v52 = vmul.f32 0.5, %v7471_v32  ;;  %v3613_v7 = vmul.f32 0.5, %v7476_v9 }
 0x527   :  { %4906 = vtanh.f32 %v3771_v40 }
 0x528   :  { %4908 = vrsqrt.f32 %v3447_v0 }
 0x529   :  { %4910 = vtanh.f32 %v3772_v21 }
 0x52a   :  { %4912 = vtanh.f32 %v3773_v14 }
 0x52b   :  { %v4899_v50 = vpop.eup %4898 }
 0x52c   :  { %v3512_v42 = vmul.f32 %v4899_v50, %v3416_v53 }
 0x52d   :  { %v4901_v20 = vpop.eup %4900 }
 0x52e   :  { %v3513_v41 = vmul.f32 %v4901_v20, %v3417_v22  ;;  %v3548_v61 = vmul.f32 %v7382_v59, %v3512_v42 }
 0x52f   :  { %v4903_v31 = vpop.eup %4902  ;;  %v3098_v1 = vpop.xlane.xlu1 %3097 }
 0x530   :  { %v4905_v47 = vpop.eup %4904  ;;  %v3834_v27 = vadd.f32 1.0, %v4903_v31  ;;  %v3549_v11 = vmul.f32 %v7382_v59, %v3513_v41  ;;  %v7525_v30 = vmul.f32 0.015625, %v3098_v1  ;;  %v7533_v21 = vadd.f32 %v7391_v35, %v3548_v61 }
 0x531   :  { %v4907_v55 = vpop.eup %4906  ;;  %v3510_v3 = vmul.f32 %v4905_v47, %v3414_v13  ;;  %v3101_v56 = vpop.xlane.xlu0 %3100 }
 0x532   :  { %v4909_v57 = vpop.eup %4908  ;;  %v3835_v38 = vadd.f32 1.0, %v4907_v55  ;;  %v3866_v63 = vmul.f32 %v3834_v27, %v3610_v34  ;;  %v7536_v32 = vadd.f32 %v7391_v35, %v3549_v11  ;;  %v7538_v0 = vmul.f32 0.015625, %v3101_v56 }
 0x533   :  { %v4911_v19 = vpop.eup %4910  ;;  %v3546_v2 = vmul.f32 %v7382_v59, %v3510_v3  ;;  %v3511_v36 = vmul.f32 %v4909_v57, %v3415_v39  ;;  %v3092_v60 = vpop.xlane.xlu1 %3091  ;;  %v3356_v42 = vmul.f32 %v7525_v30, %v7525_v30  ;;  %v3648_v11 = vmul.f32 %v7533_v21, %v7533_v21 }
 0x534   :  { %v4913_v8 = vpop.eup %4912  ;;  %v3867_v62 = vmul.f32 %v3835_v38, %v3611_v12  ;;  %v3836_v40 = vadd.f32 1.0, %v4911_v19  ;;  %v7543_v9 = vmul.f32 0.015625, %v3092_v60  ;;  %v3357_v55 = vmul.f32 %v7538_v0, %v7538_v0 }
 0x535   :  { %v7529_v45 = vadd.f32 %v7391_v35, %v3546_v2  ;;  %v3547_v29 = vmul.f32 %v7382_v59, %v3511_v36  ;;  %v3095_v44 = vpop.xlane.xlu0 %3094  ;;  %v3837_v5 = vadd.f32 1.0, %v4913_v8  ;;  %v3649_v12 = vmul.f32 %v7536_v32, %v7536_v32 }
 0x536   :  { %v3896_v14 = vpack.c.bf16 %v3867_v62, %v3866_v63  ;;  %v3868_v22 = vmul.f32 %v3836_v40, %v3612_v52  ;;  %v7550_v41 = vmul.f32 0.015625, %v3095_v44  ;;  %v3354_v34 = vmul.f32 %v7543_v9, %v7543_v9 }
 0x537   :  { %v7541_v50 = vadd.f32 %v7391_v35, %v3547_v29  ;;  %v3258_v53 = vpop.xlane.xlu1 %3257  ;;  %v3869_v20 = vmul.f32 %v3837_v5, %v3613_v7  ;;  %v3646_v13 = vmul.f32 %v7529_v45, %v7529_v45  ;;  %v3680_v63 = vmul.f32 %v3648_v11, %v7533_v21 }
 0x538   :  { %v3324_v31 = vmul.f32 0.015625, %v3258_v53  ;;  %4555 = vmatprep.mubr.msk.bf16.mxu0 %vm802_vm1, %v3896_v14  ;;  %v3355_v60 = vmul.f32 %v7550_v41, %v7550_v41  ;;  %v3681_v62 = vmul.f32 %v3649_v12, %v7536_v32 }
 0x539   :  { %v3261_v1 = vpop.xlane.xlu0 %3260  ;;  %v3897_v47 = vpack.c.bf16 %v3869_v20, %v3868_v22  ;;  %v3647_v27 = vmul.f32 %v7541_v50, %v7541_v50  ;;  %v3678_v56 = vmul.f32 %v3646_v13, %v7529_v45  ;;  %v3712_v14 = vmul.f32 0.044715, %v3680_v63 }
 0x53a   :  { %v3388_v39 = vsub.f32 %v3324_v31, %v3356_v42  ;;  %v3325_v3 = vmul.f32 0.015625, %v3261_v1  ;;  %v3713_v53 = vmul.f32 0.044715, %v3681_v62 }
 0x53b   :  { %v3252_v57 = vpop.xlane.xlu1 %3251  ;;  %4556 = vmatmul.mubr.msk.bf16.gmra.mrb[52].mxu0 %vm802_vm1, %v3897_v47  ;;  %v3679_v61 = vmul.f32 %v3647_v27, %v7541_v50  ;;  %v3710_v36 = vmul.f32 0.044715, %v3678_v56  ;;  %v3744_v13 = vadd.f32 %v3712_v14, %v7533_v21  ;;  %v3420_v56 = vsub.f32 %v7177_v48, %v7525_v30 }
 0x53c   :  { %v3452_v38 = vadd.f32 1e-05, %v3388_v39  ;;  %v3389_v19 = vsub.f32 %v3325_v3, %v3357_v55  ;;  %v3322_v2 = vmul.f32 0.015625, %v3252_v57  ;;  %v3745_v1 = vadd.f32 %v3713_v53, %v7536_v32 }
 0x53d   :  { %v3255_v52 = vpop.xlane.xlu0 %3254  ;;  %v3711_v8 = vmul.f32 0.044715, %v3679_v61  ;;  %v3742_v40 = vadd.f32 %v3710_v36, %v7529_v45  ;;  %v3776_v27 = vmul.f32 0.7978846, %v3744_v13  ;;  %v3418_v61 = vsub.f32 %v7182_v23, %v7543_v9 }
 0x53e   :  { %4914 = vrsqrt.f32 %v3452_v38  ;;  %v3453_v7 = vadd.f32 1e-05, %v3389_v19  ;;  %v3386_v29 = vsub.f32 %v3322_v2, %v3354_v34  ;;  %v3323_v44 = vmul.f32 0.015625, %v3255_v52 }
 0x53f   :  { %v3743_v5 = vadd.f32 %v3711_v8, %v7541_v50  ;;  %v3774_v42 = vmul.f32 0.7978846, %v3742_v40  ;;  %v3777_v55 = vmul.f32 0.7978846, %v3745_v1  ;;  %v3421_v34 = vsub.f32 %v7185_v43, %v7538_v0 }
 0x540   :  { %4916 = vrsqrt.f32 %v3453_v7  ;;  %v3450_v22 = vadd.f32 1e-05, %v3386_v29  ;;  %v3387_v20 = vsub.f32 %v3323_v44, %v3355_v60  ;;  %v3419_v36 = vsub.f32 %v7190_v16, %v7550_v41 }
 0x541   :  { %v3775_v31 = vmul.f32 0.7978846, %v3743_v5  ;;  %v3614_v48 = vmul.f32 0.5, %v7529_v45  ;;  %v3615_v30 = vmul.f32 0.5, %v7541_v50  ;;  %v3616_v0 = vmul.f32 0.5, %v7533_v21 }
 0x542   :  { %4918 = vrsqrt.f32 %v3450_v22  ;;  %v3451_v47 = vadd.f32 1e-05, %v3387_v20  ;;  %v3617_v7 = vmul.f32 0.5, %v7536_v32 }
 0x543   :  { %4920 = vtanh.f32 %v3774_v42 }
 0x544   :  { %4922 = vrsqrt.f32 %v3451_v47 }
 0x545   :  { %4924 = vtanh.f32 %v3775_v31 }
 0x546   :  { %4926 = vtanh.f32 %v3776_v27 }
 0x547   :  { %4928 = vtanh.f32 %v3777_v55 }
 0x548   :  { %v4915_v39 = vpop.eup %4914 }
 0x549   :  { %v3516_v12 = vmul.f32 %v4915_v39, %v3420_v56 }
 0x54a   :  { %v4917_v3 = vpop.eup %4916 }
 0x54b   :  { %v3517_v38 = vmul.f32 %v4917_v3, %v3421_v34  ;;  %v3552_v16 = vmul.f32 %v7382_v59, %v3516_v12 }
 0x54c   :  { %v3110_v57 = vpop.xlane.xlu1 %3109  ;;  %v4919_v11 = vpop.eup %4918 }
 0x54d   :  { %v4921_v2 = vpop.eup %4920  ;;  %v3514_v60 = vmul.f32 %v4919_v11, %v3418_v61  ;;  %v7585_v62 = vmul.f32 0.015625, %v3110_v57  ;;  %v3553_v41 = vmul.f32 %v7382_v59, %v3517_v38  ;;  %v7608_v55 = vadd.f32 %v7391_v35, %v3552_v16 }
 0x54e   :  { %v3113_v19 = vpop.xlane.xlu0 %3112  ;;  %v4923_v52 = vpop.eup %4922  ;;  %v3838_v43 = vadd.f32 1.0, %v4921_v2 }
 0x54f   :  { %v4925_v63 = vpop.eup %4924  ;;  %v3550_v23 = vmul.f32 %v7382_v59, %v3514_v60  ;;  %v3515_v9 = vmul.f32 %v4923_v52, %v3419_v36  ;;  %v7590_v44 = vmul.f32 0.015625, %v3113_v19  ;;  %v3360_v1 = vmul.f32 %v7585_v62, %v7585_v62 }
 0x550   :  { %v3104_v8 = vpop.xlane.xlu1 %3103  ;;  %v4927_v29 = vpop.eup %4926  ;;  %v3839_v50 = vadd.f32 1.0, %v4925_v63  ;;  %v3870_v53 = vmul.f32 %v3838_v43, %v3614_v48  ;;  %v7611_v39 = vadd.f32 %v7391_v35, %v3553_v41 }
 0x551   :  { %v4929_v40 = vpop.eup %4928  ;;  %v7593_v21 = vadd.f32 %v7391_v35, %v3550_v23  ;;  %v3551_v5 = vmul.f32 %v7382_v59, %v3515_v9  ;;  %v7596_v14 = vmul.f32 0.015625, %v3104_v8  ;;  %v3840_v42 = vadd.f32 1.0, %v4927_v29 }
 0x552   :  { %v3107_v45 = vpop.xlane.xlu0 %3106  ;;  %v3871_v20 = vmul.f32 %v3839_v50, %v3615_v30  ;;  %v3841_v31 = vadd.f32 1.0, %v4929_v40  ;;  %v3361_v3 = vmul.f32 %v7590_v44, %v7590_v44  ;;  %v3652_v23 = vmul.f32 %v7608_v55, %v7608_v55 }
 0x553   :  { %v7598_v22 = vmul.f32 0.015625, %v3107_v45  ;;  %v7601_v13 = vadd.f32 %v7391_v35, %v3551_v5  ;;  %v3650_v27 = vmul.f32 %v7593_v21, %v7593_v21  ;;  %v3872_v11 = vmul.f32 %v3840_v42, %v3616_v0 }
 0x554   :  { %v3270_v32 = vpop.xlane.xlu1 %3269  ;;  %v3898_v34 = vpack.c.bf16 %v3871_v20, %v3870_v53  ;;  %v3873_v12 = vmul.f32 %v3841_v31, %v3617_v7  ;;  %v3358_v38 = vmul.f32 %v7596_v14, %v7596_v14  ;;  %v3653_v9 = vmul.f32 %v7611_v39, %v7611_v39 }
 0x555   :  { %v3328_v47 = vmul.f32 0.015625, %v3270_v32  ;;  %v3359_v19 = vmul.f32 %v7598_v22, %v7598_v22  ;;  %v3651_v36 = vmul.f32 %v7601_v13, %v7601_v13  ;;  %v3682_v60 = vmul.f32 %v3650_v27, %v7593_v21 }
 0x556   :  { %v3273_v56 = vpop.xlane.xlu0 %3272  ;;  %4559 = vmatprep.mubr.msk.bf16.mxu0 %vm802_vm1, %v3898_v34  ;;  %v3899_v30 = vpack.c.bf16 %v3873_v12, %v3872_v11  ;;  %v3684_v40 = vmul.f32 %v3652_v23, %v7608_v55  ;;  %v3685_v5 = vmul.f32 %v3653_v9, %v7611_v39  ;;  %v3423_v23 = vsub.f32 %v7232_v18, %v7598_v22 }
 0x557   :  { %v3392_v57 = vsub.f32 %v3328_v47, %v3360_v1  ;;  %v3329_v61 = vmul.f32 0.015625, %v3273_v56  ;;  %v3683_v0 = vmul.f32 %v3651_v36, %v7601_v13  ;;  %v3714_v63 = vmul.f32 0.044715, %v3682_v60 }
 0x558   :  { %v3264_v2 = vpop.xlane.xlu1 %3263  ;;  %4560 = vmatmul.mubr.msk.bf16.gmra.mrb[56].mxu0 %vm802_vm1, %v3899_v30  ;;  %v3716_v1 = vmul.f32 0.044715, %v3684_v40  ;;  %v3717_v47 = vmul.f32 0.044715, %v3685_v5  ;;  %v3425_v30 = vsub.f32 %v7227_v26, %v7590_v44 }
 0x559   :  { %v3456_v52 = vadd.f32 1e-05, %v3392_v57  ;;  %v3393_v8 = vsub.f32 %v3329_v61, %v3361_v3  ;;  %v3326_v48 = vmul.f32 0.015625, %v3264_v2  ;;  %v3715_v45 = vmul.f32 0.044715, %v3683_v0 }
 0x55a   :  { %v3267_v43 = vpop.xlane.xlu0 %3266  ;;  %v3746_v50 = vadd.f32 %v3714_v63, %v7593_v21  ;;  %v3748_v34 = vadd.f32 %v3716_v1, %v7608_v55  ;;  %v3749_v61 = vadd.f32 %v3717_v47, %v7611_v39  ;;  %v3424_v2 = vsub.f32 %v7219_v10, %v7585_v62 }
 0x55b   :  { %4930 = vrsqrt.f32 %v3456_v52  ;;  %v3457_v7 = vadd.f32 1e-05, %v3393_v8  ;;  %v3390_v29 = vsub.f32 %v3326_v48, %v3358_v38  ;;  %v3327_v16 = vmul.f32 0.015625, %v3267_v43 }
 0x55c   :  { %v3122_v41 = vpop.xlane.xlu1 %3121  ;;  %v3747_v42 = vadd.f32 %v3715_v45, %v7601_v13  ;;  %v3778_v31 = vmul.f32 0.7978846, %v3746_v50  ;;  %v3780_v12 = vmul.f32 0.7978846, %v3748_v34  ;;  %v3422_v43 = vsub.f32 %v7224_v4, %v7596_v14 }
 0x55d   :  { %4932 = vrsqrt.f32 %v3457_v7  ;;  %v3454_v53 = vadd.f32 1e-05, %v3390_v29  ;;  %v3391_v32 = vsub.f32 %v3327_v16, %v3359_v19  ;;  %v7634_v57 = vmul.f32 0.015625, %v3122_v41 }
 0x55e   :  { %v3125_v20 = vpop.xlane.xlu0 %3124  ;;  %v3779_v56 = vmul.f32 0.7978846, %v3747_v42  ;;  %v3781_v19 = vmul.f32 0.7978846, %v3749_v61  ;;  %v3618_v10 = vmul.f32 0.5, %v7593_v21  ;;  %v3619_v4 = vmul.f32 0.5, %v7601_v13 }
 0x55f   :  { %4934 = vrsqrt.f32 %v3454_v53  ;;  %v3455_v27 = vadd.f32 1e-05, %v3391_v32  ;;  %v7637_v38 = vmul.f32 0.015625, %v3125_v20  ;;  %v3364_v52 = vmul.f32 %v7634_v57, %v7634_v57 }
 0x560   :  { %v3116_v3 = vpop.xlane.xlu1 %3115  ;;  %4936 = vtanh.f32 %v3778_v31  ;;  %v3428_v26 = vsub.f32 %v7252_v54, %v7634_v57  ;;  %v3620_v14 = vmul.f32 0.5, %v7608_v55  ;;  %v3621_v16 = vmul.f32 0.5, %v7611_v39 }
 0x561   :  { %4938 = vrsqrt.f32 %v3455_v27  ;;  %v7643_v8 = vmul.f32 0.015625, %v3116_v3  ;;  %v3365_v9 = vmul.f32 %v7637_v38, %v7637_v38  ;;  %v3429_v27 = vsub.f32 %v7262_v25, %v7637_v38 }
 0x562   :  { %v3119_v11 = vpop.xlane.xlu0 %3118  ;;  %4940 = vtanh.f32 %v3779_v56 }
 0x563   :  { %4942 = vtanh.f32 %v3780_v12  ;;  %v7649_v0 = vmul.f32 0.015625, %v3119_v11  ;;  %v3362_v41 = vmul.f32 %v7643_v8, %v7643_v8  ;;  %v3426_v34 = vsub.f32 %v7271_v58, %v7643_v8 }
 0x564   :  { %v3282_v36 = vpop.xlane.xlu1 %3281  ;;  %4944 = vtanh.f32 %v3781_v19 }
 0x565   :  { %v4931_v60 = vpop.eup %4930  ;;  %v3332_v48 = vmul.f32 0.015625, %v3282_v36  ;;  %v3363_v32 = vmul.f32 %v7649_v0, %v7649_v0 }
 0x566   :  { %v3285_v63 = vpop.xlane.xlu0 %3284  ;;  %v3520_v40 = vmul.f32 %v4931_v60, %v3424_v2 }
 0x567   :  { %v4933_v62 = vpop.eup %4932  ;;  %v3396_v7 = vsub.f32 %v3332_v48, %v3364_v52  ;;  %v3333_v29 = vmul.f32 0.015625, %v3285_v63 }
 0x568   :  { %v3276_v44 = vpop.xlane.xlu1 %3275  ;;  %v3521_v5 = vmul.f32 %v4933_v62, %v3425_v30  ;;  %v3556_v19 = vmul.f32 %v7382_v59, %v3520_v40 }
 0x569   :  { %v4935_v21 = vpop.eup %4934  ;;  %v3460_v18 = vadd.f32 1e-05, %v3396_v7  ;;  %v3397_v22 = vsub.f32 %v3333_v29, %v3365_v9  ;;  %v3330_v45 = vmul.f32 0.015625, %v3276_v44  ;;  %v3427_v44 = vsub.f32 %v7276_v33, %v7649_v0 }
 0x56a   :  { %v4937_v50 = vpop.eup %4936  ;;  %v3518_v53 = vmul.f32 %v4935_v21, %v3422_v43  ;;  %v3279_v20 = vpop.xlane.xlu0 %3278  ;;  %v3557_v2 = vmul.f32 %v7382_v59, %v3521_v5 }
 0x56b   :  { %v4939_v13 = vpop.eup %4938  ;;  %4946 = vrsqrt.f32 %v3460_v18  ;;  %v3461_v55 = vadd.f32 1e-05, %v3397_v22  ;;  %v3394_v42 = vsub.f32 %v3330_v45, %v3362_v41  ;;  %v3331_v39 = vmul.f32 0.015625, %v3279_v20 }
 0x56c   :  { %v4941_v31 = vpop.eup %4940  ;;  %v3554_v1 = vmul.f32 %v7382_v59, %v3518_v53  ;;  %v3519_v47 = vmul.f32 %v4939_v13, %v3423_v23  ;;  %v3134_v3 = vpop.xlane.xlu1 %3133  ;;  %v3842_v56 = vadd.f32 1.0, %v4937_v50  ;;  %v7684_v18 = vadd.f32 %v7391_v35, %v3556_v19 }
 0x56d   :  { %4948 = vrsqrt.f32 %v3461_v55  ;;  %v3458_v61 = vadd.f32 1e-05, %v3394_v42  ;;  %v3395_v11 = vsub.f32 %v3331_v39, %v3363_v32  ;;  %v4943_v12 = vpop.eup %4942  ;;  %v3843_v52 = vadd.f32 1.0, %v4941_v31 }
 0x56e   :  { %v3555_v36 = vmul.f32 %v7382_v59, %v3519_v47  ;;  %v3137_v60 = vpop.xlane.xlu0 %3136  ;;  %v4945_v48 = vpop.eup %4944  ;;  %v3590_v30 = vadd.f32 %v7391_v35, %v3554_v1  ;;  %v7674_v63 = vmul.f32 0.015625, %v3134_v3  ;;  %v3874_v9 = vmul.f32 %v3842_v56, %v3618_v10 }
 0x56f   :  { %4950 = vrsqrt.f32 %v3458_v61  ;;  %v3459_v43 = vadd.f32 1e-05, %v3395_v11  ;;  %v3875_v7 = vmul.f32 %v3843_v52, %v3619_v4  ;;  %v3844_v29 = vadd.f32 1.0, %v4943_v12 }
 0x570   :  { %v7677_v62 = vadd.f32 %v7391_v35, %v3555_v36  ;;  %v3128_v23 = vpop.xlane.xlu1 %3127  ;;  %v7681_v21 = vmul.f32 0.015625, %v3137_v60  ;;  %v3845_v41 = vadd.f32 1.0, %v4945_v48  ;;  %v7687_v22 = vadd.f32 %v7391_v35, %v3557_v2 }
 0x571   :  { %4952 = vrsqrt.f32 %v3459_v43  ;;  %v7689_v45 = vmul.f32 0.015625, %v3128_v23  ;;  %v3900_v40 = vpack.c.bf16 %v3875_v7, %v3874_v9  ;;  %v3368_v10 = vmul.f32 %v7674_v63, %v7674_v63 }
 0x572   :  { %v3131_v50 = vpop.xlane.xlu0 %3130  ;;  %v3432_v33 = vsub.f32 %v7295_v15, %v7674_v63  ;;  %v3876_v0 = vmul.f32 %v3844_v29, %v3620_v14  ;;  %v3877_v4 = vmul.f32 %v3845_v41, %v3621_v16  ;;  %v7698_v32 = vmul.f32 0.5, %v3590_v30 }
 0x573   :  { %v7695_v5 = vmul.f32 0.015625, %v3131_v50  ;;  %4563 = vmatprep.mubr.msk.bf16.mxu0 %vm802_vm1, %v3900_v40  ;;  %v3654_v20 = vmul.f32 %v3590_v30, %v3590_v30  ;;  %v3655_v13 = vmul.f32 %v7677_v62, %v7677_v62  ;;  %v3369_v42 = vmul.f32 %v7681_v21, %v7681_v21 }
 0x574   :  { %v3294_v53 = vpop.xlane.xlu1 %3293  ;;  %v3433_v39 = vsub.f32 %v7303_v17, %v7681_v21  ;;  %v3901_v16 = vpack.c.bf16 %v3877_v4, %v3876_v0  ;;  %v3366_v31 = vmul.f32 %v7689_v45, %v7689_v45  ;;  %v3430_v1 = vsub.f32 %v7311_v24, %v7689_v45 }
 0x575   :  { %v4947_v55 = vpop.eup %4946  ;;  %v3336_v14 = vmul.f32 0.015625, %v3294_v53  ;;  %v3686_v3 = vmul.f32 %v3654_v20, %v3590_v30  ;;  %v3687_v56 = vmul.f32 %v3655_v13, %v7677_v62  ;;  %v7713_v19 = vmul.f32 0.5, %v7677_v62 }
 0x576   :  { %v3297_v47 = vpop.xlane.xlu0 %3296  ;;  %4564 = vmatmul.mubr.msk.bf16.gmra.mrb[60].mxu0 %vm802_vm1, %v3901_v16  ;;  %v7716_v2 = vmul.f32 0.5, %v7684_v18  ;;  %v3524_v36 = vmul.f32 %v4947_v55, %v3428_v26  ;;  %v3367_v60 = vmul.f32 %v7695_v5, %v7695_v5  ;;  %v3656_v41 = vmul.f32 %v7684_v18, %v7684_v18 }
 0x577   :  { %v4949_v61 = vpop.eup %4948  ;;  %v3400_v11 = vsub.f32 %v3336_v14, %v3368_v10  ;;  %v3337_v12 = vmul.f32 0.015625, %v3297_v47  ;;  %v3718_v48 = vmul.f32 0.044715, %v3686_v3  ;;  %v3719_v43 = vmul.f32 0.044715, %v3687_v56 }
 0x578   :  { %v3288_v52 = vpop.xlane.xlu1 %3287  ;;  %v3525_v50 = vmul.f32 %v4949_v61, %v3429_v27  ;;  %v3657_v40 = vmul.f32 %v7687_v22, %v7687_v22  ;;  %v3560_v20 = vmul.f32 %v7382_v59, %v3524_v36 }
 0x579   :  { %v4951_v23 = vpop.eup %4950  ;;  %v3464_v9 = vadd.f32 1e-05, %v3400_v11  ;;  %v3401_v7 = vsub.f32 %v3337_v12, %v3369_v42  ;;  %v3334_v29 = vmul.f32 0.015625, %v3288_v52  ;;  %v3750_v26 = vadd.f32 %v3718_v48, %v3590_v30 }
 0x57a   :  { %v3522_v54 = vmul.f32 %v4951_v23, %v3426_v34  ;;  %v3291_v57 = vpop.xlane.xlu0 %3290  ;;  %v3751_v27 = vadd.f32 %v3719_v43, %v7677_v62  ;;  %v3688_v34 = vmul.f32 %v3656_v41, %v7684_v18  ;;  %v3561_v30 = vmul.f32 %v7382_v59, %v3525_v50 }
 0x57b   :  { %v4953_v10 = vpop.eup %4952  ;;  %4954 = vrsqrt.f32 %v3464_v9  ;;  %v3465_v0 = vadd.f32 1e-05, %v3401_v7  ;;  %v3398_v4 = vsub.f32 %v3334_v29, %v3366_v31  ;;  %v3335_v53 = vmul.f32 0.015625, %v3291_v57 }
 0x57c   :  { %v3558_v13 = vmul.f32 %v7382_v59, %v3522_v54  ;;  %v3523_v25 = vmul.f32 %v4953_v10, %v3427_v44  ;;  %v3146_v38 = vpop.xlane.xlu1 %3145  ;;  %v3782_v14 = vmul.f32 0.7978846, %v3750_v26  ;;  %v3783_v16 = vmul.f32 0.7978846, %v3751_v27 }
 0x57d   :  { %4956 = vrsqrt.f32 %v3465_v0  ;;  %v3462_v58 = vadd.f32 1e-05, %v3398_v4  ;;  %v3399_v8 = vsub.f32 %v3335_v53, %v3367_v60  ;;  %v3431_v31 = vsub.f32 %v7316_v37, %v7695_v5 }
 0x57e   :  { %v3559_v55 = vmul.f32 %v7382_v59, %v3523_v25  ;;  %v3149_v42 = vpop.xlane.xlu0 %3148  ;;  %v7741_v47 = vmul.f32 0.015625, %v3146_v38  ;;  %v3594_v62 = vadd.f32 %v7391_v35, %v3558_v13  ;;  %v3689_v61 = vmul.f32 %v3657_v40, %v7687_v22 }
 0x57f   :  { %4958 = vrsqrt.f32 %v3462_v58  ;;  %v3463_v44 = vadd.f32 1e-05, %v3399_v8  ;;  %v7751_v12 = vmul.f32 0.5, %v7687_v22  ;;  %v3720_v36 = vmul.f32 0.044715, %v3688_v34 }
 0x580   :  { %v7745_v3 = vadd.f32 %v7391_v35, %v3559_v55  ;;  %v3140_v56 = vpop.xlane.xlu1 %3139  ;;  %4960 = vtanh.f32 %v3782_v14  ;;  %v7754_v60 = vadd.f32 %v7391_v35, %v3560_v20  ;;  %v7757_v52 = vadd.f32 %v7391_v35, %v3561_v30 }
 0x581   :  { %4962 = vrsqrt.f32 %v3463_v44  ;;  %v7748_v11 = vmul.f32 0.015625, %v3140_v56  ;;  %v3721_v43 = vmul.f32 0.044715, %v3689_v61  ;;  %v3372_v23 = vmul.f32 %v7741_v47, %v7741_v47 }
 0x582   :  { %v3143_v48 = vpop.xlane.xlu0 %3142  ;;  %4964 = vtanh.f32 %v3783_v16  ;;  %v3436_v9 = vsub.f32 %v7334_v28, %v7741_v47  ;;  %v3752_v29 = vadd.f32 %v3720_v36, %v7684_v18  ;;  %v7766_v41 = vmul.f32 0.015625, %v3149_v42 }
 0x583   :  { %v7763_v7 = vmul.f32 0.015625, %v3143_v48  ;;  %v3753_v54 = vadd.f32 %v3721_v43, %v7687_v22  ;;  %v3658_v57 = vmul.f32 %v3594_v62, %v3594_v62  ;;  %v3659_v26 = vmul.f32 %v7745_v3, %v7745_v3 }
 0x584   :  { %v3300_v50 = vpop.xlane.xlu1 %3299  ;;  %v3370_v10 = vmul.f32 %v7748_v11, %v7748_v11  ;;  %v3784_v4 = vmul.f32 0.7978846, %v3752_v29  ;;  %v7773_v53 = vmul.f32 0.5, %v3594_v62  ;;  %v3373_v15 = vmul.f32 %v7766_v41, %v7766_v41 }
 0x585   :  { %v4955_v40 = vpop.eup %4954  ;;  %v3338_v0 = vmul.f32 0.015625, %v3300_v50  ;;  %v3785_v13 = vmul.f32 0.7978846, %v3753_v54  ;;  %v3690_v25 = vmul.f32 %v3658_v57, %v3594_v62  ;;  %v3691_v22 = vmul.f32 %v3659_v26, %v7745_v3 }
 0x586   :  { %v3528_v18 = vmul.f32 %v4955_v40, %v3432_v33  ;;  %v3303_v20 = vpop.xlane.xlu0 %3302  ;;  %v3371_v27 = vmul.f32 %v7763_v7, %v7763_v7  ;;  %4966 = vtanh.f32 %v3784_v4  ;;  %v3437_v55 = vsub.f32 %v7344_v51, %v7766_v41 }
 0x587   :  { %v4957_v38 = vpop.eup %4956  ;;  %v3402_v58 = vsub.f32 %v3338_v0, %v3370_v10  ;;  %v3339_v8 = vmul.f32 0.015625, %v3303_v20  ;;  %4968 = vtanh.f32 %v3785_v13  ;;  %v3722_v33 = vmul.f32 0.044715, %v3690_v25 }
 0x588   :  { %v3529_v34 = vmul.f32 %v4957_v38, %v3433_v39  ;;  %v3306_v63 = vpop.xlane.xlu1 %3305  ;;  %v3564_v56 = vmul.f32 %v7382_v59, %v3528_v18  ;;  %v3723_v39 = vmul.f32 0.044715, %v3691_v22  ;;  %v3660_v13 = vmul.f32 %v7754_v60, %v7754_v60 }
 0x589   :  { %v4959_v30 = vpop.eup %4958  ;;  %v3466_v42 = vadd.f32 1e-05, %v3402_v58  ;;  %v3403_v14 = vsub.f32 %v3339_v8, %v3371_v27  ;;  %v3340_v16 = vmul.f32 0.015625, %v3306_v63  ;;  %v3754_v61 = vadd.f32 %v3722_v33, %v3594_v62 }
 0x58a   :  { %v4961_v44 = vpop.eup %4960  ;;  %v3526_v17 = vmul.f32 %v4959_v30, %v3430_v1  ;;  %v3309_v21 = vpop.xlane.xlu0 %3308  ;;  %v3565_v54 = vmul.f32 %v7382_v59, %v3529_v34  ;;  %v3755_v0 = vadd.f32 %v3723_v39, %v7745_v3  ;;  %v3627_v63 = vmul.f32 0.5, %v7745_v3 }
 0x58b   :  { %v4963_v36 = vpop.eup %4962  ;;  %4970 = vrsqrt.f32 %v3466_v42  ;;  %v3467_v48 = vadd.f32 1e-05, %v3403_v14  ;;  %v3404_v43 = vsub.f32 %v3340_v16, %v3372_v23  ;;  %v3341_v29 = vmul.f32 0.015625, %v3309_v21 }
 0x58c   :  { %v4965_v50 = vpop.eup %4964  ;;  %v3562_v57 = vmul.f32 %v7382_v59, %v3526_v17  ;;  %v3527_v26 = vmul.f32 %v4963_v36, %v3431_v31  ;;  %v3846_v40 = vadd.f32 1.0, %v4961_v44  ;;  %v3786_v37 = vmul.f32 0.7978846, %v3754_v61 }
 0x58d   :  { %4972 = vrsqrt.f32 %v3467_v48  ;;  %v3468_v24 = vadd.f32 1e-05, %v3404_v43  ;;  %v3405_v45 = vsub.f32 %v3341_v29, %v3373_v15  ;;  %v3847_v1 = vadd.f32 1.0, %v4965_v50 }
 0x58e   :  { %v7798_v62 = vadd.f32 %v7391_v35, %v3562_v57  ;;  %v3563_v23 = vmul.f32 %v7382_v59, %v3527_v26  ;;  %v3878_v10 = vmul.f32 %v3846_v40, %v7698_v32  ;;  %v3434_v31 = vsub.f32 %v7357_v49, %v7748_v11 }
 0x58f   :  { %4974 = vrsqrt.f32 %v3468_v24  ;;  %v3469_v4 = vadd.f32 1e-05, %v3405_v45  ;;  %v3879_v18 = vmul.f32 %v3847_v1, %v7713_v19  ;;  %v3787_v20 = vmul.f32 0.7978846, %v3755_v0 }
 0x590   :  { %v7805_v5 = vadd.f32 %v7391_v35, %v3563_v23  ;;  %v4967_v25 = vpop.eup %4966  ;;  %v7812_v32 = vadd.f32 %v7391_v35, %v3564_v56  ;;  %v3661_v19 = vmul.f32 %v7757_v52, %v7757_v52  ;;  %v7817_v27 = vadd.f32 %v7391_v35, %v3565_v54 }
 0x591   :  { %4976 = vrsqrt.f32 %v3469_v4  ;;  %v3902_v22 = vpack.c.bf16 %v3879_v18, %v3878_v10  ;;  %v4969_v38 = vpop.eup %4968  ;;  %v3848_v58 = vadd.f32 1.0, %v4967_v25  ;;  %v3692_v49 = vmul.f32 %v3660_v13, %v7754_v60 }
 0x592   :  { %4978 = vtanh.f32 %v3786_v37  ;;  %v3849_v11 = vadd.f32 1.0, %v4969_v38  ;;  %v3693_v8 = vmul.f32 %v3661_v19, %v7757_v52  ;;  %v3662_v34 = vmul.f32 %v7798_v62, %v7798_v62 }
 0x593   :  { %4567 = vmatprep.mubr.msk.bf16.mxu0 %vm802_vm1, %v3902_v22  ;;  %4980 = vtanh.f32 %v3787_v20  ;;  %v3435_v15 = vsub.f32 %v7364_v46, %v7763_v7  ;;  %v3724_v33 = vmul.f32 0.044715, %v3692_v49  ;;  %v3663_v30 = vmul.f32 %v7805_v5, %v7805_v5 }
 0x594   :  { %v3880_v14 = vmul.f32 %v3848_v58, %v7716_v2  ;;  %v3881_v16 = vmul.f32 %v3849_v11, %v7751_v12  ;;  %v3725_v44 = vmul.f32 0.044715, %v3693_v8  ;;  %v3694_v56 = vmul.f32 %v3662_v34, %v7798_v62 }
 0x595   :  { %v4971_v42 = vpop.eup %4970  ;;  %v3756_v21 = vadd.f32 %v3724_v33, %v7754_v60  ;;  %v3695_v39 = vmul.f32 %v3663_v30, %v7805_v5  ;;  %v3664_v46 = vmul.f32 %v7812_v32, %v7812_v32  ;;  %v3665_v2 = vmul.f32 %v7817_v27, %v7817_v27 }
 0x596   :  { %v3530_v17 = vmul.f32 %v4971_v42, %v3434_v31  ;;  %v3903_v7 = vpack.c.bf16 %v3881_v16, %v3880_v14  ;;  %v3757_v61 = vadd.f32 %v3725_v44, %v7757_v52  ;;  %v3726_v36 = vmul.f32 0.044715, %v3694_v56 }
 0x597   :  { %v4973_v3 = vpop.eup %4972  ;;  %v3788_v43 = vmul.f32 0.7978846, %v3756_v21  ;;  %v3727_v29 = vmul.f32 0.044715, %v3695_v39  ;;  %v3696_v26 = vmul.f32 %v3664_v46, %v7812_v32  ;;  %v3697_v40 = vmul.f32 %v3665_v2, %v7817_v27 }
 0x598   :  { %v3566_v12 = vmul.f32 %v7382_v59, %v3530_v17  ;;  %v3531_v48 = vmul.f32 %v4973_v3, %v3435_v15  ;;  %4568 = vmatmul.mubr.msk.bf16.gmra.mrb[64].mxu0 %vm802_vm1, %v3903_v7  ;;  %v3789_v54 = vmul.f32 0.7978846, %v3757_v61  ;;  %v3758_v57 = vadd.f32 %v3726_v36, %v7798_v62 }
 0x599   :  { %v4975_v50 = vpop.eup %4974  ;;  %4982 = vtanh.f32 %v3788_v43  ;;  %v3759_v10 = vadd.f32 %v3727_v29, %v7805_v5  ;;  %v3728_v4 = vmul.f32 0.044715, %v3696_v26  ;;  %v3729_v13 = vmul.f32 0.044715, %v3697_v40 }
 0x59a   :  { %v7845_v24 = vadd.f32 %v7391_v35, %v3566_v12  ;;  %v3567_v45 = vmul.f32 %v7382_v59, %v3531_v48  ;;  %v3532_v1 = vmul.f32 %v4975_v50, %v3436_v9  ;;  %4984 = vtanh.f32 %v3789_v54 }
 0x59b   :  { %v4977_v23 = vpop.eup %4976  ;;  %v3790_v0 = vmul.f32 0.7978846, %v3758_v57  ;;  %v3791_v9 = vmul.f32 0.7978846, %v3759_v10  ;;  %v3760_v25 = vadd.f32 %v3728_v4, %v7812_v32  ;;  %v3761_v58 = vadd.f32 %v3729_v13, %v7817_v27 }
 0x59c   :  { %v4979_v18 = vpop.eup %4978  ;;  %v7853_v37 = vadd.f32 %v7391_v35, %v3567_v45  ;;  %v3568_v31 = vmul.f32 %v7382_v59, %v3532_v1  ;;  %v3533_v20 = vmul.f32 %v4977_v23, %v3437_v55  ;;  %v3666_v8 = vmul.f32 %v7845_v24, %v7845_v24 }
 0x59d   :  { %v4981_v28 = vpop.eup %4980  ;;  %v3850_v47 = vadd.f32 1.0, %v4979_v18  ;;  %4986 = vtanh.f32 %v3790_v0  ;;  %v3792_v49 = vmul.f32 0.7978846, %v3760_v25  ;;  %v3793_v11 = vmul.f32 0.7978846, %v3761_v58 }
 0x59e   :  { %v7861_v22 = vadd.f32 %v7391_v35, %v3568_v31  ;;  %v3569_v19 = vmul.f32 %v7382_v59, %v3533_v20  ;;  %v3851_v38 = vadd.f32 1.0, %v4981_v28  ;;  %4988 = vtanh.f32 %v3791_v9 }
 0x59f   :  { %v3882_v41 = vmul.f32 %v3850_v47, %v7773_v53  ;;  %4990 = vtanh.f32 %v3792_v49  ;;  %v3667_v34 = vmul.f32 %v7853_v37, %v7853_v37  ;;  %v3698_v33 = vmul.f32 %v3666_v8, %v7845_v24 }
 0x5a0   :  { %v7866_v51 = vadd.f32 %v7391_v35, %v3569_v19  ;;  %v3883_v55 = vmul.f32 %v3851_v38, %v3627_v63  ;;  %4992 = vtanh.f32 %v3793_v11  ;;  %v3668_v15 = vmul.f32 %v7861_v22, %v7861_v22 }
 0x5a1   :  { %v3699_v35 = vmul.f32 %v3667_v34, %v7853_v37  ;;  %v3730_v16 = vmul.f32 0.044715, %v3698_v33  ;;  %v3628_v17 = vmul.f32 0.5, %v7754_v60  ;;  %v3629_v21 = vmul.f32 0.5, %v7757_v52 }
 0x5a2   :  { %v3904_v59 = vpack.c.bf16 %v3883_v55, %v3882_v41  ;;  %v3669_v53 = vmul.f32 %v7866_v51, %v7866_v51  ;;  %v3700_v30 = vmul.f32 %v3668_v15, %v7861_v22  ;;  %v3630_v50 = vmul.f32 0.5, %v7798_v62 }
 0x5a3   :  { %v4983_v63 = vpop.eup %4982  ;;  %v3731_v44 = vmul.f32 0.044715, %v3699_v35  ;;  %v3762_v7 = vadd.f32 %v3730_v16, %v7845_v24  ;;  %v3631_v26 = vmul.f32 0.5, %v7805_v5  ;;  %v3633_v62 = vmul.f32 0.5, %v7817_v27 }
 0x5a4   :  { %4571 = vmatprep.mubr.msk.bf16.mxu0 %vm802_vm1, %v3904_v59  ;;  %v4985_v42 = vpop.eup %4984  ;;  %v3852_v14 = vadd.f32 1.0, %v4983_v63  ;;  %v3701_v56 = vmul.f32 %v3669_v53, %v7866_v51  ;;  %v3732_v46 = vmul.f32 0.044715, %v3700_v30  ;;  %v3632_v13 = vmul.f32 0.5, %v7812_v32 }
 0x5a5   :  { %v3853_v39 = vadd.f32 1.0, %v4985_v42  ;;  %v3763_v61 = vadd.f32 %v3731_v44, %v7853_v37  ;;  %v3794_v54 = vmul.f32 0.7978846, %v3762_v7  ;;  %v3634_v58 = vmul.f32 0.5, %v7845_v24  ;;  %v5004_v24 = vld [vmem:[%s8039_s4 + $0x8] sm:$0x7] }
 0x5a6   :  { %v3733_v36 = vmul.f32 0.044715, %v3701_v56  ;;  %v3884_v2 = vmul.f32 %v3852_v14, %v3628_v17  ;;  %v3764_v43 = vadd.f32 %v3732_v46, %v7861_v22  ;;  %v3635_v27 = vmul.f32 0.5, %v7853_v37 }
 0x5a7   :  { %v4987_v3 = vpop.eup %4986  ;;  %v3885_v12 = vmul.f32 %v3853_v39, %v3629_v21  ;;  %v3795_v60 = vmul.f32 0.7978846, %v3763_v61  ;;  %4994 = vtanh.f32 %v3794_v54  ;;  %v3636_v32 = vmul.f32 0.5, %v7861_v22 }
 0x5a8   :  { %v3854_v48 = vadd.f32 1.0, %v4987_v3  ;;  %v4989_v29 = vpop.eup %4988  ;;  %v3765_v52 = vadd.f32 %v3733_v36, %v7866_v51  ;;  %v3796_v45 = vmul.f32 0.7978846, %v3764_v43  ;;  %v3637_v34 = vmul.f32 0.5, %v7866_v51 }
 0x5a9   :  { %v3905_v57 = vpack.c.bf16 %v3885_v12, %v3884_v2  ;;  %v3855_v40 = vadd.f32 1.0, %v4989_v29  ;;  %v4991_v1 = vpop.eup %4990  ;;  %4996 = vtanh.f32 %v3795_v60  ;;  %v8150_v37 = vsub.s32 2, %v8115_v6 }
 0x5aa   :  { %v3797_v23 = vmul.f32 0.7978846, %v3765_v52  ;;  %v4993_v10 = vpop.eup %4992  ;;  %v3886_v0 = vmul.f32 %v3854_v48, %v3630_v50  ;;  %v3856_v18 = vadd.f32 1.0, %v4991_v1  ;;  %4998 = vtanh.f32 %v3796_v45 }
 0x5ab   :  { %4572 = vmatmul.mubr.msk.bf16.gmra.mrb[68].mxu0 %vm802_vm1, %v3905_v57  ;;  %v3887_v4 = vmul.f32 %v3855_v40, %v3631_v26  ;;  %v3857_v31 = vadd.f32 1.0, %v4993_v10  ;;  %v7906_v22 = vrot.slane %v5004_v24, %v8150_v37 }
 0x5ac   :  { %5000 = vtanh.f32 %v3797_v23  ;;  %v3888_v28 = vmul.f32 %v3856_v18, %v3632_v13 }
 0x5ad   :  { %v3906_v20 = vpack.c.bf16 %v3887_v4, %v3886_v0  ;;  %v3889_v5 = vmul.f32 %v3857_v31, %v3633_v62 }
 0x5af   :  { %4575 = vmatprep.mubr.msk.bf16.mxu0 %vm802_vm1, %v3906_v20  ;;  %v3907_v47 = vpack.c.bf16 %v3889_v5, %v3888_v28 }
 0x5b1   :  { %v4995_v9 = vpop.eup %4994 }
 0x5b2   :  { %v3858_v19 = vadd.f32 1.0, %v4995_v9 }
 0x5b3   :  { %4576 = vmatmul.mubr.msk.bf16.gmra.mrb[72].mxu0 %vm802_vm1, %v3907_v47  ;;  %v4997_v25 = vpop.eup %4996 }
 0x5b4   :  { %v4999_v38 = vpop.eup %4998  ;;  %v3859_v49 = vadd.f32 1.0, %v4997_v25  ;;  %v3890_v11 = vmul.f32 %v3858_v19, %v3634_v58 }
 0x5b5   :  { %v3860_v55 = vadd.f32 1.0, %v4999_v38 }
 0x5b6   :  { %v5001_v41 = vpop.eup %5000  ;;  %v3891_v8 = vmul.f32 %v3859_v49, %v3635_v27 }
 0x5b7   :  { %v3861_v59 = vadd.f32 1.0, %v5001_v41  ;;  %v3892_v33 = vmul.f32 %v3860_v55, %v3636_v32 }
 0x5b8   :  { %v3908_v15 = vpack.c.bf16 %v3891_v8, %v3890_v11 }
 0x5b9   :  { %v3893_v35 = vmul.f32 %v3861_v59, %v3637_v34 }
 0x5ba   :  { %4579 = vmatprep.mubr.msk.bf16.mxu0 %vm802_vm1, %v3908_v15 }
 0x5bb   :  { %v3909_v53 = vpack.c.bf16 %v3893_v35, %v3892_v33 }
 0x5bd   :  { %4580 = vmatmul.mubr.msk.bf16.gmra.mrb[76].mxu0 %vm802_vm1, %v3909_v53 }
 0x5f4   :  { %v4553_v63 = vpop.f32.mrb[48].mxu0 }
 0x5f5   :  { %v4037_v51 = vadd.f32 %v4553_v63, %v7906_v22  ;;  %v4028_v30 = vpop.f32.mrb[49].mxu0 }
 0x5f6   :  { %v4029_v42 = vadd.f32 %v4028_v30, %v7906_v22  ;;  %v4554_v14 = vpop.f32.mrb[50].mxu0 }
 0x5f7   :  { %4157 = vst [vmem:[%s8041_s5 + $0x10] sm:$0xff] %v4037_v51  ;;  %v4040_v16 = vadd.f32 %v4554_v14, %v7906_v22  ;;  %v4031_v44 = vpop.f32.mrb[51].mxu0 }
 0x5f8   :  { %4155 = vst [vmem:[%s8041_s5] sm:$0xff] %v4029_v42  ;;  %v4032_v6 = vadd.f32 %v4031_v44, %v7906_v22 }
 0x5f9   :  { %4158 = vst [vmem:[%s8041_s5 + $0x18] sm:$0xff] %v4040_v16 }
 0x5fa   :  { %4156 = vst [vmem:[%s8041_s5 + $0x8] sm:$0xff] %v4032_v6 }
 0x60e   :  { %v4557_v56 = vpop.f32.mrb[52].mxu0 }
 0x60f   :  { %v4053_v17 = vadd.f32 %v4557_v56, %v7906_v22  ;;  %v4044_v21 = vpop.f32.mrb[53].mxu0 }
 0x610   :  { %v4045_v39 = vadd.f32 %v4044_v21, %v7906_v22  ;;  %v4558_v46 = vpop.f32.mrb[54].mxu0 }
 0x611   :  { %4161 = vst [vmem:[%s8041_s5 + $0x30] sm:$0xff] %v4053_v17  ;;  %v4056_v3 = vadd.f32 %v4558_v46, %v7906_v22  ;;  %v4047_v7 = vpop.f32.mrb[55].mxu0 }
 0x612   :  { %4159 = vst [vmem:[%s8041_s5 + $0x20] sm:$0xff] %v4045_v39  ;;  %v4048_v61 = vadd.f32 %v4047_v7, %v7906_v22 }
 0x613   :  { %4162 = vst [vmem:[%s8041_s5 + $0x38] sm:$0xff] %v4056_v3 }
 0x614   :  { %4160 = vst [vmem:[%s8041_s5 + $0x28] sm:$0xff] %v4048_v61 }
 0x62b   :  { %v4561_v36 = vpop.f32.mrb[56].mxu0 }
 0x62c   :  { %v4069_v2 = vadd.f32 %v4561_v36, %v7906_v22  ;;  %v4060_v12 = vpop.f32.mrb[57].mxu0 }
 0x62d   :  { %v4061_v48 = vadd.f32 %v4060_v12, %v7906_v22  ;;  %v4562_v43 = vpop.f32.mrb[58].mxu0 }
 0x62e   :  { %4165 = vst [vmem:[%s8041_s5 + $0x50] sm:$0xff] %v4069_v2  ;;  %v4072_v29 = vadd.f32 %v4562_v43, %v7906_v22  ;;  %v4063_v50 = vpop.f32.mrb[59].mxu0 }
 0x62f   :  { %4163 = vst [vmem:[%s8041_s5 + $0x40] sm:$0xff] %v4061_v48  ;;  %v4064_v54 = vadd.f32 %v4063_v50, %v7906_v22 }
 0x630   :  { %4166 = vst [vmem:[%s8041_s5 + $0x58] sm:$0xff] %v4072_v29 }
 0x631   :  { %4164 = vst [vmem:[%s8041_s5 + $0x48] sm:$0xff] %v4064_v54 }
 0x649   :  { %v4565_v60 = vpop.f32.mrb[60].mxu0 }
 0x64a   :  { %v4085_v52 = vadd.f32 %v4565_v60, %v7906_v22  ;;  %v4076_v57 = vpop.f32.mrb[61].mxu0 }
 0x64b   :  { %v4077_v26 = vadd.f32 %v4076_v57, %v7906_v22  ;;  %v4566_v40 = vpop.f32.mrb[62].mxu0 }
 0x64c   :  { %4169 = vst [vmem:[%s8041_s5 + $0x70] sm:$0xff] %v4085_v52  ;;  %v4088_v45 = vadd.f32 %v4566_v40, %v7906_v22  ;;  %v4079_v1 = vpop.f32.mrb[63].mxu0 }
 0x64d   :  { %4167 = vst [vmem:[%s8041_s5 + $0x60] sm:$0xff] %v4077_v26  ;;  %v4080_v23 = vadd.f32 %v4079_v1, %v7906_v22 }
 0x64e   :  { %4170 = vst [vmem:[%s8041_s5 + $0x78] sm:$0xff] %v4088_v45 }
 0x64f   :  { %4168 = vst [vmem:[%s8041_s5 + $0x68] sm:$0xff] %v4080_v23 }
 0x66b   :  { %v4569_v10 = vpop.f32.mrb[64].mxu0 }
 0x66c   :  { %v4101_v0 = vadd.f32 %v4569_v10, %v7906_v22  ;;  %v4092_v4 = vpop.f32.mrb[65].mxu0 }
 0x66d   :  { %v4093_v18 = vadd.f32 %v4092_v4, %v7906_v22  ;;  %v4570_v62 = vpop.f32.mrb[66].mxu0 }
 0x66e   :  { %4173 = vst [vmem:[%s8041_s5 + $0x90] sm:$0xff] %v4101_v0  ;;  %v4104_v31 = vadd.f32 %v4570_v62, %v7906_v22  ;;  %v4095_v20 = vpop.f32.mrb[67].mxu0 }
 0x66f   :  { %4171 = vst [vmem:[%s8041_s5 + $0x80] sm:$0xff] %v4093_v18  ;;  %v4096_v13 = vadd.f32 %v4095_v20, %v7906_v22 }
 0x670   :  { %4174 = vst [vmem:[%s8041_s5 + $0x98] sm:$0xff] %v4104_v31 }
 0x671   :  { %4172 = vst [vmem:[%s8041_s5 + $0x88] sm:$0xff] %v4096_v13 }
 0x67e   :  { %v4573_v5 = vpop.f32.mrb[68].mxu0 }
 0x67f   :  { %v4117_v28 = vadd.f32 %v4573_v5, %v7906_v22  ;;  %v4108_v47 = vpop.f32.mrb[69].mxu0 }
 0x680   :  { %v4109_v9 = vadd.f32 %v4108_v47, %v7906_v22  ;;  %v4574_v25 = vpop.f32.mrb[70].mxu0 }
 0x681   :  { %4177 = vst [vmem:[%s8041_s5 + $0xb0] sm:$0xff] %v4117_v28  ;;  %v4120_v19 = vadd.f32 %v4574_v25, %v7906_v22  ;;  %v4111_v38 = vpop.f32.mrb[71].mxu0 }
 0x682   :  { %4175 = vst [vmem:[%s8041_s5 + $0xa0] sm:$0xff] %v4109_v9  ;;  %v4112_v58 = vadd.f32 %v4111_v38, %v7906_v22 }
 0x683   :  { %4178 = vst [vmem:[%s8041_s5 + $0xb8] sm:$0xff] %v4120_v19 }
 0x684   :  { %4176 = vst [vmem:[%s8041_s5 + $0xa8] sm:$0xff] %v4112_v58 }
 0x686   :  { %v4577_v27 = vpop.f32.mrb[72].mxu0 }
 0x687   :  { %v4133_v49 = vadd.f32 %v4577_v27, %v7906_v22  ;;  %v4124_v41 = vpop.f32.mrb[73].mxu0 }
 0x688   :  { %v4125_v32 = vadd.f32 %v4124_v41, %v7906_v22  ;;  %v4578_v55 = vpop.f32.mrb[74].mxu0 }
 0x689   :  { %4181 = vst [vmem:[%s8041_s5 + $0xd0] sm:$0xff] %v4133_v49  ;;  %v4136_v11 = vadd.f32 %v4578_v55, %v7906_v22  ;;  %v4127_v8 = vpop.f32.mrb[75].mxu0 }
 0x68a   :  { %4179 = vst [vmem:[%s8041_s5 + $0xc0] sm:$0xff] %v4125_v32  ;;  %v4128_v34 = vadd.f32 %v4127_v8, %v7906_v22 }
 0x68b   :  { %4182 = vst [vmem:[%s8041_s5 + $0xd8] sm:$0xff] %v4136_v11 }
 0x68c   :  { %4180 = vst [vmem:[%s8041_s5 + $0xc8] sm:$0xff] %v4128_v34 }
 0x690   :  { %v4581_v59 = vpop.f32.mrb[76].mxu0 }
 0x691   :  { %v4149_v15 = vadd.f32 %v4581_v59, %v7906_v22  ;;  %v4140_v33 = vpop.f32.mrb[77].mxu0 }
 0x692   :  { %v4141_v35 = vadd.f32 %v4140_v33, %v7906_v22  ;;  %v4582_v53 = vpop.f32.mrb[78].mxu0 }
 0x693   :  { %4185 = vst [vmem:[%s8041_s5 + $0xf0] sm:$0xff] %v4149_v15  ;;  %v4152_v24 = vadd.f32 %v4582_v53, %v7906_v22  ;;  %v4143_v37 = vpop.f32.mrb[79].mxu0 }
 0x694   :  { %4183 = vst [vmem:[%s8041_s5 + $0xe0] sm:$0xff] %v4141_v35  ;;  %v4144_v63 = vadd.f32 %v4143_v37, %v7906_v22 }
 0x695   :  { %4186 = vst [vmem:[%s8041_s5 + $0xf8] sm:$0xff] %v4152_v24 }
 0x696   :  { %4184 = vst [vmem:[%s8041_s5 + $0xe8] sm:$0xff] %v4144_v63 }

</bundles_post_ra>
